<compile_context>
chip_gen: v5e
topology: v5e:2x2
jax: 0.10.0
libtpu: 0.0.40
codegen_flags: <defaults>
</compile_context>

<pallas_src>
import functools

import jax
import jax.numpy as jnp
from jax import lax
from jax.experimental import pallas as pl
from jax.experimental.pallas import tpu as pltpu

# ---------------- configuration (deterministic, in-script) ----------------
VOCAB = 32          # cfg.DATASET.VOCABULARY_SIZE
EMBED = 16          # cfg.AEJEPS.EMBEDDING_DIM
HIDDEN = 32         # cfg.AEJEPS.HIDDEN_DIM
NUM_DIRECTIONS = 2  # IS_BIDIRECTIONAL
NUM_LAYERS = 2      # cfg.AEJEPS.NUM_LAYERS_ENCODER
DEC_HIDDEN = NUM_DIRECTIONS * HIDDEN   # 64
CNN_FC_DIM = 64     # cfg.AEJEPS.CNN_FC_DIM
IMG_FEAT = 2048 * 7 * 7                # hardcoded in the module: 100352
SOS = 1             # cfg.DATASET.SOS

BATCH = 2
MAX_LEN = 8
NUM_FTRS = DEC_HIDDEN   # enc_output feature dim (only its shape is used)


# ============ Pallas kernel: fused img_projection (Linear+ReLU+Linear) =====
# Grid tiles the big output/weight N dimension; the tiny (B,64)@(64,64)+ReLU
# first projection is recomputed per tile (negligible) so the kernel stays
# correct under "parallel" megacore sharding with no cross-step state.
def _img_proj_kernel(h_ref, w1_ref, b1_ref, w2_ref, b2_ref, o_ref):
    hid = jnp.dot(h_ref[...].astype(jnp.bfloat16), w1_ref[...],
                  preferred_element_type=jnp.float32) + b1_ref[...]
    hid = jnp.maximum(hid, 0.0).astype(jnp.bfloat16)          # DECODER_ACTIVATION=ReLU
    y = jnp.dot(hid, w2_ref[...], preferred_element_type=jnp.float32) + b2_ref[...]
    o_ref[...] = y


def image_projection(h, params, *, tn=25088):
    """relu(h @ w1 + b1) @ w2 + b2, reshaped to the (B, 2048, 7, 7) bottleneck."""
    B = h.shape[0]
    assert IMG_FEAT % tn == 0 and tn % 128 == 0
    out = pl.pallas_call(
        _img_proj_kernel,
        out_shape=jax.ShapeDtypeStruct((B, IMG_FEAT), jnp.float32),
        grid=(IMG_FEAT // tn,),
        in_specs=[
            pl.BlockSpec((B, DEC_HIDDEN), lambda j: (0, 0)),
            pl.BlockSpec((DEC_HIDDEN, CNN_FC_DIM), lambda j: (0, 0)),
            pl.BlockSpec((1, CNN_FC_DIM), lambda j: (0, 0)),
            pl.BlockSpec((CNN_FC_DIM, tn), lambda j: (0, j)),   # bf16 weight stream
            pl.BlockSpec((1, tn), lambda j: (0, j)),
        ],
        out_specs=pl.BlockSpec((B, tn), lambda j: (0, j)),
        compiler_params=pltpu.CompilerParams(
            dimension_semantics=("parallel",),      # v7x: shard N tiles over 2 TCs
            vmem_limit_bytes=32 * 1024 * 1024,      # headroom over v5e's 16 MiB default
        ),
    )(h, params["proj_w1"], params["proj_b1"].reshape(1, -1),
      params["proj_w2"], params["proj_b2"].reshape(1, -1))
    return out.reshape(B, 2048, 7, 7)   # NCHW bottleneck fed to the ResNet decoder


# ============ Pallas kernel: fused dual autoregressive LSTM decode ==========
# One kernel runs BOTH greedy decode loops (language + motor) with the shared
# embedding table resident in VMEM. The loop is statically unrolled; the two
# independent chains interleave so MXU/EUP latency of one hides the other.
# Gate packing is (i, f, o, g): one sigmoid over a contiguous 3H slice, one
# tanh over the trailing H lanes. Outputs accumulate in-register and are
# stored once as lane-dense (B, max_len*V) slabs.
def _dual_decode_kernel(emb_ref, lwih_ref, lwhh_ref, lb_ref, lhw_ref, lhb_ref,
                        mwih_ref, mwhh_ref, mb_ref, mhw_ref, mhb_ref,
                        h0_ref, c0_ref, lang_out_ref, motor_out_ref, *, max_len):
    V, _ = emb_ref.shape
    B, H = h0_ref.shape

    lane_iota = lax.broadcasted_iota(jnp.int32, (B, V), 1)
    sos_onehot = (lane_iota == SOS).astype(jnp.float32)

    emb = emb_ref[...]
    lwih, lwhh, lb = lwih_ref[...], lwhh_ref[...], lb_ref[...]
    mwih, mwhh, mb = mwih_ref[...], mwhh_ref[...], mb_ref[...]
    lhw, lhb = lhw_ref[...], lhb_ref[...]
    mhw, mhb = mhw_ref[...], mhb_ref[...]

    def cell(onehot, h, c, wih, whh, b, hw, hb):
        # embedding(token) as one-hot @ table (MXU friendly)
        x = jnp.dot(onehot, emb, preferred_element_type=jnp.float32)
        # LSTMCell gates packed (i, f, o, g)
        gates = (jnp.dot(x, wih, preferred_element_type=jnp.float32)
                 + jnp.dot(h, whh, preferred_element_type=jnp.float32) + b)
        sig = jax.nn.sigmoid(gates[:, :3 * H])        # single contiguous EUP push
        g_g = jnp.tanh(gates[:, 3 * H:])
        i_g = sig[:, 0 * H:1 * H]
        f_g = sig[:, 1 * H:2 * H]
        o_g = sig[:, 2 * H:3 * H]
        c_new = f_g * c + i_g * g_g
        h_new = o_g * jnp.tanh(c_new)
        # head + Tanh activation (ACTIVATION_LANG / ACTIVATION_MOTOR = Tanh)
        scores = jnp.tanh(
            jnp.dot(h_new, hw, preferred_element_type=jnp.float32) + hb)
        # greedy argmax with first-max tie-break (matches torch.argmax; tanh is
        # monotonic so arg matches argmax of raw logits)
        mx = jnp.max(scores, axis=1, keepdims=True)
        masked_idx = jnp.where(scores == mx, lane_iota, V)
        first_idx = jnp.min(masked_idx, axis=1, keepdims=True)
        new_onehot = (lane_iota == first_idx).astype(jnp.float32)
        return scores, new_onehot, h_new, c_new

    l_oh = sos_onehot
    m_oh = sos_onehot
    l_h, l_c = h0_ref[...], c0_ref[...]
    m_h, m_c = h0_ref[...], c0_ref[...]
    l_scores, m_scores = [], []
    for _ in range(max_len):   # static unroll (max_len is 8 train / 11 eval)
        ls, l_oh, l_h, l_c = cell(l_oh, l_h, l_c, lwih, lwhh, lb, lhw, lhb)
        ms, m_oh, m_h, m_c = cell(m_oh, m_h, m_c, mwih, mwhh, mb, mhw, mhb)
        l_scores.append(ls)
        m_scores.append(ms)
    lang_out_ref[...] = jnp.concatenate(l_scores, axis=1)
    motor_out_ref[...] = jnp.concatenate(m_scores, axis=1)


def dual_greedy_decode(params, h0, c0, max_len):
    B = h0.shape[0]
    vmem = pl.BlockSpec(memory_space=pltpu.MemorySpace.VMEM)
    lang_flat, motor_flat = pl.pallas_call(
        functools.partial(_dual_decode_kernel, max_len=max_len),
        out_shape=(jax.ShapeDtypeStruct((B, max_len * VOCAB), jnp.float32),
                   jax.ShapeDtypeStruct((B, max_len * VOCAB), jnp.float32)),
        in_specs=[vmem] * 13,
        out_specs=(vmem, vmem),
    )(params["embedding"],
      params["lang_wih"], params["lang_whh"], params["lang_b"].reshape(1, -1),
      params["lang_head_w"], params["lang_head_b"].reshape(1, -1),
      params["motor_wih"], params["motor_whh"], params["motor_b"].reshape(1, -1),
      params["motor_head_w"], params["motor_head_b"].reshape(1, -1),
      h0, c0)
    # lane-dense (B, T*V) slab -> (B, T, V) like torch.cat(lang_out, 1)
    return (lang_flat.reshape(B, max_len, VOCAB),
            motor_flat.reshape(B, max_len, VOCAB))


# =========================== parameter construction ========================
def init_params(key):
    ks = jax.random.split(key, 16)
    s = 0.1

    def rnd(k, shape):
        return jax.random.normal(k, shape, dtype=jnp.float32) * s

    return {
        "embedding": rnd(ks[0], (VOCAB, EMBED)),
        # LSTMCell weights stored transposed (in, 4H) so the kernel does x @ W.
        # Gates packed (i, f, o, g) — a pure column permutation of torch's
        # (i, f, g, o) layout; weights are freshly initialized here.
        "lang_wih": rnd(ks[1], (EMBED, 4 * DEC_HIDDEN)),
        "lang_whh": rnd(ks[2], (DEC_HIDDEN, 4 * DEC_HIDDEN)),
        "lang_b": rnd(ks[3], (4 * DEC_HIDDEN,)),        # b_ih + b_hh folded
        "motor_wih": rnd(ks[4], (EMBED, 4 * DEC_HIDDEN)),
        "motor_whh": rnd(ks[5], (DEC_HIDDEN, 4 * DEC_HIDDEN)),
        "motor_b": rnd(ks[6], (4 * DEC_HIDDEN,)),
        # heads
        "lang_head_w": rnd(ks[7], (DEC_HIDDEN, VOCAB)),
        "lang_head_b": rnd(ks[8], (VOCAB,)),
        "motor_head_w": rnd(ks[9], (DEC_HIDDEN, VOCAB)),
        "motor_head_b": rnd(ks[10], (VOCAB,)),
        # img_projection: Linear(64->64), ReLU, Linear(64 -> 2048*7*7)
        # Weights kept bf16 (the big linear is pure weight-bandwidth bound);
        # accumulation stays f32 via preferred_element_type.
        "proj_w1": rnd(ks[11], (DEC_HIDDEN, CNN_FC_DIM)).astype(jnp.bfloat16),
        "proj_b1": rnd(ks[12], (CNN_FC_DIM,)),
        "proj_w2": rnd(ks[13], (CNN_FC_DIM, IMG_FEAT)).astype(jnp.bfloat16),
        "proj_b2": rnd(ks[14], (IMG_FEAT,)),
    }


# ============================== forward pass ===============================
def _rearrange_states(state, B):
    # einops: '(d l) b h -> l b (d h)', then take layer NUM_LAYERS-1
    d, l = NUM_DIRECTIONS, NUM_LAYERS
    s = state.reshape(d, l, B, HIDDEN)
    s = jnp.transpose(s, (1, 2, 0, 3))          # (l, B, d, H)
    return s[l - 1].reshape(B, d * HIDDEN)      # (B, d*H)


def jepsam_decoder_forward(enc_output, len_enc_output, hidden, carousel, params,
                           mode="train"):
    B, max_len, _ = enc_output.shape          # enc_output only contributes its shape
    if mode != "train":
        max_len = 11
    h = _rearrange_states(hidden, B)
    c = _rearrange_states(carousel, B)

    # fused kernel: both greedy decode chains in one launch
    lang_out, motor_out = dual_greedy_decode(params, h, c, max_len)

    # image branch: computed ONCE and reused — in the reference module
    # _generate_goal_image(hidden) == _reconstruct_image(hidden) bit-for-bit.
    img_bottleneck = image_projection(h, params)
    # TODO(synk): ResNetDecoder (self.img_decoder) definition is not part of the
    # provided module source; returning the projected (B, 2048, 7, 7) bottleneck.
    per_image_rec = img_bottleneck
    goal_image = img_bottleneck
    return per_image_rec, goal_image, lang_out, motor_out


# ================================== main ===================================
if __name__ == "__main__":
    key = jax.random.PRNGKey(0)
    k_par, k_enc, k_hid, k_car = jax.random.split(key, 4)

    params = init_params(k_par)

    enc_output = jax.random.normal(k_enc, (BATCH, MAX_LEN, NUM_FTRS), jnp.float32)
    len_enc_output = jnp.full((BATCH,), MAX_LEN, dtype=jnp.int32)
    hidden = jax.random.normal(
        k_hid, (NUM_DIRECTIONS * NUM_LAYERS, BATCH, HIDDEN), jnp.float32)
    carousel = jax.random.normal(
        k_car, (NUM_DIRECTIONS * NUM_LAYERS, BATCH, HIDDEN), jnp.float32)

    per_image_rec, goal_image, lang_out, motor_out = jepsam_decoder_forward(
        enc_output, len_enc_output, hidden, carousel, params, mode="train")

    jax.block_until_ready((per_image_rec, goal_image, lang_out, motor_out))

    assert per_image_rec.shape == (BATCH, 2048, 7, 7)
    assert goal_image.shape == (BATCH, 2048, 7, 7)
    assert lang_out.shape == (BATCH, MAX_LEN, VOCAB)
    assert motor_out.shape == (BATCH, MAX_LEN, VOCAB)
    assert bool(jnp.all(jnp.isfinite(lang_out))) and bool(jnp.all(jnp.isfinite(per_image_rec)))
    print("KERNEL_OK")
</pallas_src>

<mosaic_0001>
module attributes {stable_mosaic.version = 11 : i64} {
  func.func @_dual_decode_kernel(%arg0: memref<32x16xf32, #tpu.memory_space<vmem>>, %arg1: memref<16x256xf32, #tpu.memory_space<vmem>>, %arg2: memref<64x256xf32, #tpu.memory_space<vmem>>, %arg3: memref<1x256xf32, #tpu.memory_space<vmem>>, %arg4: memref<64x32xf32, #tpu.memory_space<vmem>>, %arg5: memref<1x32xf32, #tpu.memory_space<vmem>>, %arg6: memref<16x256xf32, #tpu.memory_space<vmem>>, %arg7: memref<64x256xf32, #tpu.memory_space<vmem>>, %arg8: memref<1x256xf32, #tpu.memory_space<vmem>>, %arg9: memref<64x32xf32, #tpu.memory_space<vmem>>, %arg10: memref<1x32xf32, #tpu.memory_space<vmem>>, %arg11: memref<2x64xf32, #tpu.memory_space<vmem>>, %arg12: memref<2x64xf32, #tpu.memory_space<vmem>>, %arg13: memref<2x256xf32, #tpu.memory_space<vmem>>, %arg14: memref<2x256xf32, #tpu.memory_space<vmem>>) attributes {dimension_semantics = [], scalar_prefetch = 0 : i64, scratch_operands = 0 : i64, tpu.core_type = #tpu.core_type<tc>} {
    %0 = tpu.iota {dimensions = array<i32: 1>} : vector<2x32xi32>
    %c1_i32 = arith.constant 1 : i32
    %1 = vector.broadcast %c1_i32 : i32 to vector<2x32xi32>
    %2 = arith.cmpi eq, %0, %1 : vector<2x32xi32>
    %3 = arith.extui %2 : vector<2x32xi1> to vector<2x32xi32>
    %4 = arith.sitofp %3 : vector<2x32xi32> to vector<2x32xf32>
    %c0 = arith.constant 0 : index
    %c0_0 = arith.constant 0 : index
    %5 = vector.load %arg0[%c0, %c0_0] : memref<32x16xf32, #tpu.memory_space<vmem>>, vector<32x16xf32>
    %c0_1 = arith.constant 0 : index
    %c0_2 = arith.constant 0 : index
    %6 = vector.load %arg1[%c0_1, %c0_2] : memref<16x256xf32, #tpu.memory_space<vmem>>, vector<16x256xf32>
    %c0_3 = arith.constant 0 : index
    %c0_4 = arith.constant 0 : index
    %7 = vector.load %arg2[%c0_3, %c0_4] : memref<64x256xf32, #tpu.memory_space<vmem>>, vector<64x256xf32>
    %c0_5 = arith.constant 0 : index
    %c0_6 = arith.constant 0 : index
    %8 = vector.load %arg3[%c0_5, %c0_6] : memref<1x256xf32, #tpu.memory_space<vmem>>, vector<1x256xf32>
    %c0_7 = arith.constant 0 : index
    %c0_8 = arith.constant 0 : index
    %9 = vector.load %arg6[%c0_7, %c0_8] : memref<16x256xf32, #tpu.memory_space<vmem>>, vector<16x256xf32>
    %c0_9 = arith.constant 0 : index
    %c0_10 = arith.constant 0 : index
    %10 = vector.load %arg7[%c0_9, %c0_10] : memref<64x256xf32, #tpu.memory_space<vmem>>, vector<64x256xf32>
    %c0_11 = arith.constant 0 : index
    %c0_12 = arith.constant 0 : index
    %11 = vector.load %arg8[%c0_11, %c0_12] : memref<1x256xf32, #tpu.memory_space<vmem>>, vector<1x256xf32>
    %c0_13 = arith.constant 0 : index
    %c0_14 = arith.constant 0 : index
    %12 = vector.load %arg4[%c0_13, %c0_14] : memref<64x32xf32, #tpu.memory_space<vmem>>, vector<64x32xf32>
    %c0_15 = arith.constant 0 : index
    %c0_16 = arith.constant 0 : index
    %13 = vector.load %arg5[%c0_15, %c0_16] : memref<1x32xf32, #tpu.memory_space<vmem>>, vector<1x32xf32>
    %c0_17 = arith.constant 0 : index
    %c0_18 = arith.constant 0 : index
    %14 = vector.load %arg9[%c0_17, %c0_18] : memref<64x32xf32, #tpu.memory_space<vmem>>, vector<64x32xf32>
    %c0_19 = arith.constant 0 : index
    %c0_20 = arith.constant 0 : index
    %15 = vector.load %arg10[%c0_19, %c0_20] : memref<1x32xf32, #tpu.memory_space<vmem>>, vector<1x32xf32>
    %c0_21 = arith.constant 0 : index
    %c0_22 = arith.constant 0 : index
    %16 = vector.load %arg11[%c0_21, %c0_22] : memref<2x64xf32, #tpu.memory_space<vmem>>, vector<2x64xf32>
    %c0_23 = arith.constant 0 : index
    %c0_24 = arith.constant 0 : index
    %17 = vector.load %arg12[%c0_23, %c0_24] : memref<2x64xf32, #tpu.memory_space<vmem>>, vector<2x64xf32>
    %c0_25 = arith.constant 0 : index
    %c0_26 = arith.constant 0 : index
    %18 = vector.load %arg11[%c0_25, %c0_26] : memref<2x64xf32, #tpu.memory_space<vmem>>, vector<2x64xf32>
    %c0_27 = arith.constant 0 : index
    %c0_28 = arith.constant 0 : index
    %19 = vector.load %arg12[%c0_27, %c0_28] : memref<2x64xf32, #tpu.memory_space<vmem>>, vector<2x64xf32>
    %cst = arith.constant dense<0.000000e+00> : vector<2x16xf32>
    %20 = tpu.matmul %4, %5, %cst {dimension_numbers = #tpu.dot_dimension_numbers<[1], [0], [0], [1], [0, 0, 1, 1], [], []>} : vector<2x32xf32>, vector<32x16xf32>, vector<2x16xf32> -> vector<2x16xf32>
    %cst_29 = arith.constant dense<0.000000e+00> : vector<2x256xf32>
    %21 = tpu.matmul %20, %6, %cst_29 {dimension_numbers = #tpu.dot_dimension_numbers<[1], [0], [0], [1], [0, 0, 1, 1], [], []>} : vector<2x16xf32>, vector<16x256xf32>, vector<2x256xf32> -> vector<2x256xf32>
    %cst_30 = arith.constant dense<0.000000e+00> : vector<2x256xf32>
    %22 = tpu.matmul %16, %7, %cst_30 {dimension_numbers = #tpu.dot_dimension_numbers<[1], [0], [0], [1], [0, 0, 1, 1], [], []>} : vector<2x64xf32>, vector<64x256xf32>, vector<2x256xf32> -> vector<2x256xf32>
    %23 = arith.addf %21, %22 : vector<2x256xf32>
    %24 = vector.broadcast %8 : vector<1x256xf32> to vector<2x256xf32>
    %25 = arith.addf %23, %24 : vector<2x256xf32>
    %26 = vector.extract_strided_slice %25 {offsets = [0, 0], sizes = [2, 192], strides = [1, 1]} : vector<2x256xf32> to vector<2x192xf32>
    %27 = arith.negf %26 : vector<2x192xf32>
    %28 = math.exp %27 : vector<2x192xf32>
    %cst_31 = arith.constant 1.000000e+00 : f32
    %29 = vector.broadcast %cst_31 : f32 to vector<2x192xf32>
    %30 = arith.addf %29, %28 : vector<2x192xf32>
    %31 = arith.divf %29, %30 : vector<2x192xf32>
    %32 = vector.extract_strided_slice %25 {offsets = [0, 192], sizes = [2, 64], strides = [1, 1]} : vector<2x256xf32> to vector<2x64xf32>
    %33 = math.tanh %32 : vector<2x64xf32>
    %34 = vector.extract_strided_slice %31 {offsets = [0, 0], sizes = [2, 64], strides = [1, 1]} : vector<2x192xf32> to vector<2x64xf32>
    %35 = vector.extract_strided_slice %31 {offsets = [0, 64], sizes = [2, 64], strides = [1, 1]} : vector<2x192xf32> to vector<2x64xf32>
    %36 = vector.extract_strided_slice %31 {offsets = [0, 128], sizes = [2, 64], strides = [1, 1]} : vector<2x192xf32> to vector<2x64xf32>
    %37 = arith.mulf %35, %17 : vector<2x64xf32>
    %38 = arith.mulf %34, %33 : vector<2x64xf32>
    %39 = arith.addf %37, %38 : vector<2x64xf32>
    %40 = math.tanh %39 : vector<2x64xf32>
    %41 = arith.mulf %36, %40 : vector<2x64xf32>
    %cst_32 = arith.constant dense<0.000000e+00> : vector<2x32xf32>
    %42 = tpu.matmul %41, %12, %cst_32 {dimension_numbers = #tpu.dot_dimension_numbers<[1], [0], [0], [1], [0, 0, 1, 1], [], []>} : vector<2x64xf32>, vector<64x32xf32>, vector<2x32xf32> -> vector<2x32xf32>
    %43 = vector.broadcast %13 : vector<1x32xf32> to vector<2x32xf32>
    %44 = arith.addf %42, %43 : vector<2x32xf32>
    %45 = math.tanh %44 : vector<2x32xf32>
    %cst_33 = arith.constant dense<0xFF800000> : vector<2xf32>
    %46 = vector.multi_reduction <maximumf>, %45, %cst_33 [1] : vector<2x32xf32> to vector<2xf32>
    %47 = vector.shape_cast %46 : vector<2xf32> to vector<2x1xf32>
    %48 = vector.broadcast %47 : vector<2x1xf32> to vector<2x32xf32>
    %49 = arith.cmpf oeq, %45, %48 : vector<2x32xf32>
    %c32_i32 = arith.constant 32 : i32
    %50 = vector.broadcast %c32_i32 : i32 to vector<2x32xi32>
    %51 = arith.select %49, %0, %50 : vector<2x32xi1>, vector<2x32xi32>
    %cst_34 = arith.constant dense<2147483647> : vector<2xi32>
    %52 = vector.multi_reduction <minsi>, %51, %cst_34 [1] : vector<2x32xi32> to vector<2xi32>
    %53 = vector.shape_cast %52 : vector<2xi32> to vector<2x1xi32>
    %54 = vector.broadcast %53 : vector<2x1xi32> to vector<2x32xi32>
    %55 = arith.cmpi eq, %0, %54 : vector<2x32xi32>
    %56 = arith.extui %55 : vector<2x32xi1> to vector<2x32xi32>
    %57 = arith.sitofp %56 : vector<2x32xi32> to vector<2x32xf32>
    %cst_35 = arith.constant dense<0.000000e+00> : vector<2x16xf32>
    %58 = tpu.matmul %4, %5, %cst_35 {dimension_numbers = #tpu.dot_dimension_numbers<[1], [0], [0], [1], [0, 0, 1, 1], [], []>} : vector<2x32xf32>, vector<32x16xf32>, vector<2x16xf32> -> vector<2x16xf32>
    %cst_36 = arith.constant dense<0.000000e+00> : vector<2x256xf32>
    %59 = tpu.matmul %58, %9, %cst_36 {dimension_numbers = #tpu.dot_dimension_numbers<[1], [0], [0], [1], [0, 0, 1, 1], [], []>} : vector<2x16xf32>, vector<16x256xf32>, vector<2x256xf32> -> vector<2x256xf32>
    %cst_37 = arith.constant dense<0.000000e+00> : vector<2x256xf32>
    %60 = tpu.matmul %18, %10, %cst_37 {dimension_numbers = #tpu.dot_dimension_numbers<[1], [0], [0], [1], [0, 0, 1, 1], [], []>} : vector<2x64xf32>, vector<64x256xf32>, vector<2x256xf32> -> vector<2x256xf32>
    %61 = arith.addf %59, %60 : vector<2x256xf32>
    %62 = vector.broadcast %11 : vector<1x256xf32> to vector<2x256xf32>
    %63 = arith.addf %61, %62 : vector<2x256xf32>
    %64 = vector.extract_strided_slice %63 {offsets = [0, 0], sizes = [2, 192], strides = [1, 1]} : vector<2x256xf32> to vector<2x192xf32>
    %65 = arith.negf %64 : vector<2x192xf32>
    %66 = math.exp %65 : vector<2x192xf32>
    %cst_38 = arith.constant 1.000000e+00 : f32
    %67 = vector.broadcast %cst_38 : f32 to vector<2x192xf32>
    %68 = arith.addf %67, %66 : vector<2x192xf32>
    %69 = arith.divf %67, %68 : vector<2x192xf32>
    %70 = vector.extract_strided_slice %63 {offsets = [0, 192], sizes = [2, 64], strides = [1, 1]} : vector<2x256xf32> to vector<2x64xf32>
    %71 = math.tanh %70 : vector<2x64xf32>
    %72 = vector.extract_strided_slice %69 {offsets = [0, 0], sizes = [2, 64], strides = [1, 1]} : vector<2x192xf32> to vector<2x64xf32>
    %73 = vector.extract_strided_slice %69 {offsets = [0, 64], sizes = [2, 64], strides = [1, 1]} : vector<2x192xf32> to vector<2x64xf32>
    %74 = vector.extract_strided_slice %69 {offsets = [0, 128], sizes = [2, 64], strides = [1, 1]} : vector<2x192xf32> to vector<2x64xf32>
    %75 = arith.mulf %73, %19 : vector<2x64xf32>
    %76 = arith.mulf %72, %71 : vector<2x64xf32>
    %77 = arith.addf %75, %76 : vector<2x64xf32>
    %78 = math.tanh %77 : vector<2x64xf32>
    %79 = arith.mulf %74, %78 : vector<2x64xf32>
    %cst_39 = arith.constant dense<0.000000e+00> : vector<2x32xf32>
    %80 = tpu.matmul %79, %14, %cst_39 {dimension_numbers = #tpu.dot_dimension_numbers<[1], [0], [0], [1], [0, 0, 1, 1], [], []>} : vector<2x64xf32>, vector<64x32xf32>, vector<2x32xf32> -> vector<2x32xf32>
    %81 = vector.broadcast %15 : vector<1x32xf32> to vector<2x32xf32>
    %82 = arith.addf %80, %81 : vector<2x32xf32>
    %83 = math.tanh %82 : vector<2x32xf32>
    %cst_40 = arith.constant dense<0xFF800000> : vector<2xf32>
    %84 = vector.multi_reduction <maximumf>, %83, %cst_40 [1] : vector<2x32xf32> to vector<2xf32>
    %85 = vector.shape_cast %84 : vector<2xf32> to vector<2x1xf32>
    %86 = vector.broadcast %85 : vector<2x1xf32> to vector<2x32xf32>
    %87 = arith.cmpf oeq, %83, %86 : vector<2x32xf32>
    %c32_i32_41 = arith.constant 32 : i32
    %88 = vector.broadcast %c32_i32_41 : i32 to vector<2x32xi32>
    %89 = arith.select %87, %0, %88 : vector<2x32xi1>, vector<2x32xi32>
    %cst_42 = arith.constant dense<2147483647> : vector<2xi32>
    %90 = vector.multi_reduction <minsi>, %89, %cst_42 [1] : vector<2x32xi32> to vector<2xi32>
    %91 = vector.shape_cast %90 : vector<2xi32> to vector<2x1xi32>
    %92 = vector.broadcast %91 : vector<2x1xi32> to vector<2x32xi32>
    %93 = arith.cmpi eq, %0, %92 : vector<2x32xi32>
    %94 = arith.extui %93 : vector<2x32xi1> to vector<2x32xi32>
    %95 = arith.sitofp %94 : vector<2x32xi32> to vector<2x32xf32>
    %cst_43 = arith.constant dense<0.000000e+00> : vector<2x16xf32>
    %96 = tpu.matmul %57, %5, %cst_43 {dimension_numbers = #tpu.dot_dimension_numbers<[1], [0], [0], [1], [0, 0, 1, 1], [], []>} : vector<2x32xf32>, vector<32x16xf32>, vector<2x16xf32> -> vector<2x16xf32>
    %cst_44 = arith.constant dense<0.000000e+00> : vector<2x256xf32>
    %97 = tpu.matmul %96, %6, %cst_44 {dimension_numbers = #tpu.dot_dimension_numbers<[1], [0], [0], [1], [0, 0, 1, 1], [], []>} : vector<2x16xf32>, vector<16x256xf32>, vector<2x256xf32> -> vector<2x256xf32>
    %cst_45 = arith.constant dense<0.000000e+00> : vector<2x256xf32>
    %98 = tpu.matmul %41, %7, %cst_45 {dimension_numbers = #tpu.dot_dimension_numbers<[1], [0], [0], [1], [0, 0, 1, 1], [], []>} : vector<2x64xf32>, vector<64x256xf32>, vector<2x256xf32> -> vector<2x256xf32>
    %99 = arith.addf %97, %98 : vector<2x256xf32>
    %100 = vector.broadcast %8 : vector<1x256xf32> to vector<2x256xf32>
    %101 = arith.addf %99, %100 : vector<2x256xf32>
    %102 = vector.extract_strided_slice %101 {offsets = [0, 0], sizes = [2, 192], strides = [1, 1]} : vector<2x256xf32> to vector<2x192xf32>
    %103 = arith.negf %102 : vector<2x192xf32>
    %104 = math.exp %103 : vector<2x192xf32>
    %cst_46 = arith.constant 1.000000e+00 : f32
    %105 = vector.broadcast %cst_46 : f32 to vector<2x192xf32>
    %106 = arith.addf %105, %104 : vector<2x192xf32>
    %107 = arith.divf %105, %106 : vector<2x192xf32>
    %108 = vector.extract_strided_slice %101 {offsets = [0, 192], sizes = [2, 64], strides = [1, 1]} : vector<2x256xf32> to vector<2x64xf32>
    %109 = math.tanh %108 : vector<2x64xf32>
    %110 = vector.extract_strided_slice %107 {offsets = [0, 0], sizes = [2, 64], strides = [1, 1]} : vector<2x192xf32> to vector<2x64xf32>
    %111 = vector.extract_strided_slice %107 {offsets = [0, 64], sizes = [2, 64], strides = [1, 1]} : vector<2x192xf32> to vector<2x64xf32>
    %112 = vector.extract_strided_slice %107 {offsets = [0, 128], sizes = [2, 64], strides = [1, 1]} : vector<2x192xf32> to vector<2x64xf32>
    %113 = arith.mulf %111, %39 : vector<2x64xf32>
    %114 = arith.mulf %110, %109 : vector<2x64xf32>
    %115 = arith.addf %113, %114 : vector<2x64xf32>
    %116 = math.tanh %115 : vector<2x64xf32>
    %117 = arith.mulf %112, %116 : vector<2x64xf32>
    %cst_47 = arith.constant dense<0.000000e+00> : vector<2x32xf32>
    %118 = tpu.matmul %117, %12, %cst_47 {dimension_numbers = #tpu.dot_dimension_numbers<[1], [0], [0], [1], [0, 0, 1, 1], [], []>} : vector<2x64xf32>, vector<64x32xf32>, vector<2x32xf32> -> vector<2x32xf32>
    %119 = vector.broadcast %13 : vector<1x32xf32> to vector<2x32xf32>
    %120 = arith.addf %118, %119 : vector<2x32xf32>
    %121 = math.tanh %120 : vector<2x32xf32>
    %cst_48 = arith.constant dense<0xFF800000> : vector<2xf32>
    %122 = vector.multi_reduction <maximumf>, %121, %cst_48 [1] : vector<2x32xf32> to vector<2xf32>
    %123 = vector.shape_cast %122 : vector<2xf32> to vector<2x1xf32>
    %124 = vector.broadcast %123 : vector<2x1xf32> to vector<2x32xf32>
    %125 = arith.cmpf oeq, %121, %124 : vector<2x32xf32>
    %c32_i32_49 = arith.constant 32 : i32
    %126 = vector.broadcast %c32_i32_49 : i32 to vector<2x32xi32>
    %127 = arith.select %125, %0, %126 : vector<2x32xi1>, vector<2x32xi32>
    %cst_50 = arith.constant dense<2147483647> : vector<2xi32>
    %128 = vector.multi_reduction <minsi>, %127, %cst_50 [1] : vector<2x32xi32> to vector<2xi32>
    %129 = vector.shape_cast %128 : vector<2xi32> to vector<2x1xi32>
    %130 = vector.broadcast %129 : vector<2x1xi32> to vector<2x32xi32>
    %131 = arith.cmpi eq, %0, %130 : vector<2x32xi32>
    %132 = arith.extui %131 : vector<2x32xi1> to vector<2x32xi32>
    %133 = arith.sitofp %132 : vector<2x32xi32> to vector<2x32xf32>
    %cst_51 = arith.constant dense<0.000000e+00> : vector<2x16xf32>
    %134 = tpu.matmul %95, %5, %cst_51 {dimension_numbers = #tpu.dot_dimension_numbers<[1], [0], [0], [1], [0, 0, 1, 1], [], []>} : vector<2x32xf32>, vector<32x16xf32>, vector<2x16xf32> -> vector<2x16xf32>
    %cst_52 = arith.constant dense<0.000000e+00> : vector<2x256xf32>
    %135 = tpu.matmul %134, %9, %cst_52 {dimension_numbers = #tpu.dot_dimension_numbers<[1], [0], [0], [1], [0, 0, 1, 1], [], []>} : vector<2x16xf32>, vector<16x256xf32>, vector<2x256xf32> -> vector<2x256xf32>
    %cst_53 = arith.constant dense<0.000000e+00> : vector<2x256xf32>
    %136 = tpu.matmul %79, %10, %cst_53 {dimension_numbers = #tpu.dot_dimension_numbers<[1], [0], [0], [1], [0, 0, 1, 1], [], []>} : vector<2x64xf32>, vector<64x256xf32>, vector<2x256xf32> -> vector<2x256xf32>
    %137 = arith.addf %135, %136 : vector<2x256xf32>
    %138 = vector.broadcast %11 : vector<1x256xf32> to vector<2x256xf32>
    %139 = arith.addf %137, %138 : vector<2x256xf32>
    %140 = vector.extract_strided_slice %139 {offsets = [0, 0], sizes = [2, 192], strides = [1, 1]} : vector<2x256xf32> to vector<2x192xf32>
    %141 = arith.negf %140 : vector<2x192xf32>
    %142 = math.exp %141 : vector<2x192xf32>
    %cst_54 = arith.constant 1.000000e+00 : f32
    %143 = vector.broadcast %cst_54 : f32 to vector<2x192xf32>
    %144 = arith.addf %143, %142 : vector<2x192xf32>
    %145 = arith.divf %143, %144 : vector<2x192xf32>
    %146 = vector.extract_strided_slice %139 {offsets = [0, 192], sizes = [2, 64], strides = [1, 1]} : vector<2x256xf32> to vector<2x64xf32>
    %147 = math.tanh %146 : vector<2x64xf32>
    %148 = vector.extract_strided_slice %145 {offsets = [0, 0], sizes = [2, 64], strides = [1, 1]} : vector<2x192xf32> to vector<2x64xf32>
    %149 = vector.extract_strided_slice %145 {offsets = [0, 64], sizes = [2, 64], strides = [1, 1]} : vector<2x192xf32> to vector<2x64xf32>
    %150 = vector.extract_strided_slice %145 {offsets = [0, 128], sizes = [2, 64], strides = [1, 1]} : vector<2x192xf32> to vector<2x64xf32>
    %151 = arith.mulf %149, %77 : vector<2x64xf32>
    %152 = arith.mulf %148, %147 : vector<2x64xf32>
    %153 = arith.addf %151, %152 : vector<2x64xf32>
    %154 = math.tanh %153 : vector<2x64xf32>
    %155 = arith.mulf %150, %154 : vector<2x64xf32>
    %cst_55 = arith.constant dense<0.000000e+00> : vector<2x32xf32>
    %156 = tpu.matmul %155, %14, %cst_55 {dimension_numbers = #tpu.dot_dimension_numbers<[1], [0], [0], [1], [0, 0, 1, 1], [], []>} : vector<2x64xf32>, vector<64x32xf32>, vector<2x32xf32> -> vector<2x32xf32>
    %157 = vector.broadcast %15 : vector<1x32xf32> to vector<2x32xf32>
    %158 = arith.addf %156, %157 : vector<2x32xf32>
    %159 = math.tanh %158 : vector<2x32xf32>
    %cst_56 = arith.constant dense<0xFF800000> : vector<2xf32>
    %160 = vector.multi_reduction <maximumf>, %159, %cst_56 [1] : vector<2x32xf32> to vector<2xf32>
    %161 = vector.shape_cast %160 : vector<2xf32> to vector<2x1xf32>
    %162 = vector.broadcast %161 : vector<2x1xf32> to vector<2x32xf32>
    %163 = arith.cmpf oeq, %159, %162 : vector<2x32xf32>
    %c32_i32_57 = arith.constant 32 : i32
    %164 = vector.broadcast %c32_i32_57 : i32 to vector<2x32xi32>
    %165 = arith.select %163, %0, %164 : vector<2x32xi1>, vector<2x32xi32>
    %cst_58 = arith.constant dense<2147483647> : vector<2xi32>
    %166 = vector.multi_reduction <minsi>, %165, %cst_58 [1] : vector<2x32xi32> to vector<2xi32>
    %167 = vector.shape_cast %166 : vector<2xi32> to vector<2x1xi32>
    %168 = vector.broadcast %167 : vector<2x1xi32> to vector<2x32xi32>
    %169 = arith.cmpi eq, %0, %168 : vector<2x32xi32>
    %170 = arith.extui %169 : vector<2x32xi1> to vector<2x32xi32>
    %171 = arith.sitofp %170 : vector<2x32xi32> to vector<2x32xf32>
    %cst_59 = arith.constant dense<0.000000e+00> : vector<2x16xf32>
    %172 = tpu.matmul %133, %5, %cst_59 {dimension_numbers = #tpu.dot_dimension_numbers<[1], [0], [0], [1], [0, 0, 1, 1], [], []>} : vector<2x32xf32>, vector<32x16xf32>, vector<2x16xf32> -> vector<2x16xf32>
    %cst_60 = arith.constant dense<0.000000e+00> : vector<2x256xf32>
    %173 = tpu.matmul %172, %6, %cst_60 {dimension_numbers = #tpu.dot_dimension_numbers<[1], [0], [0], [1], [0, 0, 1, 1], [], []>} : vector<2x16xf32>, vector<16x256xf32>, vector<2x256xf32> -> vector<2x256xf32>
    %cst_61 = arith.constant dense<0.000000e+00> : vector<2x256xf32>
    %174 = tpu.matmul %117, %7, %cst_61 {dimension_numbers = #tpu.dot_dimension_numbers<[1], [0], [0], [1], [0, 0, 1, 1], [], []>} : vector<2x64xf32>, vector<64x256xf32>, vector<2x256xf32> -> vector<2x256xf32>
    %175 = arith.addf %173, %174 : vector<2x256xf32>
    %176 = vector.broadcast %8 : vector<1x256xf32> to vector<2x256xf32>
    %177 = arith.addf %175, %176 : vector<2x256xf32>
    %178 = vector.extract_strided_slice %177 {offsets = [0, 0], sizes = [2, 192], strides = [1, 1]} : vector<2x256xf32> to vector<2x192xf32>
    %179 = arith.negf %178 : vector<2x192xf32>
    %180 = math.exp %179 : vector<2x192xf32>
    %cst_62 = arith.constant 1.000000e+00 : f32
    %181 = vector.broadcast %cst_62 : f32 to vector<2x192xf32>
    %182 = arith.addf %181, %180 : vector<2x192xf32>
    %183 = arith.divf %181, %182 : vector<2x192xf32>
    %184 = vector.extract_strided_slice %177 {offsets = [0, 192], sizes = [2, 64], strides = [1, 1]} : vector<2x256xf32> to vector<2x64xf32>
    %185 = math.tanh %184 : vector<2x64xf32>
    %186 = vector.extract_strided_slice %183 {offsets = [0, 0], sizes = [2, 64], strides = [1, 1]} : vector<2x192xf32> to vector<2x64xf32>
    %187 = vector.extract_strided_slice %183 {offsets = [0, 64], sizes = [2, 64], strides = [1, 1]} : vector<2x192xf32> to vector<2x64xf32>
    %188 = vector.extract_strided_slice %183 {offsets = [0, 128], sizes = [2, 64], strides = [1, 1]} : vector<2x192xf32> to vector<2x64xf32>
    %189 = arith.mulf %187, %115 : vector<2x64xf32>
    %190 = arith.mulf %186, %185 : vector<2x64xf32>
    %191 = arith.addf %189, %190 : vector<2x64xf32>
    %192 = math.tanh %191 : vector<2x64xf32>
    %193 = arith.mulf %188, %192 : vector<2x64xf32>
    %cst_63 = arith.constant dense<0.000000e+00> : vector<2x32xf32>
    %194 = tpu.matmul %193, %12, %cst_63 {dimension_numbers = #tpu.dot_dimension_numbers<[1], [0], [0], [1], [0, 0, 1, 1], [], []>} : vector<2x64xf32>, vector<64x32xf32>, vector<2x32xf32> -> vector<2x32xf32>
    %195 = vector.broadcast %13 : vector<1x32xf32> to vector<2x32xf32>
    %196 = arith.addf %194, %195 : vector<2x32xf32>
    %197 = math.tanh %196 : vector<2x32xf32>
    %cst_64 = arith.constant dense<0xFF800000> : vector<2xf32>
    %198 = vector.multi_reduction <maximumf>, %197, %cst_64 [1] : vector<2x32xf32> to vector<2xf32>
    %199 = vector.shape_cast %198 : vector<2xf32> to vector<2x1xf32>
    %200 = vector.broadcast %199 : vector<2x1xf32> to vector<2x32xf32>
    %201 = arith.cmpf oeq, %197, %200 : vector<2x32xf32>
    %c32_i32_65 = arith.constant 32 : i32
    %202 = vector.broadcast %c32_i32_65 : i32 to vector<2x32xi32>
    %203 = arith.select %201, %0, %202 : vector<2x32xi1>, vector<2x32xi32>
    %cst_66 = arith.constant dense<2147483647> : vector<2xi32>
    %204 = vector.multi_reduction <minsi>, %203, %cst_66 [1] : vector<2x32xi32> to vector<2xi32>
    %205 = vector.shape_cast %204 : vector<2xi32> to vector<2x1xi32>
    %206 = vector.broadcast %205 : vector<2x1xi32> to vector<2x32xi32>
    %207 = arith.cmpi eq, %0, %206 : vector<2x32xi32>
    %208 = arith.extui %207 : vector<2x32xi1> to vector<2x32xi32>
    %209 = arith.sitofp %208 : vector<2x32xi32> to vector<2x32xf32>
    %cst_67 = arith.constant dense<0.000000e+00> : vector<2x16xf32>
    %210 = tpu.matmul %171, %5, %cst_67 {dimension_numbers = #tpu.dot_dimension_numbers<[1], [0], [0], [1], [0, 0, 1, 1], [], []>} : vector<2x32xf32>, vector<32x16xf32>, vector<2x16xf32> -> vector<2x16xf32>
    %cst_68 = arith.constant dense<0.000000e+00> : vector<2x256xf32>
    %211 = tpu.matmul %210, %9, %cst_68 {dimension_numbers = #tpu.dot_dimension_numbers<[1], [0], [0], [1], [0, 0, 1, 1], [], []>} : vector<2x16xf32>, vector<16x256xf32>, vector<2x256xf32> -> vector<2x256xf32>
    %cst_69 = arith.constant dense<0.000000e+00> : vector<2x256xf32>
    %212 = tpu.matmul %155, %10, %cst_69 {dimension_numbers = #tpu.dot_dimension_numbers<[1], [0], [0], [1], [0, 0, 1, 1], [], []>} : vector<2x64xf32>, vector<64x256xf32>, vector<2x256xf32> -> vector<2x256xf32>
    %213 = arith.addf %211, %212 : vector<2x256xf32>
    %214 = vector.broadcast %11 : vector<1x256xf32> to vector<2x256xf32>
    %215 = arith.addf %213, %214 : vector<2x256xf32>
    %216 = vector.extract_strided_slice %215 {offsets = [0, 0], sizes = [2, 192], strides = [1, 1]} : vector<2x256xf32> to vector<2x192xf32>
    %217 = arith.negf %216 : vector<2x192xf32>
    %218 = math.exp %217 : vector<2x192xf32>
    %cst_70 = arith.constant 1.000000e+00 : f32
    %219 = vector.broadcast %cst_70 : f32 to vector<2x192xf32>
    %220 = arith.addf %219, %218 : vector<2x192xf32>
    %221 = arith.divf %219, %220 : vector<2x192xf32>
    %222 = vector.extract_strided_slice %215 {offsets = [0, 192], sizes = [2, 64], strides = [1, 1]} : vector<2x256xf32> to vector<2x64xf32>
    %223 = math.tanh %222 : vector<2x64xf32>
    %224 = vector.extract_strided_slice %221 {offsets = [0, 0], sizes = [2, 64], strides = [1, 1]} : vector<2x192xf32> to vector<2x64xf32>
    %225 = vector.extract_strided_slice %221 {offsets = [0, 64], sizes = [2, 64], strides = [1, 1]} : vector<2x192xf32> to vector<2x64xf32>
    %226 = vector.extract_strided_slice %221 {offsets = [0, 128], sizes = [2, 64], strides = [1, 1]} : vector<2x192xf32> to vector<2x64xf32>
    %227 = arith.mulf %225, %153 : vector<2x64xf32>
    %228 = arith.mulf %224, %223 : vector<2x64xf32>
    %229 = arith.addf %227, %228 : vector<2x64xf32>
    %230 = math.tanh %229 : vector<2x64xf32>
    %231 = arith.mulf %226, %230 : vector<2x64xf32>
    %cst_71 = arith.constant dense<0.000000e+00> : vector<2x32xf32>
    %232 = tpu.matmul %231, %14, %cst_71 {dimension_numbers = #tpu.dot_dimension_numbers<[1], [0], [0], [1], [0, 0, 1, 1], [], []>} : vector<2x64xf32>, vector<64x32xf32>, vector<2x32xf32> -> vector<2x32xf32>
    %233 = vector.broadcast %15 : vector<1x32xf32> to vector<2x32xf32>
    %234 = arith.addf %232, %233 : vector<2x32xf32>
    %235 = math.tanh %234 : vector<2x32xf32>
    %cst_72 = arith.constant dense<0xFF800000> : vector<2xf32>
    %236 = vector.multi_reduction <maximumf>, %235, %cst_72 [1] : vector<2x32xf32> to vector<2xf32>
    %237 = vector.shape_cast %236 : vector<2xf32> to vector<2x1xf32>
    %238 = vector.broadcast %237 : vector<2x1xf32> to vector<2x32xf32>
    %239 = arith.cmpf oeq, %235, %238 : vector<2x32xf32>
    %c32_i32_73 = arith.constant 32 : i32
    %240 = vector.broadcast %c32_i32_73 : i32 to vector<2x32xi32>
    %241 = arith.select %239, %0, %240 : vector<2x32xi1>, vector<2x32xi32>
    %cst_74 = arith.constant dense<2147483647> : vector<2xi32>
    %242 = vector.multi_reduction <minsi>, %241, %cst_74 [1] : vector<2x32xi32> to vector<2xi32>
    %243 = vector.shape_cast %242 : vector<2xi32> to vector<2x1xi32>
    %244 = vector.broadcast %243 : vector<2x1xi32> to vector<2x32xi32>
    %245 = arith.cmpi eq, %0, %244 : vector<2x32xi32>
    %246 = arith.extui %245 : vector<2x32xi1> to vector<2x32xi32>
    %247 = arith.sitofp %246 : vector<2x32xi32> to vector<2x32xf32>
    %cst_75 = arith.constant dense<0.000000e+00> : vector<2x16xf32>
    %248 = tpu.matmul %209, %5, %cst_75 {dimension_numbers = #tpu.dot_dimension_numbers<[1], [0], [0], [1], [0, 0, 1, 1], [], []>} : vector<2x32xf32>, vector<32x16xf32>, vector<2x16xf32> -> vector<2x16xf32>
    %cst_76 = arith.constant dense<0.000000e+00> : vector<2x256xf32>
    %249 = tpu.matmul %248, %6, %cst_76 {dimension_numbers = #tpu.dot_dimension_numbers<[1], [0], [0], [1], [0, 0, 1, 1], [], []>} : vector<2x16xf32>, vector<16x256xf32>, vector<2x256xf32> -> vector<2x256xf32>
    %cst_77 = arith.constant dense<0.000000e+00> : vector<2x256xf32>
    %250 = tpu.matmul %193, %7, %cst_77 {dimension_numbers = #tpu.dot_dimension_numbers<[1], [0], [0], [1], [0, 0, 1, 1], [], []>} : vector<2x64xf32>, vector<64x256xf32>, vector<2x256xf32> -> vector<2x256xf32>
    %251 = arith.addf %249, %250 : vector<2x256xf32>
    %252 = vector.broadcast %8 : vector<1x256xf32> to vector<2x256xf32>
    %253 = arith.addf %251, %252 : vector<2x256xf32>
    %254 = vector.extract_strided_slice %253 {offsets = [0, 0], sizes = [2, 192], strides = [1, 1]} : vector<2x256xf32> to vector<2x192xf32>
    %255 = arith.negf %254 : vector<2x192xf32>
    %256 = math.exp %255 : vector<2x192xf32>
    %cst_78 = arith.constant 1.000000e+00 : f32
    %257 = vector.broadcast %cst_78 : f32 to vector<2x192xf32>
    %258 = arith.addf %257, %256 : vector<2x192xf32>
    %259 = arith.divf %257, %258 : vector<2x192xf32>
    %260 = vector.extract_strided_slice %253 {offsets = [0, 192], sizes = [2, 64], strides = [1, 1]} : vector<2x256xf32> to vector<2x64xf32>
    %261 = math.tanh %260 : vector<2x64xf32>
    %262 = vector.extract_strided_slice %259 {offsets = [0, 0], sizes = [2, 64], strides = [1, 1]} : vector<2x192xf32> to vector<2x64xf32>
    %263 = vector.extract_strided_slice %259 {offsets = [0, 64], sizes = [2, 64], strides = [1, 1]} : vector<2x192xf32> to vector<2x64xf32>
    %264 = vector.extract_strided_slice %259 {offsets = [0, 128], sizes = [2, 64], strides = [1, 1]} : vector<2x192xf32> to vector<2x64xf32>
    %265 = arith.mulf %263, %191 : vector<2x64xf32>
    %266 = arith.mulf %262, %261 : vector<2x64xf32>
    %267 = arith.addf %265, %266 : vector<2x64xf32>
    %268 = math.tanh %267 : vector<2x64xf32>
    %269 = arith.mulf %264, %268 : vector<2x64xf32>
    %cst_79 = arith.constant dense<0.000000e+00> : vector<2x32xf32>
    %270 = tpu.matmul %269, %12, %cst_79 {dimension_numbers = #tpu.dot_dimension_numbers<[1], [0], [0], [1], [0, 0, 1, 1], [], []>} : vector<2x64xf32>, vector<64x32xf32>, vector<2x32xf32> -> vector<2x32xf32>
    %271 = vector.broadcast %13 : vector<1x32xf32> to vector<2x32xf32>
    %272 = arith.addf %270, %271 : vector<2x32xf32>
    %273 = math.tanh %272 : vector<2x32xf32>
    %cst_80 = arith.constant dense<0xFF800000> : vector<2xf32>
    %274 = vector.multi_reduction <maximumf>, %273, %cst_80 [1] : vector<2x32xf32> to vector<2xf32>
    %275 = vector.shape_cast %274 : vector<2xf32> to vector<2x1xf32>
    %276 = vector.broadcast %275 : vector<2x1xf32> to vector<2x32xf32>
    %277 = arith.cmpf oeq, %273, %276 : vector<2x32xf32>
    %c32_i32_81 = arith.constant 32 : i32
    %278 = vector.broadcast %c32_i32_81 : i32 to vector<2x32xi32>
    %279 = arith.select %277, %0, %278 : vector<2x32xi1>, vector<2x32xi32>
    %cst_82 = arith.constant dense<2147483647> : vector<2xi32>
    %280 = vector.multi_reduction <minsi>, %279, %cst_82 [1] : vector<2x32xi32> to vector<2xi32>
    %281 = vector.shape_cast %280 : vector<2xi32> to vector<2x1xi32>
    %282 = vector.broadcast %281 : vector<2x1xi32> to vector<2x32xi32>
    %283 = arith.cmpi eq, %0, %282 : vector<2x32xi32>
    %284 = arith.extui %283 : vector<2x32xi1> to vector<2x32xi32>
    %285 = arith.sitofp %284 : vector<2x32xi32> to vector<2x32xf32>
    %cst_83 = arith.constant dense<0.000000e+00> : vector<2x16xf32>
    %286 = tpu.matmul %247, %5, %cst_83 {dimension_numbers = #tpu.dot_dimension_numbers<[1], [0], [0], [1], [0, 0, 1, 1], [], []>} : vector<2x32xf32>, vector<32x16xf32>, vector<2x16xf32> -> vector<2x16xf32>
    %cst_84 = arith.constant dense<0.000000e+00> : vector<2x256xf32>
    %287 = tpu.matmul %286, %9, %cst_84 {dimension_numbers = #tpu.dot_dimension_numbers<[1], [0], [0], [1], [0, 0, 1, 1], [], []>} : vector<2x16xf32>, vector<16x256xf32>, vector<2x256xf32> -> vector<2x256xf32>
    %cst_85 = arith.constant dense<0.000000e+00> : vector<2x256xf32>
    %288 = tpu.matmul %231, %10, %cst_85 {dimension_numbers = #tpu.dot_dimension_numbers<[1], [0], [0], [1], [0, 0, 1, 1], [], []>} : vector<2x64xf32>, vector<64x256xf32>, vector<2x256xf32> -> vector<2x256xf32>
    %289 = arith.addf %287, %288 : vector<2x256xf32>
    %290 = vector.broadcast %11 : vector<1x256xf32> to vector<2x256xf32>
    %291 = arith.addf %289, %290 : vector<2x256xf32>
    %292 = vector.extract_strided_slice %291 {offsets = [0, 0], sizes = [2, 192], strides = [1, 1]} : vector<2x256xf32> to vector<2x192xf32>
    %293 = arith.negf %292 : vector<2x192xf32>
    %294 = math.exp %293 : vector<2x192xf32>
    %cst_86 = arith.constant 1.000000e+00 : f32
    %295 = vector.broadcast %cst_86 : f32 to vector<2x192xf32>
    %296 = arith.addf %295, %294 : vector<2x192xf32>
    %297 = arith.divf %295, %296 : vector<2x192xf32>
    %298 = vector.extract_strided_slice %291 {offsets = [0, 192], sizes = [2, 64], strides = [1, 1]} : vector<2x256xf32> to vector<2x64xf32>
    %299 = math.tanh %298 : vector<2x64xf32>
    %300 = vector.extract_strided_slice %297 {offsets = [0, 0], sizes = [2, 64], strides = [1, 1]} : vector<2x192xf32> to vector<2x64xf32>
    %301 = vector.extract_strided_slice %297 {offsets = [0, 64], sizes = [2, 64], strides = [1, 1]} : vector<2x192xf32> to vector<2x64xf32>
    %302 = vector.extract_strided_slice %297 {offsets = [0, 128], sizes = [2, 64], strides = [1, 1]} : vector<2x192xf32> to vector<2x64xf32>
    %303 = arith.mulf %301, %229 : vector<2x64xf32>
    %304 = arith.mulf %300, %299 : vector<2x64xf32>
    %305 = arith.addf %303, %304 : vector<2x64xf32>
    %306 = math.tanh %305 : vector<2x64xf32>
    %307 = arith.mulf %302, %306 : vector<2x64xf32>
    %cst_87 = arith.constant dense<0.000000e+00> : vector<2x32xf32>
    %308 = tpu.matmul %307, %14, %cst_87 {dimension_numbers = #tpu.dot_dimension_numbers<[1], [0], [0], [1], [0, 0, 1, 1], [], []>} : vector<2x64xf32>, vector<64x32xf32>, vector<2x32xf32> -> vector<2x32xf32>
    %309 = vector.broadcast %15 : vector<1x32xf32> to vector<2x32xf32>
    %310 = arith.addf %308, %309 : vector<2x32xf32>
    %311 = math.tanh %310 : vector<2x32xf32>
    %cst_88 = arith.constant dense<0xFF800000> : vector<2xf32>
    %312 = vector.multi_reduction <maximumf>, %311, %cst_88 [1] : vector<2x32xf32> to vector<2xf32>
    %313 = vector.shape_cast %312 : vector<2xf32> to vector<2x1xf32>
    %314 = vector.broadcast %313 : vector<2x1xf32> to vector<2x32xf32>
    %315 = arith.cmpf oeq, %311, %314 : vector<2x32xf32>
    %c32_i32_89 = arith.constant 32 : i32
    %316 = vector.broadcast %c32_i32_89 : i32 to vector<2x32xi32>
    %317 = arith.select %315, %0, %316 : vector<2x32xi1>, vector<2x32xi32>
    %cst_90 = arith.constant dense<2147483647> : vector<2xi32>
    %318 = vector.multi_reduction <minsi>, %317, %cst_90 [1] : vector<2x32xi32> to vector<2xi32>
    %319 = vector.shape_cast %318 : vector<2xi32> to vector<2x1xi32>
    %320 = vector.broadcast %319 : vector<2x1xi32> to vector<2x32xi32>
    %321 = arith.cmpi eq, %0, %320 : vector<2x32xi32>
    %322 = arith.extui %321 : vector<2x32xi1> to vector<2x32xi32>
    %323 = arith.sitofp %322 : vector<2x32xi32> to vector<2x32xf32>
    %cst_91 = arith.constant dense<0.000000e+00> : vector<2x16xf32>
    %324 = tpu.matmul %285, %5, %cst_91 {dimension_numbers = #tpu.dot_dimension_numbers<[1], [0], [0], [1], [0, 0, 1, 1], [], []>} : vector<2x32xf32>, vector<32x16xf32>, vector<2x16xf32> -> vector<2x16xf32>
    %cst_92 = arith.constant dense<0.000000e+00> : vector<2x256xf32>
    %325 = tpu.matmul %324, %6, %cst_92 {dimension_numbers = #tpu.dot_dimension_numbers<[1], [0], [0], [1], [0, 0, 1, 1], [], []>} : vector<2x16xf32>, vector<16x256xf32>, vector<2x256xf32> -> vector<2x256xf32>
    %cst_93 = arith.constant dense<0.000000e+00> : vector<2x256xf32>
    %326 = tpu.matmul %269, %7, %cst_93 {dimension_numbers = #tpu.dot_dimension_numbers<[1], [0], [0], [1], [0, 0, 1, 1], [], []>} : vector<2x64xf32>, vector<64x256xf32>, vector<2x256xf32> -> vector<2x256xf32>
    %327 = arith.addf %325, %326 : vector<2x256xf32>
    %328 = vector.broadcast %8 : vector<1x256xf32> to vector<2x256xf32>
    %329 = arith.addf %327, %328 : vector<2x256xf32>
    %330 = vector.extract_strided_slice %329 {offsets = [0, 0], sizes = [2, 192], strides = [1, 1]} : vector<2x256xf32> to vector<2x192xf32>
    %331 = arith.negf %330 : vector<2x192xf32>
    %332 = math.exp %331 : vector<2x192xf32>
    %cst_94 = arith.constant 1.000000e+00 : f32
    %333 = vector.broadcast %cst_94 : f32 to vector<2x192xf32>
    %334 = arith.addf %333, %332 : vector<2x192xf32>
    %335 = arith.divf %333, %334 : vector<2x192xf32>
    %336 = vector.extract_strided_slice %329 {offsets = [0, 192], sizes = [2, 64], strides = [1, 1]} : vector<2x256xf32> to vector<2x64xf32>
    %337 = math.tanh %336 : vector<2x64xf32>
    %338 = vector.extract_strided_slice %335 {offsets = [0, 0], sizes = [2, 64], strides = [1, 1]} : vector<2x192xf32> to vector<2x64xf32>
    %339 = vector.extract_strided_slice %335 {offsets = [0, 64], sizes = [2, 64], strides = [1, 1]} : vector<2x192xf32> to vector<2x64xf32>
    %340 = vector.extract_strided_slice %335 {offsets = [0, 128], sizes = [2, 64], strides = [1, 1]} : vector<2x192xf32> to vector<2x64xf32>
    %341 = arith.mulf %339, %267 : vector<2x64xf32>
    %342 = arith.mulf %338, %337 : vector<2x64xf32>
    %343 = arith.addf %341, %342 : vector<2x64xf32>
    %344 = math.tanh %343 : vector<2x64xf32>
    %345 = arith.mulf %340, %344 : vector<2x64xf32>
    %cst_95 = arith.constant dense<0.000000e+00> : vector<2x32xf32>
    %346 = tpu.matmul %345, %12, %cst_95 {dimension_numbers = #tpu.dot_dimension_numbers<[1], [0], [0], [1], [0, 0, 1, 1], [], []>} : vector<2x64xf32>, vector<64x32xf32>, vector<2x32xf32> -> vector<2x32xf32>
    %347 = vector.broadcast %13 : vector<1x32xf32> to vector<2x32xf32>
    %348 = arith.addf %346, %347 : vector<2x32xf32>
    %349 = math.tanh %348 : vector<2x32xf32>
    %cst_96 = arith.constant dense<0xFF800000> : vector<2xf32>
    %350 = vector.multi_reduction <maximumf>, %349, %cst_96 [1] : vector<2x32xf32> to vector<2xf32>
    %351 = vector.shape_cast %350 : vector<2xf32> to vector<2x1xf32>
    %352 = vector.broadcast %351 : vector<2x1xf32> to vector<2x32xf32>
    %353 = arith.cmpf oeq, %349, %352 : vector<2x32xf32>
    %c32_i32_97 = arith.constant 32 : i32
    %354 = vector.broadcast %c32_i32_97 : i32 to vector<2x32xi32>
    %355 = arith.select %353, %0, %354 : vector<2x32xi1>, vector<2x32xi32>
    %cst_98 = arith.constant dense<2147483647> : vector<2xi32>
    %356 = vector.multi_reduction <minsi>, %355, %cst_98 [1] : vector<2x32xi32> to vector<2xi32>
    %357 = vector.shape_cast %356 : vector<2xi32> to vector<2x1xi32>
    %358 = vector.broadcast %357 : vector<2x1xi32> to vector<2x32xi32>
    %359 = arith.cmpi eq, %0, %358 : vector<2x32xi32>
    %360 = arith.extui %359 : vector<2x32xi1> to vector<2x32xi32>
    %361 = arith.sitofp %360 : vector<2x32xi32> to vector<2x32xf32>
    %cst_99 = arith.constant dense<0.000000e+00> : vector<2x16xf32>
    %362 = tpu.matmul %323, %5, %cst_99 {dimension_numbers = #tpu.dot_dimension_numbers<[1], [0], [0], [1], [0, 0, 1, 1], [], []>} : vector<2x32xf32>, vector<32x16xf32>, vector<2x16xf32> -> vector<2x16xf32>
    %cst_100 = arith.constant dense<0.000000e+00> : vector<2x256xf32>
    %363 = tpu.matmul %362, %9, %cst_100 {dimension_numbers = #tpu.dot_dimension_numbers<[1], [0], [0], [1], [0, 0, 1, 1], [], []>} : vector<2x16xf32>, vector<16x256xf32>, vector<2x256xf32> -> vector<2x256xf32>
    %cst_101 = arith.constant dense<0.000000e+00> : vector<2x256xf32>
    %364 = tpu.matmul %307, %10, %cst_101 {dimension_numbers = #tpu.dot_dimension_numbers<[1], [0], [0], [1], [0, 0, 1, 1], [], []>} : vector<2x64xf32>, vector<64x256xf32>, vector<2x256xf32> -> vector<2x256xf32>
    %365 = arith.addf %363, %364 : vector<2x256xf32>
    %366 = vector.broadcast %11 : vector<1x256xf32> to vector<2x256xf32>
    %367 = arith.addf %365, %366 : vector<2x256xf32>
    %368 = vector.extract_strided_slice %367 {offsets = [0, 0], sizes = [2, 192], strides = [1, 1]} : vector<2x256xf32> to vector<2x192xf32>
    %369 = arith.negf %368 : vector<2x192xf32>
    %370 = math.exp %369 : vector<2x192xf32>
    %cst_102 = arith.constant 1.000000e+00 : f32
    %371 = vector.broadcast %cst_102 : f32 to vector<2x192xf32>
    %372 = arith.addf %371, %370 : vector<2x192xf32>
    %373 = arith.divf %371, %372 : vector<2x192xf32>
    %374 = vector.extract_strided_slice %367 {offsets = [0, 192], sizes = [2, 64], strides = [1, 1]} : vector<2x256xf32> to vector<2x64xf32>
    %375 = math.tanh %374 : vector<2x64xf32>
    %376 = vector.extract_strided_slice %373 {offsets = [0, 0], sizes = [2, 64], strides = [1, 1]} : vector<2x192xf32> to vector<2x64xf32>
    %377 = vector.extract_strided_slice %373 {offsets = [0, 64], sizes = [2, 64], strides = [1, 1]} : vector<2x192xf32> to vector<2x64xf32>
    %378 = vector.extract_strided_slice %373 {offsets = [0, 128], sizes = [2, 64], strides = [1, 1]} : vector<2x192xf32> to vector<2x64xf32>
    %379 = arith.mulf %377, %305 : vector<2x64xf32>
    %380 = arith.mulf %376, %375 : vector<2x64xf32>
    %381 = arith.addf %379, %380 : vector<2x64xf32>
    %382 = math.tanh %381 : vector<2x64xf32>
    %383 = arith.mulf %378, %382 : vector<2x64xf32>
    %cst_103 = arith.constant dense<0.000000e+00> : vector<2x32xf32>
    %384 = tpu.matmul %383, %14, %cst_103 {dimension_numbers = #tpu.dot_dimension_numbers<[1], [0], [0], [1], [0, 0, 1, 1], [], []>} : vector<2x64xf32>, vector<64x32xf32>, vector<2x32xf32> -> vector<2x32xf32>
    %385 = vector.broadcast %15 : vector<1x32xf32> to vector<2x32xf32>
    %386 = arith.addf %384, %385 : vector<2x32xf32>
    %387 = math.tanh %386 : vector<2x32xf32>
    %cst_104 = arith.constant dense<0xFF800000> : vector<2xf32>
    %388 = vector.multi_reduction <maximumf>, %387, %cst_104 [1] : vector<2x32xf32> to vector<2xf32>
    %389 = vector.shape_cast %388 : vector<2xf32> to vector<2x1xf32>
    %390 = vector.broadcast %389 : vector<2x1xf32> to vector<2x32xf32>
    %391 = arith.cmpf oeq, %387, %390 : vector<2x32xf32>
    %c32_i32_105 = arith.constant 32 : i32
    %392 = vector.broadcast %c32_i32_105 : i32 to vector<2x32xi32>
    %393 = arith.select %391, %0, %392 : vector<2x32xi1>, vector<2x32xi32>
    %cst_106 = arith.constant dense<2147483647> : vector<2xi32>
    %394 = vector.multi_reduction <minsi>, %393, %cst_106 [1] : vector<2x32xi32> to vector<2xi32>
    %395 = vector.shape_cast %394 : vector<2xi32> to vector<2x1xi32>
    %396 = vector.broadcast %395 : vector<2x1xi32> to vector<2x32xi32>
    %397 = arith.cmpi eq, %0, %396 : vector<2x32xi32>
    %398 = arith.extui %397 : vector<2x32xi1> to vector<2x32xi32>
    %399 = arith.sitofp %398 : vector<2x32xi32> to vector<2x32xf32>
    %cst_107 = arith.constant dense<0.000000e+00> : vector<2x16xf32>
    %400 = tpu.matmul %361, %5, %cst_107 {dimension_numbers = #tpu.dot_dimension_numbers<[1], [0], [0], [1], [0, 0, 1, 1], [], []>} : vector<2x32xf32>, vector<32x16xf32>, vector<2x16xf32> -> vector<2x16xf32>
    %cst_108 = arith.constant dense<0.000000e+00> : vector<2x256xf32>
    %401 = tpu.matmul %400, %6, %cst_108 {dimension_numbers = #tpu.dot_dimension_numbers<[1], [0], [0], [1], [0, 0, 1, 1], [], []>} : vector<2x16xf32>, vector<16x256xf32>, vector<2x256xf32> -> vector<2x256xf32>
    %cst_109 = arith.constant dense<0.000000e+00> : vector<2x256xf32>
    %402 = tpu.matmul %345, %7, %cst_109 {dimension_numbers = #tpu.dot_dimension_numbers<[1], [0], [0], [1], [0, 0, 1, 1], [], []>} : vector<2x64xf32>, vector<64x256xf32>, vector<2x256xf32> -> vector<2x256xf32>
    %403 = arith.addf %401, %402 : vector<2x256xf32>
    %404 = vector.broadcast %8 : vector<1x256xf32> to vector<2x256xf32>
    %405 = arith.addf %403, %404 : vector<2x256xf32>
    %406 = vector.extract_strided_slice %405 {offsets = [0, 0], sizes = [2, 192], strides = [1, 1]} : vector<2x256xf32> to vector<2x192xf32>
    %407 = arith.negf %406 : vector<2x192xf32>
    %408 = math.exp %407 : vector<2x192xf32>
    %cst_110 = arith.constant 1.000000e+00 : f32
    %409 = vector.broadcast %cst_110 : f32 to vector<2x192xf32>
    %410 = arith.addf %409, %408 : vector<2x192xf32>
    %411 = arith.divf %409, %410 : vector<2x192xf32>
    %412 = vector.extract_strided_slice %405 {offsets = [0, 192], sizes = [2, 64], strides = [1, 1]} : vector<2x256xf32> to vector<2x64xf32>
    %413 = math.tanh %412 : vector<2x64xf32>
    %414 = vector.extract_strided_slice %411 {offsets = [0, 0], sizes = [2, 64], strides = [1, 1]} : vector<2x192xf32> to vector<2x64xf32>
    %415 = vector.extract_strided_slice %411 {offsets = [0, 64], sizes = [2, 64], strides = [1, 1]} : vector<2x192xf32> to vector<2x64xf32>
    %416 = vector.extract_strided_slice %411 {offsets = [0, 128], sizes = [2, 64], strides = [1, 1]} : vector<2x192xf32> to vector<2x64xf32>
    %417 = arith.mulf %415, %343 : vector<2x64xf32>
    %418 = arith.mulf %414, %413 : vector<2x64xf32>
    %419 = arith.addf %417, %418 : vector<2x64xf32>
    %420 = math.tanh %419 : vector<2x64xf32>
    %421 = arith.mulf %416, %420 : vector<2x64xf32>
    %cst_111 = arith.constant dense<0.000000e+00> : vector<2x32xf32>
    %422 = tpu.matmul %421, %12, %cst_111 {dimension_numbers = #tpu.dot_dimension_numbers<[1], [0], [0], [1], [0, 0, 1, 1], [], []>} : vector<2x64xf32>, vector<64x32xf32>, vector<2x32xf32> -> vector<2x32xf32>
    %423 = vector.broadcast %13 : vector<1x32xf32> to vector<2x32xf32>
    %424 = arith.addf %422, %423 : vector<2x32xf32>
    %425 = math.tanh %424 : vector<2x32xf32>
    %cst_112 = arith.constant dense<0xFF800000> : vector<2xf32>
    %426 = vector.multi_reduction <maximumf>, %425, %cst_112 [1] : vector<2x32xf32> to vector<2xf32>
    %427 = vector.shape_cast %426 : vector<2xf32> to vector<2x1xf32>
    %428 = vector.broadcast %427 : vector<2x1xf32> to vector<2x32xf32>
    %429 = arith.cmpf oeq, %425, %428 : vector<2x32xf32>
    %c32_i32_113 = arith.constant 32 : i32
    %430 = vector.broadcast %c32_i32_113 : i32 to vector<2x32xi32>
    %431 = arith.select %429, %0, %430 : vector<2x32xi1>, vector<2x32xi32>
    %cst_114 = arith.constant dense<2147483647> : vector<2xi32>
    %432 = vector.multi_reduction <minsi>, %431, %cst_114 [1] : vector<2x32xi32> to vector<2xi32>
    %433 = vector.shape_cast %432 : vector<2xi32> to vector<2x1xi32>
    %434 = vector.broadcast %433 : vector<2x1xi32> to vector<2x32xi32>
    %435 = arith.cmpi eq, %0, %434 : vector<2x32xi32>
    %436 = arith.extui %435 : vector<2x32xi1> to vector<2x32xi32>
    %437 = arith.sitofp %436 : vector<2x32xi32> to vector<2x32xf32>
    %cst_115 = arith.constant dense<0.000000e+00> : vector<2x16xf32>
    %438 = tpu.matmul %399, %5, %cst_115 {dimension_numbers = #tpu.dot_dimension_numbers<[1], [0], [0], [1], [0, 0, 1, 1], [], []>} : vector<2x32xf32>, vector<32x16xf32>, vector<2x16xf32> -> vector<2x16xf32>
    %cst_116 = arith.constant dense<0.000000e+00> : vector<2x256xf32>
    %439 = tpu.matmul %438, %9, %cst_116 {dimension_numbers = #tpu.dot_dimension_numbers<[1], [0], [0], [1], [0, 0, 1, 1], [], []>} : vector<2x16xf32>, vector<16x256xf32>, vector<2x256xf32> -> vector<2x256xf32>
    %cst_117 = arith.constant dense<0.000000e+00> : vector<2x256xf32>
    %440 = tpu.matmul %383, %10, %cst_117 {dimension_numbers = #tpu.dot_dimension_numbers<[1], [0], [0], [1], [0, 0, 1, 1], [], []>} : vector<2x64xf32>, vector<64x256xf32>, vector<2x256xf32> -> vector<2x256xf32>
    %441 = arith.addf %439, %440 : vector<2x256xf32>
    %442 = vector.broadcast %11 : vector<1x256xf32> to vector<2x256xf32>
    %443 = arith.addf %441, %442 : vector<2x256xf32>
    %444 = vector.extract_strided_slice %443 {offsets = [0, 0], sizes = [2, 192], strides = [1, 1]} : vector<2x256xf32> to vector<2x192xf32>
    %445 = arith.negf %444 : vector<2x192xf32>
    %446 = math.exp %445 : vector<2x192xf32>
    %cst_118 = arith.constant 1.000000e+00 : f32
    %447 = vector.broadcast %cst_118 : f32 to vector<2x192xf32>
    %448 = arith.addf %447, %446 : vector<2x192xf32>
    %449 = arith.divf %447, %448 : vector<2x192xf32>
    %450 = vector.extract_strided_slice %443 {offsets = [0, 192], sizes = [2, 64], strides = [1, 1]} : vector<2x256xf32> to vector<2x64xf32>
    %451 = math.tanh %450 : vector<2x64xf32>
    %452 = vector.extract_strided_slice %449 {offsets = [0, 0], sizes = [2, 64], strides = [1, 1]} : vector<2x192xf32> to vector<2x64xf32>
    %453 = vector.extract_strided_slice %449 {offsets = [0, 64], sizes = [2, 64], strides = [1, 1]} : vector<2x192xf32> to vector<2x64xf32>
    %454 = vector.extract_strided_slice %449 {offsets = [0, 128], sizes = [2, 64], strides = [1, 1]} : vector<2x192xf32> to vector<2x64xf32>
    %455 = arith.mulf %453, %381 : vector<2x64xf32>
    %456 = arith.mulf %452, %451 : vector<2x64xf32>
    %457 = arith.addf %455, %456 : vector<2x64xf32>
    %458 = math.tanh %457 : vector<2x64xf32>
    %459 = arith.mulf %454, %458 : vector<2x64xf32>
    %cst_119 = arith.constant dense<0.000000e+00> : vector<2x32xf32>
    %460 = tpu.matmul %459, %14, %cst_119 {dimension_numbers = #tpu.dot_dimension_numbers<[1], [0], [0], [1], [0, 0, 1, 1], [], []>} : vector<2x64xf32>, vector<64x32xf32>, vector<2x32xf32> -> vector<2x32xf32>
    %461 = vector.broadcast %15 : vector<1x32xf32> to vector<2x32xf32>
    %462 = arith.addf %460, %461 : vector<2x32xf32>
    %463 = math.tanh %462 : vector<2x32xf32>
    %cst_120 = arith.constant dense<0xFF800000> : vector<2xf32>
    %464 = vector.multi_reduction <maximumf>, %463, %cst_120 [1] : vector<2x32xf32> to vector<2xf32>
    %465 = vector.shape_cast %464 : vector<2xf32> to vector<2x1xf32>
    %466 = vector.broadcast %465 : vector<2x1xf32> to vector<2x32xf32>
    %467 = arith.cmpf oeq, %463, %466 : vector<2x32xf32>
    %c32_i32_121 = arith.constant 32 : i32
    %468 = vector.broadcast %c32_i32_121 : i32 to vector<2x32xi32>
    %469 = arith.select %467, %0, %468 : vector<2x32xi1>, vector<2x32xi32>
    %cst_122 = arith.constant dense<2147483647> : vector<2xi32>
    %470 = vector.multi_reduction <minsi>, %469, %cst_122 [1] : vector<2x32xi32> to vector<2xi32>
    %471 = vector.shape_cast %470 : vector<2xi32> to vector<2x1xi32>
    %472 = vector.broadcast %471 : vector<2x1xi32> to vector<2x32xi32>
    %473 = arith.cmpi eq, %0, %472 : vector<2x32xi32>
    %474 = arith.extui %473 : vector<2x32xi1> to vector<2x32xi32>
    %475 = arith.sitofp %474 : vector<2x32xi32> to vector<2x32xf32>
    %cst_123 = arith.constant dense<0.000000e+00> : vector<2x16xf32>
    %476 = tpu.matmul %437, %5, %cst_123 {dimension_numbers = #tpu.dot_dimension_numbers<[1], [0], [0], [1], [0, 0, 1, 1], [], []>} : vector<2x32xf32>, vector<32x16xf32>, vector<2x16xf32> -> vector<2x16xf32>
    %cst_124 = arith.constant dense<0.000000e+00> : vector<2x256xf32>
    %477 = tpu.matmul %476, %6, %cst_124 {dimension_numbers = #tpu.dot_dimension_numbers<[1], [0], [0], [1], [0, 0, 1, 1], [], []>} : vector<2x16xf32>, vector<16x256xf32>, vector<2x256xf32> -> vector<2x256xf32>
    %cst_125 = arith.constant dense<0.000000e+00> : vector<2x256xf32>
    %478 = tpu.matmul %421, %7, %cst_125 {dimension_numbers = #tpu.dot_dimension_numbers<[1], [0], [0], [1], [0, 0, 1, 1], [], []>} : vector<2x64xf32>, vector<64x256xf32>, vector<2x256xf32> -> vector<2x256xf32>
    %479 = arith.addf %477, %478 : vector<2x256xf32>
    %480 = vector.broadcast %8 : vector<1x256xf32> to vector<2x256xf32>
    %481 = arith.addf %479, %480 : vector<2x256xf32>
    %482 = vector.extract_strided_slice %481 {offsets = [0, 0], sizes = [2, 192], strides = [1, 1]} : vector<2x256xf32> to vector<2x192xf32>
    %483 = arith.negf %482 : vector<2x192xf32>
    %484 = math.exp %483 : vector<2x192xf32>
    %cst_126 = arith.constant 1.000000e+00 : f32
    %485 = vector.broadcast %cst_126 : f32 to vector<2x192xf32>
    %486 = arith.addf %485, %484 : vector<2x192xf32>
    %487 = arith.divf %485, %486 : vector<2x192xf32>
    %488 = vector.extract_strided_slice %481 {offsets = [0, 192], sizes = [2, 64], strides = [1, 1]} : vector<2x256xf32> to vector<2x64xf32>
    %489 = math.tanh %488 : vector<2x64xf32>
    %490 = vector.extract_strided_slice %487 {offsets = [0, 0], sizes = [2, 64], strides = [1, 1]} : vector<2x192xf32> to vector<2x64xf32>
    %491 = vector.extract_strided_slice %487 {offsets = [0, 64], sizes = [2, 64], strides = [1, 1]} : vector<2x192xf32> to vector<2x64xf32>
    %492 = vector.extract_strided_slice %487 {offsets = [0, 128], sizes = [2, 64], strides = [1, 1]} : vector<2x192xf32> to vector<2x64xf32>
    %493 = arith.mulf %491, %419 : vector<2x64xf32>
    %494 = arith.mulf %490, %489 : vector<2x64xf32>
    %495 = arith.addf %493, %494 : vector<2x64xf32>
    %496 = math.tanh %495 : vector<2x64xf32>
    %497 = arith.mulf %492, %496 : vector<2x64xf32>
    %cst_127 = arith.constant dense<0.000000e+00> : vector<2x32xf32>
    %498 = tpu.matmul %497, %12, %cst_127 {dimension_numbers = #tpu.dot_dimension_numbers<[1], [0], [0], [1], [0, 0, 1, 1], [], []>} : vector<2x64xf32>, vector<64x32xf32>, vector<2x32xf32> -> vector<2x32xf32>
    %499 = vector.broadcast %13 : vector<1x32xf32> to vector<2x32xf32>
    %500 = arith.addf %498, %499 : vector<2x32xf32>
    %501 = math.tanh %500 : vector<2x32xf32>
    %cst_128 = arith.constant dense<0xFF800000> : vector<2xf32>
    %502 = vector.multi_reduction <maximumf>, %501, %cst_128 [1] : vector<2x32xf32> to vector<2xf32>
    %503 = vector.shape_cast %502 : vector<2xf32> to vector<2x1xf32>
    %504 = vector.broadcast %503 : vector<2x1xf32> to vector<2x32xf32>
    %505 = arith.cmpf oeq, %501, %504 : vector<2x32xf32>
    %c32_i32_129 = arith.constant 32 : i32
    %506 = vector.broadcast %c32_i32_129 : i32 to vector<2x32xi32>
    %507 = arith.select %505, %0, %506 : vector<2x32xi1>, vector<2x32xi32>
    %cst_130 = arith.constant dense<2147483647> : vector<2xi32>
    %508 = vector.multi_reduction <minsi>, %507, %cst_130 [1] : vector<2x32xi32> to vector<2xi32>
    %509 = vector.shape_cast %508 : vector<2xi32> to vector<2x1xi32>
    %510 = vector.broadcast %509 : vector<2x1xi32> to vector<2x32xi32>
    %511 = arith.cmpi eq, %0, %510 : vector<2x32xi32>
    %512 = arith.extui %511 : vector<2x32xi1> to vector<2x32xi32>
    %513 = arith.sitofp %512 : vector<2x32xi32> to vector<2x32xf32>
    %cst_131 = arith.constant dense<0.000000e+00> : vector<2x16xf32>
    %514 = tpu.matmul %475, %5, %cst_131 {dimension_numbers = #tpu.dot_dimension_numbers<[1], [0], [0], [1], [0, 0, 1, 1], [], []>} : vector<2x32xf32>, vector<32x16xf32>, vector<2x16xf32> -> vector<2x16xf32>
    %cst_132 = arith.constant dense<0.000000e+00> : vector<2x256xf32>
    %515 = tpu.matmul %514, %9, %cst_132 {dimension_numbers = #tpu.dot_dimension_numbers<[1], [0], [0], [1], [0, 0, 1, 1], [], []>} : vector<2x16xf32>, vector<16x256xf32>, vector<2x256xf32> -> vector<2x256xf32>
    %cst_133 = arith.constant dense<0.000000e+00> : vector<2x256xf32>
    %516 = tpu.matmul %459, %10, %cst_133 {dimension_numbers = #tpu.dot_dimension_numbers<[1], [0], [0], [1], [0, 0, 1, 1], [], []>} : vector<2x64xf32>, vector<64x256xf32>, vector<2x256xf32> -> vector<2x256xf32>
    %517 = arith.addf %515, %516 : vector<2x256xf32>
    %518 = vector.broadcast %11 : vector<1x256xf32> to vector<2x256xf32>
    %519 = arith.addf %517, %518 : vector<2x256xf32>
    %520 = vector.extract_strided_slice %519 {offsets = [0, 0], sizes = [2, 192], strides = [1, 1]} : vector<2x256xf32> to vector<2x192xf32>
    %521 = arith.negf %520 : vector<2x192xf32>
    %522 = math.exp %521 : vector<2x192xf32>
    %cst_134 = arith.constant 1.000000e+00 : f32
    %523 = vector.broadcast %cst_134 : f32 to vector<2x192xf32>
    %524 = arith.addf %523, %522 : vector<2x192xf32>
    %525 = arith.divf %523, %524 : vector<2x192xf32>
    %526 = vector.extract_strided_slice %519 {offsets = [0, 192], sizes = [2, 64], strides = [1, 1]} : vector<2x256xf32> to vector<2x64xf32>
    %527 = math.tanh %526 : vector<2x64xf32>
    %528 = vector.extract_strided_slice %525 {offsets = [0, 0], sizes = [2, 64], strides = [1, 1]} : vector<2x192xf32> to vector<2x64xf32>
    %529 = vector.extract_strided_slice %525 {offsets = [0, 64], sizes = [2, 64], strides = [1, 1]} : vector<2x192xf32> to vector<2x64xf32>
    %530 = vector.extract_strided_slice %525 {offsets = [0, 128], sizes = [2, 64], strides = [1, 1]} : vector<2x192xf32> to vector<2x64xf32>
    %531 = arith.mulf %529, %457 : vector<2x64xf32>
    %532 = arith.mulf %528, %527 : vector<2x64xf32>
    %533 = arith.addf %531, %532 : vector<2x64xf32>
    %534 = math.tanh %533 : vector<2x64xf32>
    %535 = arith.mulf %530, %534 : vector<2x64xf32>
    %cst_135 = arith.constant dense<0.000000e+00> : vector<2x32xf32>
    %536 = tpu.matmul %535, %14, %cst_135 {dimension_numbers = #tpu.dot_dimension_numbers<[1], [0], [0], [1], [0, 0, 1, 1], [], []>} : vector<2x64xf32>, vector<64x32xf32>, vector<2x32xf32> -> vector<2x32xf32>
    %537 = vector.broadcast %15 : vector<1x32xf32> to vector<2x32xf32>
    %538 = arith.addf %536, %537 : vector<2x32xf32>
    %539 = math.tanh %538 : vector<2x32xf32>
    %cst_136 = arith.constant dense<0xFF800000> : vector<2xf32>
    %540 = vector.multi_reduction <maximumf>, %539, %cst_136 [1] : vector<2x32xf32> to vector<2xf32>
    %541 = vector.shape_cast %540 : vector<2xf32> to vector<2x1xf32>
    %542 = vector.broadcast %541 : vector<2x1xf32> to vector<2x32xf32>
    %543 = arith.cmpf oeq, %539, %542 : vector<2x32xf32>
    %c32_i32_137 = arith.constant 32 : i32
    %544 = vector.broadcast %c32_i32_137 : i32 to vector<2x32xi32>
    %545 = arith.select %543, %0, %544 : vector<2x32xi1>, vector<2x32xi32>
    %cst_138 = arith.constant dense<2147483647> : vector<2xi32>
    %546 = vector.multi_reduction <minsi>, %545, %cst_138 [1] : vector<2x32xi32> to vector<2xi32>
    %547 = vector.shape_cast %546 : vector<2xi32> to vector<2x1xi32>
    %548 = vector.broadcast %547 : vector<2x1xi32> to vector<2x32xi32>
    %549 = arith.cmpi eq, %0, %548 : vector<2x32xi32>
    %550 = arith.extui %549 : vector<2x32xi1> to vector<2x32xi32>
    %551 = arith.sitofp %550 : vector<2x32xi32> to vector<2x32xf32>
    %cst_139 = arith.constant dense<0.000000e+00> : vector<2x16xf32>
    %552 = tpu.matmul %513, %5, %cst_139 {dimension_numbers = #tpu.dot_dimension_numbers<[1], [0], [0], [1], [0, 0, 1, 1], [], []>} : vector<2x32xf32>, vector<32x16xf32>, vector<2x16xf32> -> vector<2x16xf32>
    %cst_140 = arith.constant dense<0.000000e+00> : vector<2x256xf32>
    %553 = tpu.matmul %552, %6, %cst_140 {dimension_numbers = #tpu.dot_dimension_numbers<[1], [0], [0], [1], [0, 0, 1, 1], [], []>} : vector<2x16xf32>, vector<16x256xf32>, vector<2x256xf32> -> vector<2x256xf32>
    %cst_141 = arith.constant dense<0.000000e+00> : vector<2x256xf32>
    %554 = tpu.matmul %497, %7, %cst_141 {dimension_numbers = #tpu.dot_dimension_numbers<[1], [0], [0], [1], [0, 0, 1, 1], [], []>} : vector<2x64xf32>, vector<64x256xf32>, vector<2x256xf32> -> vector<2x256xf32>
    %555 = arith.addf %553, %554 : vector<2x256xf32>
    %556 = vector.broadcast %8 : vector<1x256xf32> to vector<2x256xf32>
    %557 = arith.addf %555, %556 : vector<2x256xf32>
    %558 = vector.extract_strided_slice %557 {offsets = [0, 0], sizes = [2, 192], strides = [1, 1]} : vector<2x256xf32> to vector<2x192xf32>
    %559 = arith.negf %558 : vector<2x192xf32>
    %560 = math.exp %559 : vector<2x192xf32>
    %cst_142 = arith.constant 1.000000e+00 : f32
    %561 = vector.broadcast %cst_142 : f32 to vector<2x192xf32>
    %562 = arith.addf %561, %560 : vector<2x192xf32>
    %563 = arith.divf %561, %562 : vector<2x192xf32>
    %564 = vector.extract_strided_slice %557 {offsets = [0, 192], sizes = [2, 64], strides = [1, 1]} : vector<2x256xf32> to vector<2x64xf32>
    %565 = math.tanh %564 : vector<2x64xf32>
    %566 = vector.extract_strided_slice %563 {offsets = [0, 0], sizes = [2, 64], strides = [1, 1]} : vector<2x192xf32> to vector<2x64xf32>
    %567 = vector.extract_strided_slice %563 {offsets = [0, 64], sizes = [2, 64], strides = [1, 1]} : vector<2x192xf32> to vector<2x64xf32>
    %568 = vector.extract_strided_slice %563 {offsets = [0, 128], sizes = [2, 64], strides = [1, 1]} : vector<2x192xf32> to vector<2x64xf32>
    %569 = arith.mulf %567, %495 : vector<2x64xf32>
    %570 = arith.mulf %566, %565 : vector<2x64xf32>
    %571 = arith.addf %569, %570 : vector<2x64xf32>
    %572 = math.tanh %571 : vector<2x64xf32>
    %573 = arith.mulf %568, %572 : vector<2x64xf32>
    %cst_143 = arith.constant dense<0.000000e+00> : vector<2x32xf32>
    %574 = tpu.matmul %573, %12, %cst_143 {dimension_numbers = #tpu.dot_dimension_numbers<[1], [0], [0], [1], [0, 0, 1, 1], [], []>} : vector<2x64xf32>, vector<64x32xf32>, vector<2x32xf32> -> vector<2x32xf32>
    %575 = vector.broadcast %13 : vector<1x32xf32> to vector<2x32xf32>
    %576 = arith.addf %574, %575 : vector<2x32xf32>
    %577 = math.tanh %576 : vector<2x32xf32>
    %cst_144 = arith.constant dense<0.000000e+00> : vector<2x16xf32>
    %578 = tpu.matmul %551, %5, %cst_144 {dimension_numbers = #tpu.dot_dimension_numbers<[1], [0], [0], [1], [0, 0, 1, 1], [], []>} : vector<2x32xf32>, vector<32x16xf32>, vector<2x16xf32> -> vector<2x16xf32>
    %cst_145 = arith.constant dense<0.000000e+00> : vector<2x256xf32>
    %579 = tpu.matmul %578, %9, %cst_145 {dimension_numbers = #tpu.dot_dimension_numbers<[1], [0], [0], [1], [0, 0, 1, 1], [], []>} : vector<2x16xf32>, vector<16x256xf32>, vector<2x256xf32> -> vector<2x256xf32>
    %cst_146 = arith.constant dense<0.000000e+00> : vector<2x256xf32>
    %580 = tpu.matmul %535, %10, %cst_146 {dimension_numbers = #tpu.dot_dimension_numbers<[1], [0], [0], [1], [0, 0, 1, 1], [], []>} : vector<2x64xf32>, vector<64x256xf32>, vector<2x256xf32> -> vector<2x256xf32>
    %581 = arith.addf %579, %580 : vector<2x256xf32>
    %582 = vector.broadcast %11 : vector<1x256xf32> to vector<2x256xf32>
    %583 = arith.addf %581, %582 : vector<2x256xf32>
    %584 = vector.extract_strided_slice %583 {offsets = [0, 0], sizes = [2, 192], strides = [1, 1]} : vector<2x256xf32> to vector<2x192xf32>
    %585 = arith.negf %584 : vector<2x192xf32>
    %586 = math.exp %585 : vector<2x192xf32>
    %cst_147 = arith.constant 1.000000e+00 : f32
    %587 = vector.broadcast %cst_147 : f32 to vector<2x192xf32>
    %588 = arith.addf %587, %586 : vector<2x192xf32>
    %589 = arith.divf %587, %588 : vector<2x192xf32>
    %590 = vector.extract_strided_slice %583 {offsets = [0, 192], sizes = [2, 64], strides = [1, 1]} : vector<2x256xf32> to vector<2x64xf32>
    %591 = math.tanh %590 : vector<2x64xf32>
    %592 = vector.extract_strided_slice %589 {offsets = [0, 0], sizes = [2, 64], strides = [1, 1]} : vector<2x192xf32> to vector<2x64xf32>
    %593 = vector.extract_strided_slice %589 {offsets = [0, 64], sizes = [2, 64], strides = [1, 1]} : vector<2x192xf32> to vector<2x64xf32>
    %594 = vector.extract_strided_slice %589 {offsets = [0, 128], sizes = [2, 64], strides = [1, 1]} : vector<2x192xf32> to vector<2x64xf32>
    %595 = arith.mulf %593, %533 : vector<2x64xf32>
    %596 = arith.mulf %592, %591 : vector<2x64xf32>
    %597 = arith.addf %595, %596 : vector<2x64xf32>
    %598 = math.tanh %597 : vector<2x64xf32>
    %599 = arith.mulf %594, %598 : vector<2x64xf32>
    %cst_148 = arith.constant dense<0.000000e+00> : vector<2x32xf32>
    %600 = tpu.matmul %599, %14, %cst_148 {dimension_numbers = #tpu.dot_dimension_numbers<[1], [0], [0], [1], [0, 0, 1, 1], [], []>} : vector<2x64xf32>, vector<64x32xf32>, vector<2x32xf32> -> vector<2x32xf32>
    %601 = vector.broadcast %15 : vector<1x32xf32> to vector<2x32xf32>
    %602 = arith.addf %600, %601 : vector<2x32xf32>
    %603 = math.tanh %602 : vector<2x32xf32>
    %604 = tpu.concatenate %45, %121, %197, %273, %349, %425, %501, %577 in 1 : vector<2x32xf32>, vector<2x32xf32>, vector<2x32xf32>, vector<2x32xf32>, vector<2x32xf32>, vector<2x32xf32>, vector<2x32xf32>, vector<2x32xf32> -> vector<2x256xf32>
    %c0_149 = arith.constant 0 : index
    %c0_150 = arith.constant 0 : index
    %605 = vector.load %arg13[%c0_149, %c0_150] : memref<2x256xf32, #tpu.memory_space<vmem>>, vector<2x256xf32>
    tpu.vector_store %arg13[%c0_149, %c0_150], %604 {strides = array<i32>} : memref<2x256xf32, #tpu.memory_space<vmem>>, vector<2x256xf32>,
    %606 = tpu.concatenate %83, %159, %235, %311, %387, %463, %539, %603 in 1 : vector<2x32xf32>, vector<2x32xf32>, vector<2x32xf32>, vector<2x32xf32>, vector<2x32xf32>, vector<2x32xf32>, vector<2x32xf32>, vector<2x32xf32> -> vector<2x256xf32>
    %c0_151 = arith.constant 0 : index
    %c0_152 = arith.constant 0 : index
    %607 = vector.load %arg14[%c0_151, %c0_152] : memref<2x256xf32, #tpu.memory_space<vmem>>, vector<2x256xf32>
    tpu.vector_store %arg14[%c0_151, %c0_152], %606 {strides = array<i32>} : memref<2x256xf32, #tpu.memory_space<vmem>>, vector<2x256xf32>,
    return
  }
}

</mosaic_0001>

<bundles_post_ra>
// kernel: tpu_custom_call.1
= control target key start
LH: loop header
LB: loop body
LE: loop exit
PB: predicated region body
PF: predicated region fallthrough
CT: control target
= control target key end

     0   :  { %20 = vsyncpa [#allocation3], 0  ;;  %s6021_s0 = inlined_call_operand.vmem [shape: f32[32,16], index: 0, kind: input, shape index: {}]   ;;  %s6022_s1 = inlined_call_operand.vmem [shape: f32[16,256], index: 1, kind: input, shape index: {}]   ;;  %s6023_s2 = inlined_call_operand.vmem [shape: f32[64,256], index: 2, kind: input, shape index: {}]   ;;  %s6024_s3 = inlined_call_operand.vmem [shape: f32[1,256], index: 3, kind: input, shape index: {}]   ;;  %s6025_s4 = inlined_call_operand.vmem [shape: f32[64,32], index: 4, kind: input, shape index: {}]   ;;  %s6026_s5 = inlined_call_operand.vmem [shape: f32[1,32], index: 5, kind: input, shape index: {}]   ;;  %s6027_s6 = inlined_call_operand.hbm [shape: f32[16,256], index: 6, kind: input, shape index: {}]   ;;  %s6028_s7 = inlined_call_operand.hbm [shape: f32[64,256], index: 7, kind: input, shape index: {}]   ;;  %s6029_s8 = inlined_call_operand.vmem [shape: f32[1,256], index: 8, kind: input, shape index: {}]   ;;  %s6030_s9 = inlined_call_operand.vmem [shape: f32[64,32], index: 9, kind: input, shape index: {}]   ;;  %s6031_s10 = inlined_call_operand.vmem [shape: f32[1,32], index: 10, kind: input, shape index: {}]   ;;  %s6032_s11 = inlined_call_operand.vmem [shape: f32[2,64], index: 11, kind: input, shape index: {}]   ;;  %s6033_s12 = inlined_call_operand.vmem [shape: f32[2,64], index: 12, kind: input, shape index: {}]   ;;  %s6034_s13 = inlined_call_operand.hbm [shape: f32[2,256], index: 13, kind: output, shape index: {0}]   ;;  %s6035_s14 = inlined_call_operand.hbm [shape: f32[2,256], index: 14, kind: output, shape index: {1}]  }
   0x1   :  { %21 = vsyncpa [#allocation6], 0 }
   0x2   :  { %22 = vsyncpa [#allocation4], 0 }
   0x3   :  { %23 = vsyncpa [#allocation9], 0  ;;  %s40_s15 = sshll.u32 %s6027_s6, 4  ;;  %s4196_s16 = smov [#allocation2]   ;;  %s41_s15 = int_to_ptr.hbm [resolvable:$true] %s40_s15 }
   0x4   :  { %s42_s17 = sshll.u32 %s4196_s16, 4  ;;  %s53_s20 = sshll.u32 %s6028_s7, 4  ;;  %s43_s17 = int_to_ptr.vmem [resolvable:$true] %s42_s17  ;;  %s54_s20 = int_to_ptr.hbm [resolvable:$true] %s53_s20 }
   0x5   :  { %s4197_s21 = smov 256   ;;  %s4198_s22 = smov 16  }
   0x6   :  { %48 = dma.hbm_to_vmem [thread:$0]  %s41_s15, 512, %s43_s17, [#allocation3], %s4197_s21, %s4197_s21, %s4198_s22  }
   0x7   :  { %s4199_s23 = smov [#allocation5]  }
   0x8   :  { %s55_s24 = sshll.u32 %s4199_s23, 4  ;;  %s56_s24 = int_to_ptr.vmem [resolvable:$true] %s55_s24 }
   0x9   :  { %61 = dma.hbm_to_vmem [thread:$0]  %s54_s20, 2048, %s56_s24, [#allocation6], %s4197_s21, %s4197_s21, %s4198_s22  }
   0xa   :  { %4188 = dma.done.wait [#allocation3], 512  }
   0xb   :  { %4189 = vsyncadd [#allocation3], 4294966784 }
   0xc   :  { %4190 = dma.done.wait [#allocation6], 2048  }
   0xd   :  { %4191 = vsyncadd [#allocation6], 4294965248  ;;  %v80_v0 = vlaneseq  ;;  %v4292_v2 = vld [vmem:[%s6021_s0 + $0x18] sm:$0xff]  ;;  %v4297_v3 = vld [vmem:[%s6021_s0 + $0x10] sm:$0xff]  ;;  %v6036_v9 = vmov 0.0   ;;  %vm151_vm1 = vcmask 261120  }
   0xe   :  { %167 = vmatpush.msra.mxu1 %v4292_v2  ;;  %v4303_v4 = vld [vmem:[%s6023_s2 + $0x78] sm:$0xff]  ;;  %v4308_v5 = vld [vmem:[%s6023_s2 + $0x68] sm:$0xff]  ;;  %v4326_v8 = vld [vmem:[%s6021_s0] sm:$0xff]  ;;  %vm175_vm2 = vcmask 523264   ;;  %vm219_vm3 = vcmask 130048   ;;  %s4201_s22 = smov 64  }
   0xf   :  { %v4287_v1 = vand.u32 127, %v80_v0  ;;  %v4313_v6 = vld [vmem:[%s6021_s0 + $0x8] sm:$0xff]  ;;  %207 = vmatpush.msra.mxu2 %v4303_v4  ;;  %v4321_v7 = vld [vmem:[%s6023_s2 + $0x58] sm:$0xff]  ;;  %v4339_v12 = vld [vmem:[%s6022_s1 + $0x10] sm:$0xff]  ;;  %vm357_vm12 = vcmask 254976   ;;  %s4203_s27 = smov 96  }
  0x10   :  { %168 = vmatpush.msra.mxu1 %v4297_v3  ;;  %6113 = vst [vmem:[#allocation14_spill] sm:$0xff] %v4321_v7  ;;  %v4334_v11 = vld [vmem:[%s6023_s2 + $0x48] sm:$0xff]  ;;  %v4345_v13 = vld [vmem:[%s6023_s2 + $0x38] sm:$0xff]  ;;  %v4350_v14 = vld [vmem:[%s6023_s2 + $0x70] sm:$0xff]  ;;  %237 = vmatpush.msra.mxu3 %v4339_v12  ;;  %s3574_s29 = sshll.u32 %s6035_s14, 4  ;;  %s4205_s30 = smov [#allocation7]   ;;  %s3575_s29 = int_to_ptr.hbm [resolvable:$true] %s3574_s29 }
  0x11   :  { %vm82_vm0 = vcmp.eq.s32.totalorder %v4287_v1, 1  ;;  %208 = vmatpush.msra.mxu2 %v4308_v5  ;;  %6114 = vst [vmem:[#allocation15_spill] sm:$0xff] %v4334_v11  ;;  %v4356_v15 = vld [vmem:[%s6022_s1] sm:$0xff]  ;;  %v4362_v16 = vld [vmem:[%s6022_s1 + $0x18] sm:$0xff]  ;;  %v4374_v18 = vld [vmem:[%s6023_s2 + $0x28] sm:$0xff]  ;;  %s3561_s14 = sshll.u32 %s4205_s30, 4  ;;  %s3562_s14 = int_to_ptr.vmem [resolvable:$true] %s3561_s14 }
  0x12   :  { %169 = vmatpush.msra.mxu1 %v4313_v6  ;;  %v3590_v10 = vsel %vm82_vm0, 1.0, %v6036_v9  ;;  %6115 = vst [vmem:[#allocation16_spill] sm:$0xff] %v4345_v13  ;;  %v4369_v17 = vld [vmem:[%s6023_s2 + $0x60] sm:$0xff]  ;;  %238 = vmatpush.msra.mxu3 %v4356_v15  ;;  %v4382_v19 = vld [vmem:[%s6023_s2 + $0x50] sm:$0xff]  ;;  %v4388_v20 = vld [vmem:[%s6023_s2 + $0x18] sm:$0xff] }
  0x13   :  { %209 = vmatpush.msra.mxu2 %v4321_v7  ;;  %6116 = vst [vmem:[#allocation17_spill] sm:$0xff] %v4374_v18  ;;  %v4395_v21 = vld [vmem:[%s6023_s2 + $0x40] sm:$0xff]  ;;  %v4400_v22 = vld [vmem:[%s6023_s2 + $0x8] sm:$0xff]  ;;  %v4410_v24 = vld [vmem:[#allocation2 + $0x10] sm:$0xff] }
  0x14   :  { %170 = vmatpush.msra.mxu1 %v4326_v8  ;;  %257 = vmatpush.msrb.mxu3 %v4362_v16  ;;  %6117 = vst [vmem:[#allocation18_spill] sm:$0xff] %v4388_v20  ;;  %v4407_v23 = vld [vmem:[%s6032_s11] sm:$0x3]  ;;  %v4419_v25 = vld [vmem:[%s6023_s2 + $0x30] sm:$0xff]  ;;  %v4428_v27 = vld [vmem:[%s6022_s1 + $0x8] sm:$0xff] }
  0x15   :  { %3591 = vmatmul.msk.f32.vlgmr.msra.gmra.mxu1 %vm151_vm1, %v3590_v10  ;;  %210 = vmatpush.msra.mxu2 %v4334_v11  ;;  %6118 = vst [vmem:[#allocation19_spill] sm:$0xff] %v4400_v22  ;;  %v4421_v26 = vld [vmem:[#allocation2] sm:$0xff]  ;;  %v4440_v29 = vld [vmem:[%s6023_s2 + $0x10] sm:$0xff] }
  0x16   :  { %187 = vmatpush.msrb.mxu1 %v4350_v14  ;;  %258 = vmatpush.msrb.mxu3 %v4428_v27  ;;  %v4434_v28 = vld [vmem:[%s6023_s2 + $0x20] sm:$0xff]  ;;  %v4451_v31 = vld [vmem:[#allocation5 + $0x70] sm:$0xff] }
  0x17   :  { %211 = vmatpush.msra.mxu2 %v4345_v13  ;;  %v4446_v30 = vld [vmem:[%s6023_s2] sm:$0xff]  ;;  %6119 = vst [vmem:[#allocation20_spill] sm:$0xff] %v4451_v31  ;;  %v4462_v34 = vld [vmem:[#allocation5 + $0x50] sm:$0xff] }
  0x18   :  { %188 = vmatpush.msrb.mxu1 %v4369_v17  ;;  %v4459_v33 = vld [vmem:[#allocation5 + $0x60] sm:$0xff]  ;;  %6121 = vst [vmem:[#allocation22_spill] sm:$0xff] %v4462_v34  ;;  %v4468_v36 = vld [vmem:[#allocation5 + $0x30] sm:$0xff] }
  0x19   :  { %212 = vmatpush.msra.mxu2 %v4374_v18  ;;  %6120 = vst [vmem:[#allocation21_spill] sm:$0xff] %v4459_v33  ;;  %v4465_v35 = vld [vmem:[#allocation5 + $0x40] sm:$0xff]  ;;  %v4476_v38 = vld [vmem:[#allocation5 + $0x10] sm:$0xff] }
  0x1a   :  { %189 = vmatpush.msrb.mxu1 %v4382_v19  ;;  %6122 = vst [vmem:[#allocation23_spill] sm:$0xff] %v4465_v35  ;;  %v4473_v37 = vld [vmem:[#allocation5 + $0x20] sm:$0xff] }
  0x1b   :  { %213 = vmatpush.msra.mxu2 %v4388_v20  ;;  %6123 = vst [vmem:[#allocation24_spill] sm:$0xff] %v4468_v36  ;;  %v4479_v39 = vld [vmem:[#allocation5] sm:$0xff] }
  0x1c   :  { %190 = vmatpush.msrb.mxu1 %v4395_v21  ;;  %6124 = vst [vmem:[#allocation25_spill] sm:$0xff] %v4473_v37  ;;  %v109_v41 = vld [vmem:[%s6024_s3] sm:$0x3] }
  0x1d   :  { %214 = vmatpush.msra.mxu2 %v4400_v22  ;;  %6125 = vst [vmem:[#allocation26_spill] sm:$0xff] %v4476_v38  ;;  %v4494_v42 = vperm.slane %v109_v41, 1  ;;  %v150_v48 = vld [vmem:[%s6033_s12] sm:$0x3]  ;;  %v4505_v51 = vperm.slane %v109_v41, 0 }
  0x1e   :  { %3593 = vmatmul.msk.f32.vlgmr.msra.gmra.mxu2 %vm175_vm2, %v4407_v23  ;;  %191 = vmatpush.msrb.mxu1 %v4419_v25  ;;  %6126 = vst [vmem:[#allocation27_spill] sm:$0xff] %v4479_v39 }
  0x1f   :  { %435 = vmatpush.msrb.mxu2 %v4410_v24  ;;  %6127 = vst [vmem:[#allocation28_spill] sm:$0xff] %v4494_v42 }
  0x20   :  { %192 = vmatpush.msrb.mxu1 %v4434_v28 }
  0x21   :  { %436 = vmatpush.msrb.mxu2 %v4421_v26 }
  0x22   :  { %193 = vmatpush.msrb.mxu1 %v4440_v29 }
  0x24   :  { %194 = vmatpush.msrb.mxu1 %v4446_v30 }
  0x25   :  { %3592 = vmatmul.msk.f32.vlgmr.msrb.gmra.mxu1 %vm175_vm2, %v4407_v23 }
  0x92   :  { %v4453_v32 = vpop.f32.mrf.mxu1 }
  0x93   :  { %3594 = vmatmul.msk.f32.vlgmr.msra.gmra.mxu3 %vm219_vm3, %v4453_v32  ;;  %3602 = vmatmul.msk.f32.vlgmr.msrb.gmra.mxu2 %vm219_vm3, %v4453_v32 }
  0x94   :  { %389 = vmatpush.msra.mxu3 %v4451_v31 }
  0x96   :  { %390 = vmatpush.msra.mxu3 %v4459_v33 }
  0x98   :  { %391 = vmatpush.msra.mxu3 %v4462_v34 }
  0x9a   :  { %392 = vmatpush.msra.mxu3 %v4465_v35 }
  0x9b   :  { %3595 = vmatmul.msk.f32.vlgmr.msrb.gmra.mxu3 %vm219_vm3, %v4453_v32 }
  0x9c   :  { %393 = vmatpush.msra.mxu3 %v4468_v36 }
  0x9e   :  { %394 = vmatpush.msra.mxu3 %v4473_v37 }
  0xa0   :  { %395 = vmatpush.msra.mxu3 %v4476_v38 }
  0xa1   :  { %v216_v43 = vpop.f32.mrf.mxu2 }
  0xa2   :  { %396 = vmatpush.msra.mxu3 %v4479_v39  ;;  %v196_v49 = vpop.f32.mrf.mxu1 }
  0xa3   :  { %3600 = vmatmul.msk.f32.vlgmr.msra.gmra.mxu3 %vm175_vm2, %v4407_v23 }
  0xa4   :  { %589 = vmatpush.msrb.mxu3 %v4292_v2 }
  0xa6   :  { %590 = vmatpush.msrb.mxu3 %v4297_v3 }
  0xa8   :  { %591 = vmatpush.msrb.mxu3 %v4313_v6 }
  0xaa   :  { %592 = vmatpush.msrb.mxu3 %v4326_v8 }
  0xac   :  { %654 = vmatpush.msra.mxu3 %v4339_v12 }
  0xae   :  { %655 = vmatpush.msra.mxu3 %v4356_v15 }
 0x116   :  { %v240_v40 = vpop.f32.mrf.mxu3 }
 0x117   :  { %v241_v50 = vadd.f32 %v240_v40, %v196_v49  ;;  %v4528_v49 = vld [vmem:[#allocation5 + $0x48] sm:$0xff] }
 0x119   :  { %v268_v52 = vadd.f32 %v4505_v51, %v241_v50  ;;  %v4533_v50 = vld [vmem:[%s6025_s4 + $0x28] sm:$0xff] }
 0x11b   :  { %v3596_v53 = vmul.f32 -1.442695, %v268_v52  ;;  %v4537_v52 = vld [vmem:[#allocation5 + $0x38] sm:$0xff] }
 0x11e   :  { %v260_v44 = vpop.f32.mrf.mxu3 }
 0x11f   :  { %v261_v45 = vadd.f32 %v260_v44, %v216_v43  ;;  %v4509_v43 = vld [vmem:[#allocation5 + $0x78] sm:$0xff]  ;;  %v4511_v44 = vld [vmem:[#allocation5 + $0x68] sm:$0xff] }
 0x120   :  { %409 = vmatpush.msra.mxu1 %v4509_v43 }
 0x121   :  { %v4497_v46 = vadd.f32 %v4494_v42, %v261_v45  ;;  %v4514_v45 = vld [vmem:[#allocation5 + $0x58] sm:$0xff] }
 0x122   :  { %410 = vmatpush.msra.mxu1 %v4511_v44 }
 0x123   :  { %3744 = vtanh.f32 %v4497_v46 }
 0x124   :  { %3746 = vpow2.f32 %v3596_v53  ;;  %411 = vmatpush.msra.mxu1 %v4514_v45  ;;  %v4542_v53 = vld [vmem:[%s6025_s4 + $0x20] sm:$0xff] }
 0x126   :  { %412 = vmatpush.msra.mxu1 %v4528_v49 }
 0x128   :  { %413 = vmatpush.msra.mxu1 %v4537_v52 }
 0x129   :  { %v3745_v47 = vpop.eup %3744 }
 0x12a   :  { %315 = vrot.lane.b32.xlu0 %v3745_v47, %s4201_s22  ;;  %v3747_v54 = vpop.eup %3746  ;;  %v4519_v47 = vld [vmem:[%s6025_s4 + $0x38] sm:$0xff] }
 0x12b   :  { %v276_v55 = vadd.f32 1.0, %v3747_v54  ;;  %344 = vmatpush.msra.mxu0 %v4519_v47  ;;  %v4546_v54 = vld [vmem:[#allocation5 + $0x28] sm:$0xff] }
 0x12c   :  { %414 = vmatpush.msra.mxu1 %v4546_v54 }
 0x12d   :  { %3748 = vrcp.f32 %v276_v55  ;;  %v289_v61 = vand.u32 2147483648, %v276_v55  ;;  %vm283_vm5 = vweird.f32 %v276_v55  ;;  %v287_v62 = vand.u32 2147483647, %v276_v55 }
 0x12f   :  { %v290_v0 = vor.u32 1.1754944e-38, %v289_v61  ;;  %vm288_vm7 = vcmp.eq.f32.partialorder %v287_v62, 8.507059e+37 }
 0x132   :  { %310 = vrot.lane.b32.xlu0 %v150_v48, %s4201_s22  ;;  %v4526_v48 = vld [vmem:[%s6025_s4 + $0x30] sm:$0xff] }
 0x133   :  { %v3749_v56 = vpop.eup %3748  ;;  %345 = vmatpush.msra.mxu0 %v4526_v48 }
 0x134   :  { %v279_v57 = vmul.f32 %v3749_v56, %v276_v55  ;;  %vm284_vm4 = vweird.f32 %v3749_v56  ;;  %v4551_v55 = vld [vmem:[%s6025_s4 + $0x18] sm:$0xff] }
 0x135   :  { %vm285_vm6 = vmor %vm283_vm5, %vm284_vm4  ;;  %346 = vmatpush.msra.mxu0 %v4533_v50 }
 0x136   :  { %v280_v58 = vsub.f32 1.0, %v279_v57  ;;  %v4560_v57 = vld [vmem:[%s6025_s4 + $0x10] sm:$0xff] }
 0x137   :  { %347 = vmatpush.msra.mxu0 %v4542_v53 }
 0x138   :  { %v281_v59 = vmul.f32 %v3749_v56, %v280_v58  ;;  %v4564_v58 = vld [vmem:[#allocation5 + $0x8] sm:$0xff] }
 0x139   :  { %348 = vmatpush.msra.mxu0 %v4551_v55 }
 0x13a   :  { %v282_v60 = vadd.f32 %v3749_v56, %v281_v59  ;;  %v4569_v59 = vld [vmem:[%s6025_s4 + $0x8] sm:$0xff] }
 0x13b   :  { %349 = vmatpush.msra.mxu0 %v4560_v57 }
 0x13c   :  { %v286_v63 = vsel %vm285_vm6, %v3749_v56, %v282_v60  ;;  %v4555_v56 = vld [vmem:[#allocation5 + $0x18] sm:$0xff]  ;;  %v4576_v60 = vld [vmem:[%s6025_s4] sm:$0xff] }
 0x13d   :  { %v291_v40 = vsel %vm288_vm7, %v290_v0, %v286_v63  ;;  %415 = vmatpush.msra.mxu1 %v4555_v56  ;;  %350 = vmatpush.msra.mxu0 %v4569_v59 }
 0x13f   :  { %416 = vmatpush.msra.mxu1 %v4564_v58  ;;  %351 = vmatpush.msra.mxu0 %v4576_v60 }
 0x140   :  { %3601 = vmatmul.msk.f32.vlgmr.msra.gmra.mxu1 %vm175_vm2, %v4407_v23 }
 0x141   :  { %625 = vmatpush.msrb.mxu1 %v4303_v4 }
 0x143   :  { %626 = vmatpush.msrb.mxu1 %v4308_v5 }
 0x145   :  { %627 = vmatpush.msrb.mxu1 %v4321_v7 }
 0x147   :  { %628 = vmatpush.msrb.mxu1 %v4334_v11 }
 0x149   :  { %629 = vmatpush.msrb.mxu1 %v4345_v13 }
 0x14b   :  { %630 = vmatpush.msrb.mxu1 %v4374_v18 }
 0x14d   :  { %631 = vmatpush.msrb.mxu1 %v4388_v20 }
 0x14f   :  { %632 = vmatpush.msrb.mxu1 %v4400_v22 }
 0x151   :  { %816 = vmatpush.msra.mxu1 %v4451_v31 }
 0x153   :  { %817 = vmatpush.msra.mxu1 %v4459_v33 }
 0x155   :  { %818 = vmatpush.msra.mxu1 %v4462_v34 }
 0x157   :  { %819 = vmatpush.msra.mxu1 %v4465_v35 }
 0x159   :  { %820 = vmatpush.msra.mxu1 %v4468_v36 }
 0x15b   :  { %821 = vmatpush.msra.mxu1 %v4473_v37 }
 0x15d   :  { %822 = vmatpush.msra.mxu1 %v4476_v38 }
 0x15f   :  { %823 = vmatpush.msra.mxu1 %v4479_v39 }
 0x19c   :  { %v316_v10 = vpop.permute.xlu0 %315 }
 0x19d   :  { %v318_v41 = vmul.f32 %v316_v10, %v291_v40  ;;  %v3597_v10 = vmul.f32 -1.442695, %v4497_v46 }
 0x19f   :  { %320 = vrot.lane.b32.xlu1 %v318_v41, %s4201_s22 }
 0x1a4   :  { %v4584_v61 = vpop.permute.xlu0 %310 }
 0x1a5   :  { %v313_v62 = vmul.f32 %v4584_v61, %v291_v40 }
 0x211   :  { %v321_v63 = vpop.permute.xlu1 %320 }
 0x212   :  { %v4590_v0 = vadd.f32 %v321_v63, %v313_v62  ;;  %v4607_v62 = vld [vmem:[#allocation2 + $0x18] sm:$0xff]  ;;  %v4610_v63 = vld [vmem:[#allocation2 + $0x8] sm:$0xff] }
 0x213   :  { %455 = vmatpush.msrb.mxu0 %v4607_v62 }
 0x214   :  { %3750 = vtanh.f32 %v4590_v0 }
 0x215   :  { %3752 = vpow2.f32 %v3597_v10  ;;  %456 = vmatpush.msrb.mxu0 %v4610_v63 }
 0x21a   :  { %v3751_v23 = vpop.eup %3750 }
 0x21b   :  { %326 = vrot.lane.b32.xlu1 %v3751_v23, %s4201_s22  ;;  %v3753_v40 = vpop.eup %3752 }
 0x21c   :  { %v277_v41 = vadd.f32 1.0, %v3753_v40 }
 0x21e   :  { %3754 = vrcp.f32 %v277_v41  ;;  %v304_v39 = vand.u32 2147483648, %v277_v41  ;;  %vm298_vm9 = vweird.f32 %v277_v41  ;;  %v302_v46 = vand.u32 2147483647, %v277_v41 }
 0x220   :  { %v305_v40 = vor.u32 1.1754944e-38, %v304_v39  ;;  %vm303_vm11 = vcmp.eq.f32.partialorder %v302_v46, 8.507059e+37 }
 0x224   :  { %v3755_v23 = vpop.eup %3754 }
 0x225   :  { %v294_v9 = vmul.f32 %v3755_v23, %v277_v41  ;;  %vm299_vm8 = vweird.f32 %v3755_v23 }
 0x226   :  { %vm300_vm10 = vmor %vm298_vm9, %vm299_vm8 }
 0x227   :  { %v295_v37 = vsub.f32 1.0, %v294_v9  ;;  %v4639_v9 = vld [vmem:[%s6026_s5] ss:$0 sm:$0xff] }
 0x228   :  { %6128 = vst [vmem:[#allocation29_spill] sm:$0xff] %v4639_v9 }
 0x229   :  { %v296_v38 = vmul.f32 %v3755_v23, %v295_v37  ;;  %v130_v37 = vld [vmem:[%s6029_s8] sm:$0x3] }
 0x22a   :  { %v4649_v41 = vperm.slane %v130_v37, 1 }
 0x22b   :  { %v297_v36 = vadd.f32 %v3755_v23, %v296_v38  ;;  %v418_v38 = vpop.f32.mrf.mxu1 }
 0x22c   :  { %6130 = vst [vmem:[#allocation31_spill] sm:$0xff] %v4649_v41 }
 0x22d   :  { %v301_v10 = vsel %vm300_vm10, %v3755_v23, %v297_v36 }
 0x22e   :  { %v306_v35 = vsel %vm303_vm11, %v305_v40, %v301_v10  ;;  %v398_v10 = vpop.f32.mrf.mxu3  ;;  %v438_v40 = vpop.f32.mrf.mxu2 }
 0x28d   :  { %v327_v34 = vpop.permute.xlu1 %326 }
 0x28e   :  { %v329_v33 = vmul.f32 %v327_v34, %v306_v35 }
 0x290   :  { %3598 = vmatmul.msk.f32.vlgmr.msra.gmra.mxu0 %vm175_vm2, %v329_v33  ;;  %3610 = vmatmul.msk.f32.vlgmr.msrb.gmra.mxu1 %vm175_vm2, %v329_v33 }
 0x291   :  { %605 = vmatpush.msra.mxu0 %v4350_v14  ;;  %1011 = vmatpush.msrb.mxu1 %v4292_v2 }
 0x293   :  { %606 = vmatpush.msra.mxu0 %v4369_v17  ;;  %1012 = vmatpush.msrb.mxu1 %v4297_v3 }
 0x295   :  { %607 = vmatpush.msra.mxu0 %v4382_v19  ;;  %1013 = vmatpush.msrb.mxu1 %v4313_v6 }
 0x297   :  { %608 = vmatpush.msra.mxu0 %v4395_v21  ;;  %1014 = vmatpush.msrb.mxu1 %v4326_v8 }
 0x298   :  { %3603 = vmatmul.msk.f32.vlgmr.msrb.gmra.mxu0 %vm219_vm3, %v4453_v32 }
 0x299   :  { %609 = vmatpush.msra.mxu0 %v4419_v25 }
 0x29b   :  { %610 = vmatpush.msra.mxu0 %v4434_v28 }
 0x29d   :  { %611 = vmatpush.msra.mxu0 %v4440_v29 }
 0x29f   :  { %612 = vmatpush.msra.mxu0 %v4446_v30 }
 0x2a0   :  { %3609 = vmatmul.msk.f32.vlgmr.msra.gmra.mxu0 %vm175_vm2, %v329_v33 }
 0x2a1   :  { %800 = vmatpush.msrb.mxu0 %v4292_v2 }
 0x2a3   :  { %801 = vmatpush.msrb.mxu0 %v4297_v3 }
 0x2a5   :  { %802 = vmatpush.msrb.mxu0 %v4313_v6 }
 0x2a7   :  { %803 = vmatpush.msrb.mxu0 %v4326_v8 }
 0x2a9   :  { %865 = vmatpush.msra.mxu0 %v4410_v24 }
 0x2ab   :  { %866 = vmatpush.msra.mxu0 %v4421_v26 }
 0x30d   :  { %v353_v32 = vpop.f32.mrf.mxu0 }
 0x30e   :  { %v354_v33 = vadd.f32 %v4639_v9, %v353_v32  ;;  %v439_v32 = vadd.f32 %v438_v40, %v398_v10 }
 0x310   :  { %3756 = vtanh.f32 %v354_v33  ;;  %v4656_v33 = vperm.slane %v130_v37, 0 }
 0x312   :  { %6131 = vst [vmem:[#allocation32_spill] sm:$0xff] %v4656_v33 }
 0x315   :  { %v458_v36 = vpop.f32.mrf.mxu0 }
 0x316   :  { %v4642_v34 = vpop.eup %3756  ;;  %v459_v39 = vadd.f32 %v458_v36, %v418_v38 }
 0x317   :  { %6129 = vst [vmem:[#allocation30_spill] sm:$0xff] %v4642_v34  ;;  %v358_v35 = vsel %vm357_vm12, %v4642_v34, -inf }
 0x318   :  { %359 = vmax.xlane.f32.xlu2 %v358_v35  ;;  %v4652_v23 = vadd.f32 %v4649_v41, %v459_v39  ;;  %v466_v35 = vadd.f32 %v4656_v33, %v439_v32 }
 0x31a   :  { %3758 = vtanh.f32 %v4652_v23  ;;  %v3604_v9 = vmul.f32 -1.442695, %v466_v35  ;;  %v3605_v11 = vmul.f32 -1.442695, %v4652_v23 }
 0x31c   :  { %3760 = vpow2.f32 %v3604_v9 }
 0x320   :  { %v3759_v46 = vpop.eup %3758 }
 0x322   :  { %v3761_v36 = vpop.eup %3760 }
 0x323   :  { %v474_v38 = vadd.f32 1.0, %v3761_v36 }
 0x325   :  { %3762 = vrcp.f32 %v474_v38  ;;  %v487_v37 = vand.u32 2147483648, %v474_v38  ;;  %vm481_vm15 = vweird.f32 %v474_v38  ;;  %v485_v32 = vand.u32 2147483647, %v474_v38 }
 0x327   :  { %v488_v33 = vor.u32 1.1754944e-38, %v487_v37  ;;  %vm486_vm4 = vcmp.eq.f32.partialorder %v485_v32, 8.507059e+37 }
 0x32b   :  { %v3763_v31 = vpop.eup %3762 }
 0x32c   :  { %v477_v39 = vmul.f32 %v3763_v31, %v474_v38  ;;  %vm482_vm14 = vweird.f32 %v3763_v31  ;;  %v4695_v38 = vld [vmem:[%s6030_s9 + $0x10] sm:$0xff] }
 0x32d   :  { %vm483_vm0 = vmor %vm481_vm15, %vm482_vm14 }
 0x32e   :  { %v478_v41 = vsub.f32 1.0, %v477_v39 }
 0x330   :  { %509 = vrot.lane.b32.xlu2 %v3759_v46, %s4201_s22  ;;  %v479_v22 = vmul.f32 %v3763_v31, %v478_v41 }
 0x332   :  { %v480_v46 = vadd.f32 %v3763_v31, %v479_v22  ;;  %v4671_v22 = vld [vmem:[%s6030_s9 + $0x30] sm:$0xff] }
 0x334   :  { %v484_v35 = vsel %vm483_vm0, %v3763_v31, %v480_v46  ;;  %v4677_v31 = vld [vmem:[%s6030_s9 + $0x28] sm:$0xff] }
 0x335   :  { %v489_v41 = vsel %vm486_vm4, %v488_v33, %v484_v35  ;;  %v4689_v33 = vld [vmem:[%s6030_s9 + $0x18] sm:$0xff]  ;;  %v4701_v46 = vld [vmem:[%s6030_s9 + $0x8] sm:$0xff] }
 0x38b   :  { %v360_v20 = vpop.xlane.xlu2 %359 }
 0x38c   :  { %vm361_vm13 = vcmp.eq.f32.partialorder %v4642_v34, %v360_v20  ;;  %v4666_v20 = vld [vmem:[%s6030_s9 + $0x38] sm:$0xff] }
 0x38d   :  { %v362_v10 = vsel %vm361_vm13, %v4287_v1, 32  ;;  %538 = vmatpush.msra.mxu2 %v4666_v20 }
 0x38e   :  { %v363_v40 = vsel %vm357_vm12, %v362_v10, 2147483647 }
 0x38f   :  { %v365_v9 = vshra.s32 %v363_v40, 16  ;;  %539 = vmatpush.msra.mxu2 %v4671_v22  ;;  %v364_v10 = vand.u32 65535, %v363_v40 }
 0x391   :  { %v367_v36 = vcvt.s32.f32 %v365_v9  ;;  %540 = vmatpush.msra.mxu2 %v4677_v31  ;;  %v366_v32 = vcvt.s32.f32 %v364_v10  ;;  %v507_v9 = vmul.f32 %v489_v41, %v4584_v61  ;;  %v4714_v61 = vld [vmem:[%s6030_s9] sm:$0xff] }
 0x393   :  { %368 = vmin.xlane.f32.xlu0 %v367_v36  ;;  %v510_v39 = vpop.permute.xlu2 %509 }
 0x394   :  { %v512_v18 = vmul.f32 %v510_v39, %v489_v41 }
 0x396   :  { %514 = vrot.lane.b32.xlu1 %v512_v18, %s4201_s22  ;;  %v4683_v18 = vld [vmem:[%s6030_s9 + $0x20] sm:$0xff] }
 0x397   :  { %541 = vmatpush.msra.mxu2 %v4683_v18 }
 0x399   :  { %542 = vmatpush.msra.mxu2 %v4689_v33 }
 0x39b   :  { %543 = vmatpush.msra.mxu2 %v4695_v38 }
 0x39d   :  { %544 = vmatpush.msra.mxu2 %v4701_v46 }
 0x39f   :  { %545 = vmatpush.msra.mxu2 %v4714_v61 }
 0x3a1   :  { %674 = vmatpush.msrb.mxu2 %v4362_v16 }
 0x3a3   :  { %675 = vmatpush.msrb.mxu2 %v4428_v27 }
 0x406   :  { %v369_v37 = vpop.xlane.xlu0 %368 }
 0x407   :  { %vm370_vm5 = vcmp.eq.f32.partialorder %v367_v36, %v369_v37 }
 0x408   :  { %v515_v35 = vpop.permute.xlu1 %514  ;;  %v371_v39 = vsel %vm370_vm5, %v366_v32, inf }
 0x409   :  { %v4706_v34 = vadd.f32 %v515_v35, %v507_v9  ;;  %372 = vmin.xlane.f32.xlu1 %v371_v39 }
 0x40b   :  { %6132 = vst [vmem:[#allocation33_spill] sm:$0xff] %v4706_v34  ;;  %3764 = vtanh.f32 %v4706_v34 }
 0x40c   :  { %3766 = vpow2.f32 %v3605_v11 }
 0x411   :  { %v3765_v13 = vpop.eup %3764 }
 0x412   :  { %520 = vrot.lane.b32.xlu2 %v3765_v13, %s4201_s22  ;;  %v3767_v7 = vpop.eup %3766 }
 0x413   :  { %v475_v40 = vadd.f32 1.0, %v3767_v7 }
 0x415   :  { %3768 = vrcp.f32 %v475_v40  ;;  %v502_v11 = vand.u32 2147483648, %v475_v40  ;;  %vm496_vm7 = vweird.f32 %v475_v40  ;;  %v500_v7 = vand.u32 2147483647, %v475_v40 }
 0x417   :  { %v503_v9 = vor.u32 1.1754944e-38, %v502_v11  ;;  %vm501_vm9 = vcmp.eq.f32.partialorder %v500_v7, 8.507059e+37 }
 0x41b   :  { %v3769_v36 = vpop.eup %3768 }
 0x41c   :  { %v492_v41 = vmul.f32 %v3769_v36, %v475_v40  ;;  %vm497_vm6 = vweird.f32 %v3769_v36  ;;  %v375_v40 = vcvt.f32.s32 %v369_v37  ;;  %v4745_v37 = vld [vmem:[%s6031_s10] ss:$0 sm:$0xff] }
 0x41d   :  { %vm498_vm8 = vmor %vm496_vm7, %vm497_vm6 }
 0x41e   :  { %v493_v13 = vsub.f32 1.0, %v492_v41  ;;  %v376_v41 = vshll.u32 %v375_v40, 16  ;;  %v614_v40 = vpop.f32.mrf.mxu0 }
 0x420   :  { %v494_v10 = vmul.f32 %v3769_v36, %v493_v13 }
 0x422   :  { %v495_v23 = vadd.f32 %v3769_v36, %v494_v10 }
 0x424   :  { %v499_v32 = vsel %vm498_vm8, %v3769_v36, %v495_v23 }
 0x425   :  { %v504_v35 = vsel %vm501_vm9, %v503_v9, %v499_v32 }
 0x46c   :  { %v521_v39 = vpop.permute.xlu2 %520 }
 0x46d   :  { %v523_v34 = vmul.f32 %v521_v39, %v504_v35 }
 0x46f   :  { %3606 = vmatmul.msk.f32.vlgmr.msra.gmra.mxu2 %vm175_vm2, %v523_v34  ;;  %3618 = vmatmul.msk.f32.vlgmr.msra.gmra.mxu1 %vm175_vm2, %v523_v34 }
 0x470   :  { %836 = vmatpush.msra.mxu2 %v4509_v43  ;;  %1076 = vmatpush.msra.mxu1 %v4339_v12 }
 0x472   :  { %837 = vmatpush.msra.mxu2 %v4511_v44  ;;  %1077 = vmatpush.msra.mxu1 %v4356_v15  ;;  %v6133_v15 = vmov 0.0  }
 0x474   :  { %838 = vmatpush.msra.mxu2 %v4514_v45 }
 0x476   :  { %839 = vmatpush.msra.mxu2 %v4528_v49 }
 0x478   :  { %840 = vmatpush.msra.mxu2 %v4537_v52 }
 0x47a   :  { %841 = vmatpush.msra.mxu2 %v4546_v54 }
 0x47c   :  { %v373_v36 = vpop.xlane.xlu1 %372  ;;  %842 = vmatpush.msra.mxu2 %v4555_v56 }
 0x47d   :  { %v374_v13 = vcvt.f32.s32 %v373_v36 }
 0x47e   :  { %843 = vmatpush.msra.mxu2 %v4564_v58 }
 0x47f   :  { %v377_v12 = vadd.s32 %v376_v41, %v374_v13 }
 0x481   :  { %vm378_vm10 = vcmp.eq.s32.totalorder %v4287_v1, %v377_v12 }
 0x482   :  { %v3599_v10 = vsel %vm378_vm10, 1.0, %v6133_v15 }
 0x483   :  { %3608 = vmatmul.msk.f32.vlgmr.msrb.gmra.mxu3 %vm151_vm1, %v3599_v10 }
 0x484   :  { %749 = vmatpush.msrb.mxu3 %v4519_v47 }
 0x486   :  { %750 = vmatpush.msrb.mxu3 %v4526_v48 }
 0x488   :  { %751 = vmatpush.msrb.mxu3 %v4533_v50 }
 0x48a   :  { %752 = vmatpush.msrb.mxu3 %v4542_v53 }
 0x48c   :  { %753 = vmatpush.msrb.mxu3 %v4551_v55 }
 0x48e   :  { %754 = vmatpush.msrb.mxu3 %v4560_v57 }
 0x490   :  { %755 = vmatpush.msrb.mxu3 %v4569_v59 }
 0x492   :  { %756 = vmatpush.msrb.mxu3 %v4576_v60 }
 0x4f2   :  { %v547_v23 = vpop.f32.mrf.mxu2 }
 0x4f3   :  { %v548_v11 = vadd.f32 %v4745_v37, %v547_v23 }
 0x4f5   :  { %3770 = vtanh.f32 %v548_v11 }
 0x4fb   :  { %v4748_v7 = vpop.eup %3770 }
 0x4fc   :  { %6134 = vst [vmem:[#allocation34_spill] sm:$0xff] %v4748_v7  ;;  %v551_v32 = vsel %vm357_vm12, %v4748_v7, -inf }
 0x4fd   :  { %552 = vmax.xlane.f32.xlu2 %v551_v32 }
 0x506   :  { %v594_v9 = vpop.f32.mrf.mxu3 }
 0x507   :  { %3611 = vmatmul.msk.f32.vlgmr.msra.gmra.mxu3 %vm219_vm3, %v594_v9  ;;  %3612 = vmatmul.msk.f32.vlgmr.msrb.gmra.mxu2 %vm219_vm3, %v594_v9 }
 0x508   :  { %1027 = vmatpush.msrb.mxu2 %v4350_v14  ;;  %885 = vmatpush.msra.mxu3 %v4607_v62 }
 0x50a   :  { %1028 = vmatpush.msrb.mxu2 %v4369_v17  ;;  %886 = vmatpush.msra.mxu3 %v4610_v63 }
 0x50c   :  { %1029 = vmatpush.msrb.mxu2 %v4382_v19 }
 0x50e   :  { %1030 = vmatpush.msrb.mxu2 %v4395_v21 }
 0x50f   :  { %3619 = vmatmul.msk.f32.vlgmr.msra.gmra.mxu2 %vm175_vm2, %v523_v34 }
 0x510   :  { %1031 = vmatpush.msrb.mxu2 %v4419_v25 }
 0x512   :  { %1032 = vmatpush.msrb.mxu2 %v4434_v28  ;;  %v634_v28 = vpop.f32.mrf.mxu1 }
 0x514   :  { %1033 = vmatpush.msrb.mxu2 %v4440_v29 }
 0x516   :  { %1034 = vmatpush.msrb.mxu2 %v4446_v30 }
 0x518   :  { %1222 = vmatpush.msra.mxu2 %v4292_v2 }
 0x51a   :  { %1223 = vmatpush.msra.mxu2 %v4297_v3 }
 0x51c   :  { %1224 = vmatpush.msra.mxu2 %v4313_v6 }
 0x51e   :  { %1225 = vmatpush.msra.mxu2 %v4326_v8 }
 0x570   :  { %v553_v14 = vpop.xlane.xlu2 %552 }
 0x571   :  { %vm554_vm11 = vcmp.eq.f32.partialorder %v4748_v7, %v553_v14 }
 0x572   :  { %v555_v17 = vsel %vm554_vm11, %v4287_v1, 32 }
 0x573   :  { %v556_v19 = vsel %vm357_vm12, %v555_v17, 2147483647 }
 0x574   :  { %v558_v21 = vshra.s32 %v556_v19, 16  ;;  %v557_v10 = vand.u32 65535, %v556_v19 }
 0x576   :  { %v560_v25 = vcvt.s32.f32 %v558_v21  ;;  %v559_v32 = vcvt.s32.f32 %v557_v10 }
 0x578   :  { %561 = vmin.xlane.f32.xlu0 %v560_v25 }
 0x58a   :  { %v677_v29 = vpop.f32.mrf.mxu2  ;;  %v657_v39 = vpop.f32.mrf.mxu3 }
 0x58b   :  { %v678_v30 = vadd.f32 %v677_v29, %v634_v28  ;;  %v658_v36 = vadd.f32 %v657_v39, %v614_v40 }
 0x58d   :  { %v681_v34 = vadd.f32 %v678_v30, %v4494_v42  ;;  %v680_v41 = vadd.f32 %v658_v36, %v4505_v51 }
 0x58f   :  { %3772 = vtanh.f32 %v681_v34  ;;  %v3613_v13 = vmul.f32 -1.442695, %v680_v41 }
 0x591   :  { %3774 = vpow2.f32 %v3613_v13 }
 0x595   :  { %v3773_v35 = vpop.eup %3772 }
 0x596   :  { %723 = vrot.lane.b32.xlu1 %v3773_v35, %s4201_s22 }
 0x597   :  { %v3775_v12 = vpop.eup %3774 }
 0x598   :  { %v688_v23 = vadd.f32 1.0, %v3775_v12 }
 0x59a   :  { %3776 = vrcp.f32 %v688_v23  ;;  %v701_v30 = vand.u32 2147483648, %v688_v23  ;;  %vm695_vm15 = vweird.f32 %v688_v23  ;;  %v699_v35 = vand.u32 2147483647, %v688_v23 }
 0x59c   :  { %v702_v40 = vor.u32 1.1754944e-38, %v701_v30  ;;  %vm700_vm4 = vcmp.eq.f32.partialorder %v699_v35, 8.507059e+37 }
 0x5a0   :  { %v3777_v14 = vpop.eup %3776 }
 0x5a1   :  { %v691_v17 = vmul.f32 %v3777_v14, %v688_v23  ;;  %vm696_vm14 = vweird.f32 %v3777_v14 }
 0x5a2   :  { %vm697_vm0 = vmor %vm695_vm15, %vm696_vm14 }
 0x5a3   :  { %v692_v21 = vsub.f32 1.0, %v691_v17 }
 0x5a5   :  { %v693_v28 = vmul.f32 %v3777_v14, %v692_v21  ;;  %v3614_v21 = vmul.f32 -1.442695, %v681_v34 }
 0x5a7   :  { %v694_v29 = vadd.f32 %v3777_v14, %v693_v28 }
 0x5a9   :  { %v698_v39 = vsel %vm697_vm0, %v3777_v14, %v694_v29 }
 0x5aa   :  { %v703_v36 = vsel %vm700_vm4, %v702_v40, %v698_v39 }
 0x5ab   :  { %v721_v23 = vmul.f32 %v703_v36, %v4590_v0 }
 0x5eb   :  { %v562_v11 = vpop.xlane.xlu0 %561 }
 0x5ec   :  { %vm563_vm13 = vcmp.eq.f32.partialorder %v560_v25, %v562_v11  ;;  %v568_v25 = vcvt.f32.s32 %v562_v11 }
 0x5ed   :  { %v564_v9 = vsel %vm563_vm13, %v559_v32, inf }
 0x5ee   :  { %565 = vmin.xlane.f32.xlu0 %v564_v9  ;;  %v569_v12 = vshll.u32 %v568_v25, 16 }
 0x608   :  { %v724_v19 = vpop.permute.xlu1 %723 }
 0x609   :  { %v726_v41 = vmul.f32 %v724_v19, %v703_v36 }
 0x60b   :  { %728 = vrot.lane.b32.xlu0 %v726_v41, %s4201_s22 }
 0x661   :  { %v566_v13 = vpop.xlane.xlu0 %565 }
 0x662   :  { %v567_v10 = vcvt.f32.s32 %v566_v13 }
 0x664   :  { %v570_v32 = vadd.s32 %v569_v12, %v567_v10 }
 0x666   :  { %vm571_vm5 = vcmp.eq.s32.totalorder %v4287_v1, %v570_v32  ;;  %v6135_v32 = vld [vmem:[#allocation14_spill] sm:$0xff] }
 0x667   :  { %v3607_v9 = vsel %vm571_vm5, 1.0, %v6133_v15 }
 0x668   :  { %3617 = vmatmul.msk.f32.vlgmr.msrb.gmra.mxu0 %vm151_vm1, %v3607_v9  ;;  %v6136_v9 = vld [vmem:[#allocation15_spill] sm:$0xff] }
 0x669   :  { %960 = vmatpush.msrb.mxu0 %v4666_v20 }
 0x66b   :  { %961 = vmatpush.msrb.mxu0 %v4671_v22 }
 0x66d   :  { %962 = vmatpush.msrb.mxu0 %v4677_v31 }
 0x66f   :  { %963 = vmatpush.msrb.mxu0 %v4683_v18 }
 0x671   :  { %964 = vmatpush.msrb.mxu0 %v4689_v33 }
 0x673   :  { %965 = vmatpush.msrb.mxu0 %v4695_v38 }
 0x675   :  { %966 = vmatpush.msrb.mxu0 %v4701_v46 }
 0x677   :  { %967 = vmatpush.msrb.mxu0 %v4714_v61 }
 0x67d   :  { %v729_v11 = vpop.permute.xlu0 %728 }
 0x67e   :  { %v4788_v14 = vadd.f32 %v729_v11, %v721_v23  ;;  %v6137_v23 = vld [vmem:[#allocation16_spill] sm:$0xff]  ;;  %v6140_v11 = vld [vmem:[#allocation19_spill] sm:$0xff] }
 0x680   :  { %3778 = vtanh.f32 %v4788_v14 }
 0x681   :  { %3780 = vpow2.f32 %v3614_v21  ;;  %v6146_v21 = vld [vmem:[#allocation25_spill] sm:$0xff] }
 0x686   :  { %v3779_v17 = vpop.eup %3778 }
 0x687   :  { %734 = vrot.lane.b32.xlu2 %v3779_v17, %s4201_s22  ;;  %v3781_v28 = vpop.eup %3780  ;;  %v6145_v17 = vld [vmem:[#allocation24_spill] sm:$0xff] }
 0x688   :  { %v689_v29 = vadd.f32 1.0, %v3781_v28  ;;  %v6147_v28 = vld [vmem:[#allocation26_spill] sm:$0xff] }
 0x68a   :  { %3782 = vrcp.f32 %v689_v29  ;;  %v716_v0 = vand.u32 2147483648, %v689_v29  ;;  %vm710_vm7 = vweird.f32 %v689_v29  ;;  %v714_v36 = vand.u32 2147483647, %v689_v29 }
 0x68c   :  { %v717_v25 = vor.u32 1.1754944e-38, %v716_v0  ;;  %vm715_vm9 = vcmp.eq.f32.partialorder %v714_v36, 8.507059e+37 }
 0x690   :  { %v3783_v30 = vpop.eup %3782 }
 0x691   :  { %v706_v35 = vmul.f32 %v3783_v30, %v689_v29  ;;  %vm711_vm6 = vweird.f32 %v3783_v30  ;;  %v6148_v29 = vld [vmem:[#allocation27_spill] sm:$0xff] }
 0x692   :  { %vm712_vm8 = vmor %vm710_vm7, %vm711_vm6 }
 0x693   :  { %v707_v39 = vsub.f32 1.0, %v706_v35  ;;  %v6149_v35 = vld [vmem:[#allocation29_spill] sm:$0xff] }
 0x695   :  { %v708_v40 = vmul.f32 %v3783_v30, %v707_v39 }
 0x697   :  { %v709_v19 = vadd.f32 %v3783_v30, %v708_v40  ;;  %v845_v40 = vpop.f32.mrf.mxu2 }
 0x699   :  { %v713_v41 = vsel %vm712_vm8, %v3783_v30, %v709_v19 }
 0x69a   :  { %v718_v13 = vsel %vm715_vm9, %v717_v25, %v713_v41  ;;  %v6151_v41 = vld [vmem:[#allocation31_spill] sm:$0xff] }
 0x6e1   :  { %v735_v12 = vpop.permute.xlu2 %734 }
 0x6e2   :  { %v737_v34 = vmul.f32 %v735_v12, %v718_v13  ;;  %v6152_v12 = vld [vmem:[#allocation32_spill] sm:$0xff] }
 0x6e4   :  { %3615 = vmatmul.msk.f32.vlgmr.msrb.gmra.mxu3 %vm175_vm2, %v737_v34  ;;  %3627 = vmatmul.msk.f32.vlgmr.msrb.gmra.mxu2 %vm175_vm2, %v737_v34 }
 0x6e5   :  { %v805_v10 = vpop.f32.mrf.mxu0  ;;  %1047 = vmatpush.msrb.mxu3 %v4303_v4  ;;  %1287 = vmatpush.msrb.mxu2 %v4410_v24  ;;  %v6138_v4 = vld [vmem:[#allocation17_spill] sm:$0xff]  ;;  %v6139_v24 = vld [vmem:[#allocation18_spill] sm:$0xff] }
 0x6e6   :  { %3620 = vmatmul.msk.f32.vlgmr.msra.gmra.mxu0 %vm219_vm3, %v805_v10 }
 0x6e7   :  { %1048 = vmatpush.msrb.mxu3 %v4308_v5  ;;  %1096 = vmatpush.msra.mxu0 %v4362_v16  ;;  %v6141_v5 = vld [vmem:[#allocation20_spill] sm:$0xff]  ;;  %v6142_v16 = vld [vmem:[#allocation21_spill] sm:$0xff] }
 0x6e8   :  { %1288 = vmatpush.msrb.mxu2 %v4421_v26  ;;  %v6143_v26 = vld [vmem:[#allocation22_spill] sm:$0xff] }
 0x6e9   :  { %1049 = vmatpush.msrb.mxu3 %v6135_v32  ;;  %1097 = vmatpush.msra.mxu0 %v4428_v27  ;;  %v6144_v27 = vld [vmem:[#allocation23_spill] sm:$0xff] }
 0x6eb   :  { %1050 = vmatpush.msrb.mxu3 %v6136_v9 }
 0x6ec   :  { %3621 = vmatmul.msk.f32.vlgmr.msra.gmra.mxu3 %vm219_vm3, %v805_v10 }
 0x6ed   :  { %1051 = vmatpush.msrb.mxu3 %v6137_v23 }
 0x6ef   :  { %1052 = vmatpush.msrb.mxu3 %v6138_v4 }
 0x6f1   :  { %1053 = vmatpush.msrb.mxu3 %v6139_v24 }
 0x6f3   :  { %1054 = vmatpush.msrb.mxu3 %v6140_v11 }
 0x6f4   :  { %3628 = vmatmul.msk.f32.vlgmr.msrb.gmra.mxu3 %vm175_vm2, %v737_v34 }
 0x6f5   :  { %1238 = vmatpush.msra.mxu3 %v6141_v5 }
 0x6f7   :  { %1239 = vmatpush.msra.mxu3 %v6142_v16 }
 0x6f9   :  { %1240 = vmatpush.msra.mxu3 %v6143_v26 }
 0x6fb   :  { %1241 = vmatpush.msra.mxu3 %v6144_v27 }
 0x6fd   :  { %1242 = vmatpush.msra.mxu3 %v6145_v17 }
 0x6ff   :  { %1243 = vmatpush.msra.mxu3 %v6146_v21 }
 0x701   :  { %1244 = vmatpush.msra.mxu3 %v6147_v28 }
 0x703   :  { %1245 = vmatpush.msra.mxu3 %v6148_v29 }
 0x705   :  { %1433 = vmatpush.msrb.mxu3 %v4292_v2 }
 0x707   :  { %1434 = vmatpush.msrb.mxu3 %v4297_v3 }
 0x709   :  { %1435 = vmatpush.msrb.mxu3 %v4313_v6 }
 0x70b   :  { %1436 = vmatpush.msrb.mxu3 %v4326_v8  ;;  %v825_v8 = vpop.f32.mrf.mxu1 }
 0x763   :  { %v868_v6 = vpop.f32.mrf.mxu0 }
 0x764   :  { %v869_v13 = vadd.f32 %v868_v6, %v825_v8 }
 0x766   :  { %v891_v34 = vadd.f32 %v869_v13, %v6152_v12 }
 0x767   :  { %v758_v30 = vpop.f32.mrf.mxu3 }
 0x768   :  { %v759_v39 = vadd.f32 %v6149_v35, %v758_v30  ;;  %v3622_v10 = vmul.f32 -1.442695, %v891_v34 }
 0x76a   :  { %3784 = vtanh.f32 %v759_v39 }
 0x76f   :  { %v888_v19 = vpop.f32.mrf.mxu3 }
 0x770   :  { %v889_v0 = vadd.f32 %v888_v19, %v845_v40  ;;  %v4822_v36 = vpop.eup %3784 }
 0x771   :  { %6150 = vst [vmem:[#allocation14_spill] sm:$0xff] %v4822_v36  ;;  %v762_v2 = vsel %vm357_vm12, %v4822_v36, -inf }
 0x772   :  { %v892_v25 = vadd.f32 %v889_v0, %v6151_v41  ;;  %763 = vmax.xlane.f32.xlu1 %v762_v2  ;;  %v6153_v0 = vld [vmem:[#allocation33_spill] sm:$0xff] }
 0x774   :  { %3786 = vtanh.f32 %v892_v25 }
 0x775   :  { %3788 = vpow2.f32 %v3622_v10 }
 0x77a   :  { %v3787_v3 = vpop.eup %3786 }
 0x77b   :  { %934 = vrot.lane.b32.xlu0 %v3787_v3, %s4201_s22  ;;  %v3789_v32 = vpop.eup %3788 }
 0x77c   :  { %v899_v9 = vadd.f32 1.0, %v3789_v32 }
 0x77e   :  { %3790 = vrcp.f32 %v899_v9  ;;  %v912_v26 = vand.u32 2147483648, %v899_v9  ;;  %vm906_vm13 = vweird.f32 %v899_v9  ;;  %v910_v17 = vand.u32 2147483647, %v899_v9 }
 0x780   :  { %v913_v30 = vor.u32 1.1754944e-38, %v912_v26  ;;  %vm911_vm15 = vcmp.eq.f32.partialorder %v910_v17, 8.507059e+37 }
 0x784   :  { %v3791_v23 = vpop.eup %3790 }
 0x785   :  { %v902_v4 = vmul.f32 %v3791_v23, %v899_v9  ;;  %vm907_vm10 = vweird.f32 %v3791_v23  ;;  %v3623_v9 = vmul.f32 -1.442695, %v892_v25 }
 0x786   :  { %vm908_vm14 = vmor %vm906_vm13, %vm907_vm10 }
 0x787   :  { %v903_v24 = vsub.f32 1.0, %v902_v4 }
 0x789   :  { %v904_v11 = vmul.f32 %v3791_v23, %v903_v24 }
 0x78b   :  { %v905_v16 = vadd.f32 %v3791_v23, %v904_v11 }
 0x78d   :  { %v909_v28 = vsel %vm908_vm14, %v3791_v23, %v905_v16 }
 0x78e   :  { %v914_v39 = vsel %vm911_vm15, %v913_v30, %v909_v28 }
 0x78f   :  { %v932_v2 = vmul.f32 %v914_v39, %v6153_v0 }
 0x7e5   :  { %v764_v5 = vpop.xlane.xlu1 %763 }
 0x7e6   :  { %vm765_vm11 = vcmp.eq.f32.partialorder %v4822_v36, %v764_v5 }
 0x7e7   :  { %v766_v27 = vsel %vm765_vm11, %v4287_v1, 32 }
 0x7e8   :  { %v767_v21 = vsel %vm357_vm12, %v766_v27, 2147483647 }
 0x7e9   :  { %v769_v29 = vshra.s32 %v767_v21, 16  ;;  %v768_v13 = vand.u32 65535, %v767_v21 }
 0x7eb   :  { %v771_v35 = vcvt.s32.f32 %v769_v29  ;;  %v770_v10 = vcvt.s32.f32 %v768_v13 }
 0x7ed   :  { %v935_v40 = vpop.permute.xlu0 %934  ;;  %772 = vmin.xlane.f32.xlu0 %v771_v35 }
 0x7ee   :  { %v937_v19 = vmul.f32 %v935_v40, %v914_v39  ;;  %v4851_v39 = vld [vmem:[%s6022_s1] sm:$0xff] }
 0x7f0   :  { %939 = vrot.lane.b32.xlu2 %v937_v19, %s4201_s22 }
 0x84a   :  { %v940_v3 = vpop.permute.xlu2 %939 }
 0x84b   :  { %v4834_v6 = vadd.f32 %v940_v3, %v932_v2 }
 0x84d   :  { %3792 = vtanh.f32 %v4834_v6 }
 0x84e   :  { %3794 = vpow2.f32 %v3623_v9 }
 0x853   :  { %v3793_v8 = vpop.eup %3792 }
 0x854   :  { %945 = vrot.lane.b32.xlu1 %v3793_v8, %s4201_s22  ;;  %v3795_v23 = vpop.eup %3794 }
 0x855   :  { %v900_v4 = vadd.f32 1.0, %v3795_v23 }
 0x857   :  { %3796 = vrcp.f32 %v900_v4  ;;  %v927_v27 = vand.u32 2147483648, %v900_v4  ;;  %vm921_vm5 = vweird.f32 %v900_v4  ;;  %v925_v17 = vand.u32 2147483647, %v900_v4 }
 0x859   :  { %v928_v28 = vor.u32 1.1754944e-38, %v927_v27  ;;  %vm926_vm7 = vcmp.eq.f32.partialorder %v925_v17, 8.507059e+37 }
 0x85d   :  { %v3797_v24 = vpop.eup %3796 }
 0x85e   :  { %v917_v11 = vmul.f32 %v3797_v24, %v900_v4  ;;  %vm922_vm4 = vweird.f32 %v3797_v24 }
 0x85f   :  { %vm923_vm6 = vmor %vm921_vm5, %vm922_vm4 }
 0x860   :  { %v773_v34 = vpop.xlane.xlu0 %772  ;;  %v918_v5 = vsub.f32 1.0, %v917_v11 }
 0x861   :  { %vm774_vm0 = vcmp.eq.f32.partialorder %v771_v35, %v773_v34  ;;  %v4844_v35 = vld [vmem:[%s6022_s1 + $0x10] sm:$0xff] }
 0x862   :  { %v775_v32 = vsel %vm774_vm0, %v770_v10, inf  ;;  %v919_v16 = vmul.f32 %v3797_v24, %v918_v5  ;;  %v1036_v5 = vpop.f32.mrf.mxu2 }
 0x863   :  { %776 = vmin.xlane.f32.xlu2 %v775_v32  ;;  %v1056_v32 = vpop.f32.mrf.mxu3 }
 0x864   :  { %v920_v26 = vadd.f32 %v3797_v24, %v919_v16 }
 0x866   :  { %v924_v21 = vsel %vm923_vm6, %v3797_v24, %v920_v26 }
 0x867   :  { %v929_v29 = vsel %vm926_vm7, %v928_v28, %v924_v21 }
 0x8c6   :  { %v946_v30 = vpop.permute.xlu1 %945 }
 0x8c7   :  { %v948_v25 = vmul.f32 %v946_v30, %v929_v29 }
 0x8c9   :  { %3624 = vmatmul.msk.f32.vlgmr.msrb.gmra.mxu0 %vm175_vm2, %v948_v25  ;;  %3636 = vmatmul.msk.f32.vlgmr.msra.gmra.mxu3 %vm175_vm2, %v948_v25 }
 0x8ca   :  { %1258 = vmatpush.msrb.mxu0 %v4509_v43  ;;  %1498 = vmatpush.msra.mxu3 %v4844_v35  ;;  %v779_v43 = vcvt.f32.s32 %v773_v34 }
 0x8cc   :  { %1259 = vmatpush.msrb.mxu0 %v4511_v44  ;;  %1499 = vmatpush.msra.mxu3 %v4851_v39  ;;  %v780_v44 = vshll.u32 %v779_v43, 16 }
 0x8ce   :  { %1260 = vmatpush.msrb.mxu0 %v4514_v45 }
 0x8d0   :  { %1261 = vmatpush.msrb.mxu0 %v4528_v49 }
 0x8d2   :  { %1262 = vmatpush.msrb.mxu0 %v4537_v52 }
 0x8d4   :  { %1263 = vmatpush.msrb.mxu0 %v4546_v54  ;;  %v4895_v54 = vld [vmem:[%s6023_s2 + $0x50] sm:$0xff] }
 0x8d5   :  { %6157 = vst [vmem:[#allocation18_spill] sm:$0xff] %v4895_v54 }
 0x8d6   :  { %1264 = vmatpush.msrb.mxu0 %v4555_v56  ;;  %v777_v40 = vpop.xlane.xlu2 %776  ;;  %v4908_v56 = vld [vmem:[%s6023_s2 + $0x30] sm:$0xff] }
 0x8d7   :  { %v778_v19 = vcvt.f32.s32 %v777_v40  ;;  %6159 = vst [vmem:[#allocation20_spill] sm:$0xff] %v4908_v56 }
 0x8d8   :  { %1265 = vmatpush.msrb.mxu0 %v4564_v58  ;;  %v4920_v58 = vld [vmem:[%s6023_s2 + $0x10] sm:$0xff] }
 0x8d9   :  { %v781_v0 = vadd.s32 %v780_v44, %v778_v19  ;;  %6161 = vst [vmem:[#allocation22_spill] sm:$0xff] %v4920_v58 }
 0x8db   :  { %vm782_vm8 = vcmp.eq.s32.totalorder %v4287_v1, %v781_v0 }
 0x8dc   :  { %v3616_v2 = vsel %vm782_vm8, 1.0, %v6133_v15 }
 0x8dd   :  { %3626 = vmatmul.msk.f32.vlgmr.msrb.gmra.mxu1 %vm151_vm1, %v3616_v2 }
 0x8de   :  { %1171 = vmatpush.msrb.mxu1 %v4519_v47 }
 0x8e0   :  { %1172 = vmatpush.msrb.mxu1 %v4526_v48 }
 0x8e2   :  { %1173 = vmatpush.msrb.mxu1 %v4533_v50  ;;  %v4881_v50 = vld [vmem:[%s6023_s2 + $0x70] sm:$0xff] }
 0x8e3   :  { %6155 = vst [vmem:[#allocation16_spill] sm:$0xff] %v4881_v50 }
 0x8e4   :  { %1174 = vmatpush.msrb.mxu1 %v4542_v53  ;;  %v4888_v53 = vld [vmem:[%s6023_s2 + $0x60] sm:$0xff] }
 0x8e5   :  { %6156 = vst [vmem:[#allocation17_spill] sm:$0xff] %v4888_v53 }
 0x8e6   :  { %1175 = vmatpush.msrb.mxu1 %v4551_v55  ;;  %v4901_v55 = vld [vmem:[%s6023_s2 + $0x40] sm:$0xff] }
 0x8e7   :  { %6158 = vst [vmem:[#allocation19_spill] sm:$0xff] %v4901_v55 }
 0x8e8   :  { %1176 = vmatpush.msrb.mxu1 %v4560_v57  ;;  %v4914_v57 = vld [vmem:[%s6023_s2 + $0x20] sm:$0xff] }
 0x8e9   :  { %6160 = vst [vmem:[#allocation21_spill] sm:$0xff] %v4914_v57 }
 0x8ea   :  { %1177 = vmatpush.msrb.mxu1 %v4569_v59  ;;  %v4926_v59 = vld [vmem:[%s6023_s2] sm:$0xff] }
 0x8eb   :  { %6162 = vst [vmem:[#allocation23_spill] sm:$0xff] %v4926_v59 }
 0x8ec   :  { %1178 = vmatpush.msrb.mxu1 %v4576_v60  ;;  %v4932_v60 = vld [vmem:[%s6021_s0 + $0x18] sm:$0xff] }
 0x946   :  { %v969_v45 = vpop.f32.mrf.mxu0 }
 0x947   :  { %v970_v49 = vadd.f32 %v4745_v37, %v969_v45  ;;  %v4950_v37 = vld [vmem:[%s6021_s0] sm:$0xff] }
 0x949   :  { %3798 = vtanh.f32 %v970_v49 }
 0x94f   :  { %v4872_v52 = vpop.eup %3798 }
 0x950   :  { %6154 = vst [vmem:[#allocation15_spill] sm:$0xff] %v4872_v52  ;;  %v973_v47 = vsel %vm357_vm12, %v4872_v52, -inf }
 0x951   :  { %974 = vmax.xlane.f32.xlu0 %v973_v47 }
 0x95a   :  { %v1016_v48 = vpop.f32.mrf.mxu1 }
 0x95b   :  { %3629 = vmatmul.msk.f32.vlgmr.msra.gmra.mxu1 %vm219_vm3, %v1016_v48  ;;  %3630 = vmatmul.msk.f32.vlgmr.msra.gmra.mxu0 %vm219_vm3, %v1016_v48 }
 0x95c   :  { %1449 = vmatpush.msra.mxu0 %v4881_v50  ;;  %1307 = vmatpush.msra.mxu1 %v4607_v62  ;;  %v4938_v62 = vld [vmem:[%s6021_s0 + $0x10] sm:$0xff] }
 0x95e   :  { %1450 = vmatpush.msra.mxu0 %v4888_v53  ;;  %1308 = vmatpush.msra.mxu1 %v4610_v63  ;;  %v4944_v63 = vld [vmem:[%s6021_s0 + $0x8] sm:$0xff] }
 0x960   :  { %1451 = vmatpush.msra.mxu0 %v4895_v54 }
 0x962   :  { %1452 = vmatpush.msra.mxu0 %v4901_v55 }
 0x963   :  { %3637 = vmatmul.msk.f32.vlgmr.msrb.gmra.mxu0 %vm175_vm2, %v948_v25 }
 0x964   :  { %1453 = vmatpush.msra.mxu0 %v4908_v56 }
 0x966   :  { %1454 = vmatpush.msra.mxu0 %v4914_v57 }
 0x968   :  { %1455 = vmatpush.msra.mxu0 %v4920_v58 }
 0x96a   :  { %1456 = vmatpush.msra.mxu0 %v4926_v59 }
 0x96c   :  { %1644 = vmatpush.msrb.mxu0 %v4932_v60 }
 0x96e   :  { %1645 = vmatpush.msrb.mxu0 %v4938_v62 }
 0x970   :  { %1646 = vmatpush.msrb.mxu0 %v4944_v63 }
 0x972   :  { %1647 = vmatpush.msrb.mxu0 %v4950_v37 }
 0x9c4   :  { %v975_v3 = vpop.xlane.xlu0 %974 }
 0x9c5   :  { %vm976_vm9 = vcmp.eq.f32.partialorder %v4872_v52, %v975_v3 }
 0x9c6   :  { %v977_v8 = vsel %vm976_vm9, %v4287_v1, 32 }
 0x9c7   :  { %v978_v13 = vsel %vm357_vm12, %v977_v8, 2147483647 }
 0x9c8   :  { %v980_v34 = vshra.s32 %v978_v13, 16  ;;  %v979_v28 = vand.u32 65535, %v978_v13 }
 0x9ca   :  { %v982_v10 = vcvt.s32.f32 %v980_v34  ;;  %v981_v30 = vcvt.s32.f32 %v979_v28 }
 0x9cc   :  { %983 = vmin.xlane.f32.xlu0 %v982_v10 }
 0x9d8   :  { %v1099_v9 = vpop.f32.mrf.mxu0  ;;  %v1079_v11 = vpop.f32.mrf.mxu1 }
 0x9d9   :  { %v1100_v23 = vadd.f32 %v1099_v9, %v1056_v32  ;;  %v1080_v16 = vadd.f32 %v1079_v11, %v1036_v5 }
 0x9db   :  { %v1103_v4 = vadd.f32 %v1100_v23, %v4494_v42  ;;  %v1102_v26 = vadd.f32 %v1080_v16, %v4505_v51 }
 0x9dd   :  { %3800 = vtanh.f32 %v1103_v4  ;;  %v3631_v27 = vmul.f32 -1.442695, %v1102_v26 }
 0x9df   :  { %3802 = vpow2.f32 %v3631_v27 }
 0x9e3   :  { %v3801_v24 = vpop.eup %3800 }
 0x9e4   :  { %1145 = vrot.lane.b32.xlu1 %v3801_v24, %s4201_s22 }
 0x9e5   :  { %v3803_v17 = vpop.eup %3802 }
 0x9e6   :  { %v1110_v21 = vadd.f32 1.0, %v3803_v17 }
 0x9e8   :  { %3804 = vrcp.f32 %v1110_v21  ;;  %v1123_v2 = vand.u32 2147483648, %v1110_v21  ;;  %vm1117_vm13 = vweird.f32 %v1110_v21  ;;  %v1121_v45 = vand.u32 2147483647, %v1110_v21 }
 0x9ea   :  { %v1124_v47 = vor.u32 1.1754944e-38, %v1123_v2  ;;  %vm1122_vm15 = vcmp.eq.f32.partialorder %v1121_v45, 8.507059e+37  ;;  %v5025_v45 = vld [vmem:[%s6023_s2 + $0x18] sm:$0xff] }
 0x9ee   :  { %v3805_v25 = vpop.eup %3804 }
 0x9ef   :  { %v1113_v40 = vmul.f32 %v3805_v25, %v1110_v21  ;;  %vm1118_vm11 = vweird.f32 %v3805_v25 }
 0x9f0   :  { %vm1119_vm14 = vmor %vm1117_vm13, %vm1118_vm11 }
 0x9f1   :  { %v1114_v44 = vsub.f32 1.0, %v1113_v40  ;;  %v4999_v40 = vld [vmem:[%s6023_s2 + $0x58] sm:$0xff] }
 0x9f3   :  { %v1115_v19 = vmul.f32 %v3805_v25, %v1114_v44  ;;  %v5005_v44 = vld [vmem:[%s6023_s2 + $0x48] sm:$0xff] }
 0x9f5   :  { %v1116_v0 = vadd.f32 %v3805_v25, %v1115_v19  ;;  %v5011_v19 = vld [vmem:[%s6023_s2 + $0x38] sm:$0xff] }
 0x9f7   :  { %v1120_v49 = vsel %vm1119_vm14, %v3805_v25, %v1116_v0  ;;  %v4990_v25 = vld [vmem:[%s6023_s2 + $0x68] sm:$0xff] }
 0x9f8   :  { %v1125_v48 = vsel %vm1122_vm15, %v1124_v47, %v1120_v49  ;;  %v5017_v0 = vld [vmem:[%s6023_s2 + $0x28] sm:$0xff]  ;;  %v5031_v49 = vld [vmem:[%s6022_s1 + $0x18] sm:$0xff] }
 0x9f9   :  { %v1143_v24 = vmul.f32 %v1125_v48, %v4788_v14  ;;  %v5037_v47 = vld [vmem:[%s6023_s2 + $0x8] sm:$0xff] }
 0xa3f   :  { %v984_v29 = vpop.xlane.xlu0 %983 }
 0xa40   :  { %vm985_vm10 = vcmp.eq.f32.partialorder %v982_v10, %v984_v29  ;;  %v990_v13 = vcvt.f32.s32 %v984_v29  ;;  %v4981_v29 = vld [vmem:[%s6023_s2 + $0x78] sm:$0xff] }
 0xa41   :  { %v986_v43 = vsel %vm985_vm10, %v981_v30, inf  ;;  %v4984_v30 = vld [vmem:[#allocation2 + $0x10] sm:$0xff] }
 0xa42   :  { %987 = vmin.xlane.f32.xlu2 %v986_v43  ;;  %v991_v10 = vshll.u32 %v990_v13, 16  ;;  %v4993_v43 = vld [vmem:[#allocation2] sm:$0xff]  ;;  %v5053_v13 = vld [vmem:[#allocation5 + $0x50] sm:$0xff] }
 0xa56   :  { %v1146_v3 = vpop.permute.xlu1 %1145 }
 0xa57   :  { %v1148_v8 = vmul.f32 %v1146_v3, %v1125_v48  ;;  %v5043_v48 = vld [vmem:[%s6022_s1 + $0x8] sm:$0xff]  ;;  %v5046_v3 = vld [vmem:[#allocation5 + $0x70] sm:$0xff] }
 0xa59   :  { %1150 = vrot.lane.b32.xlu0 %v1148_v8, %s4201_s22  ;;  %v5049_v8 = vld [vmem:[#allocation5 + $0x60] sm:$0xff] }
 0xab5   :  { %v988_v34 = vpop.xlane.xlu2 %987 }
 0xab6   :  { %v989_v32 = vcvt.f32.s32 %v988_v34  ;;  %v5056_v34 = vld [vmem:[#allocation5 + $0x40] sm:$0xff] }
 0xab8   :  { %v992_v9 = vadd.s32 %v991_v10, %v989_v32  ;;  %v5059_v10 = vld [vmem:[#allocation5 + $0x30] sm:$0xff]  ;;  %v5062_v32 = vld [vmem:[#allocation5 + $0x20] sm:$0xff] }
 0xaba   :  { %vm993_vm0 = vcmp.eq.s32.totalorder %v4287_v1, %v992_v9  ;;  %v5065_v9 = vld [vmem:[#allocation5 + $0x10] sm:$0xff] }
 0xabb   :  { %v3625_v23 = vsel %vm993_vm0, 1.0, %v6133_v15 }
 0xabc   :  { %3635 = vmatmul.msk.f32.vlgmr.msra.gmra.mxu2 %vm151_vm1, %v3625_v23  ;;  %v5068_v23 = vld [vmem:[#allocation5] sm:$0xff] }
 0xabd   :  { %1382 = vmatpush.msra.mxu2 %v4666_v20  ;;  %6163 = vst [vmem:[#allocation24_spill] sm:$0xff] %v5068_v23 }
 0xabf   :  { %1383 = vmatpush.msra.mxu2 %v4671_v22  ;;  %v3632_v22 = vmul.f32 -1.442695, %v1103_v4 }
 0xac1   :  { %1384 = vmatpush.msra.mxu2 %v4677_v31 }
 0xac3   :  { %1385 = vmatpush.msra.mxu2 %v4683_v18 }
 0xac5   :  { %1386 = vmatpush.msra.mxu2 %v4689_v33 }
 0xac7   :  { %1387 = vmatpush.msra.mxu2 %v4695_v38 }
 0xac9   :  { %1388 = vmatpush.msra.mxu2 %v4701_v46 }
 0xacb   :  { %1389 = vmatpush.msra.mxu2 %v4714_v61  ;;  %v1151_v11 = vpop.permute.xlu0 %1150 }
 0xacc   :  { %v4972_v5 = vadd.f32 %v1151_v11, %v1143_v24  ;;  %v5078_v11 = vld [vmem:[%s6026_s5] ss:$0 sm:$0xff] }
 0xacd   :  { %6164 = vst [vmem:[#allocation25_spill] sm:$0xff] %v5078_v11 }
 0xace   :  { %3806 = vtanh.f32 %v4972_v5 }
 0xacf   :  { %3808 = vpow2.f32 %v3632_v22 }
 0xad4   :  { %v3807_v20 = vpop.eup %3806 }
 0xad5   :  { %1156 = vrot.lane.b32.xlu2 %v3807_v20, %s4201_s22  ;;  %v3809_v31 = vpop.eup %3808 }
 0xad6   :  { %v1111_v18 = vadd.f32 1.0, %v3809_v31 }
 0xad8   :  { %3810 = vrcp.f32 %v1111_v18  ;;  %v1138_v61 = vand.u32 2147483648, %v1111_v18  ;;  %vm1132_vm5 = vweird.f32 %v1111_v18  ;;  %v1136_v26 = vand.u32 2147483647, %v1111_v18 }
 0xada   :  { %v1139_v17 = vor.u32 1.1754944e-38, %v1138_v61  ;;  %vm1137_vm7 = vcmp.eq.f32.partialorder %v1136_v26, 8.507059e+37  ;;  %v1247_v61 = vpop.f32.mrf.mxu3 }
 0xade   :  { %v3811_v33 = vpop.eup %3810 }
 0xadf   :  { %v1128_v38 = vmul.f32 %v3811_v33, %v1111_v18  ;;  %vm1133_vm4 = vweird.f32 %v3811_v33  ;;  %v1267_v18 = vpop.f32.mrf.mxu0 }
 0xae0   :  { %vm1134_vm6 = vmor %vm1132_vm5, %vm1133_vm4 }
 0xae1   :  { %v1129_v46 = vsub.f32 1.0, %v1128_v38 }
 0xae3   :  { %v1130_v16 = vmul.f32 %v3811_v33, %v1129_v46 }
 0xae5   :  { %v1131_v14 = vadd.f32 %v3811_v33, %v1130_v16 }
 0xae7   :  { %v1135_v27 = vsel %vm1134_vm6, %v3811_v33, %v1131_v14 }
 0xae8   :  { %v1140_v21 = vsel %vm1137_vm7, %v1139_v17, %v1135_v27 }
 0xb2f   :  { %v1157_v28 = vpop.permute.xlu2 %1156 }
 0xb30   :  { %v1159_v4 = vmul.f32 %v1157_v28, %v1140_v21 }
 0xb32   :  { %3633 = vmatmul.msk.f32.vlgmr.msrb.gmra.mxu1 %vm175_vm2, %v1159_v4  ;;  %3645 = vmatmul.msk.f32.vlgmr.msra.gmra.mxu0 %vm175_vm2, %v1159_v4 }
 0xb33   :  { %1469 = vmatpush.msrb.mxu1 %v4981_v29  ;;  %1709 = vmatpush.msra.mxu0 %v4984_v30 }
 0xb35   :  { %1470 = vmatpush.msrb.mxu1 %v4990_v25  ;;  %1710 = vmatpush.msra.mxu0 %v4993_v43 }
 0xb37   :  { %1471 = vmatpush.msrb.mxu1 %v4999_v40 }
 0xb39   :  { %1472 = vmatpush.msrb.mxu1 %v5005_v44 }
 0xb3b   :  { %1473 = vmatpush.msrb.mxu1 %v5011_v19 }
 0xb3d   :  { %1474 = vmatpush.msrb.mxu1 %v5017_v0 }
 0xb3f   :  { %v1227_v2 = vpop.f32.mrf.mxu2  ;;  %1475 = vmatpush.msrb.mxu1 %v5025_v45 }
 0xb40   :  { %3638 = vmatmul.msk.f32.vlgmr.msrb.gmra.mxu2 %vm219_vm3, %v1227_v2  ;;  %3639 = vmatmul.msk.f32.vlgmr.msra.gmra.mxu1 %vm219_vm3, %v1227_v2 }
 0xb41   :  { %1518 = vmatpush.msrb.mxu2 %v5031_v49  ;;  %1476 = vmatpush.msrb.mxu1 %v5037_v47 }
 0xb43   :  { %1519 = vmatpush.msrb.mxu2 %v5043_v48  ;;  %1660 = vmatpush.msra.mxu1 %v5046_v3 }
 0xb45   :  { %1661 = vmatpush.msra.mxu1 %v5049_v8 }
 0xb47   :  { %1662 = vmatpush.msra.mxu1 %v5053_v13 }
 0xb48   :  { %3646 = vmatmul.msk.f32.vlgmr.msrb.gmra.mxu1 %vm175_vm2, %v1159_v4 }
 0xb49   :  { %1663 = vmatpush.msra.mxu1 %v5056_v34 }
 0xb4b   :  { %1664 = vmatpush.msra.mxu1 %v5059_v10 }
 0xb4d   :  { %1665 = vmatpush.msra.mxu1 %v5062_v32 }
 0xb4f   :  { %1666 = vmatpush.msra.mxu1 %v5065_v9 }
 0xb51   :  { %1667 = vmatpush.msra.mxu1 %v5068_v23 }
 0xb53   :  { %1855 = vmatpush.msrb.mxu1 %v4932_v60 }
 0xb55   :  { %1856 = vmatpush.msrb.mxu1 %v4938_v62 }
 0xb57   :  { %1857 = vmatpush.msrb.mxu1 %v4944_v63 }
 0xb59   :  { %1858 = vmatpush.msrb.mxu1 %v4950_v37 }
 0xbaf   :  { %v1180_v24 = vpop.f32.mrf.mxu1 }
 0xbb0   :  { %v1181_v20 = vadd.f32 %v5078_v11, %v1180_v24 }
 0xbb2   :  { %3812 = vtanh.f32 %v1181_v20 }
 0xbb8   :  { %v5081_v22 = vpop.eup %3812 }
 0xbb9   :  { %6165 = vst [vmem:[#allocation26_spill] sm:$0xff] %v5081_v22  ;;  %v1184_v31 = vsel %vm357_vm12, %v5081_v22, -inf }
 0xbba   :  { %1185 = vmax.xlane.f32.xlu1 %v1184_v31 }
 0xbbd   :  { %v1310_v33 = vpop.f32.mrf.mxu1 }
 0xbbe   :  { %v1311_v38 = vadd.f32 %v1310_v33, %v1267_v18 }
 0xbc0   :  { %v1314_v46 = vadd.f32 %v1311_v38, %v6151_v41 }
 0xbc2   :  { %3814 = vtanh.f32 %v1314_v46 }
 0xbc3   :  { %v1290_v14 = vpop.f32.mrf.mxu2 }
 0xbc4   :  { %v1291_v26 = vadd.f32 %v1290_v14, %v1247_v61 }
 0xbc6   :  { %v1313_v27 = vadd.f32 %v1291_v26, %v6152_v12 }
 0xbc8   :  { %v3815_v16 = vpop.eup %3814  ;;  %v3640_v17 = vmul.f32 -1.442695, %v1313_v27 }
 0xbc9   :  { %1356 = vrot.lane.b32.xlu0 %v3815_v16, %s4201_s22 }
 0xbca   :  { %3816 = vpow2.f32 %v3640_v17 }
 0xbd0   :  { %v3817_v21 = vpop.eup %3816 }
 0xbd1   :  { %v1321_v28 = vadd.f32 1.0, %v3817_v21 }
 0xbd3   :  { %3818 = vrcp.f32 %v1321_v28  ;;  %v1334_v61 = vand.u32 2147483648, %v1321_v28  ;;  %vm1328_vm10 = vweird.f32 %v1321_v28  ;;  %v1332_v26 = vand.u32 2147483647, %v1321_v28 }
 0xbd5   :  { %v1335_v17 = vor.u32 1.1754944e-38, %v1334_v61  ;;  %vm1333_vm13 = vcmp.eq.f32.partialorder %v1332_v26, 8.507059e+37 }
 0xbd9   :  { %v3819_v4 = vpop.eup %3818 }
 0xbda   :  { %v1324_v2 = vmul.f32 %v3819_v4, %v1321_v28  ;;  %vm1329_vm9 = vweird.f32 %v3819_v4 }
 0xbdb   :  { %vm1330_vm11 = vmor %vm1328_vm10, %vm1329_vm9 }
 0xbdc   :  { %v1325_v24 = vsub.f32 1.0, %v1324_v2 }
 0xbde   :  { %v1326_v18 = vmul.f32 %v3819_v4, %v1325_v24 }
 0xbe0   :  { %v1327_v14 = vadd.f32 %v3819_v4, %v1326_v18 }
 0xbe2   :  { %v1331_v27 = vsel %vm1330_vm11, %v3819_v4, %v1327_v14  ;;  %v3641_v4 = vmul.f32 -1.442695, %v1314_v46 }
 0xbe3   :  { %v1336_v21 = vsel %vm1333_vm13, %v1335_v17, %v1331_v27 }
 0xbe4   :  { %v1354_v18 = vmul.f32 %v1336_v21, %v4834_v6 }
 0xc2d   :  { %v1186_v20 = vpop.xlane.xlu1 %1185 }
 0xc2e   :  { %vm1187_vm8 = vcmp.eq.f32.partialorder %v5081_v22, %v1186_v20 }
 0xc2f   :  { %v1188_v31 = vsel %vm1187_vm8, %v4287_v1, 32 }
 0xc30   :  { %v1189_v33 = vsel %vm357_vm12, %v1188_v31, 2147483647 }
 0xc31   :  { %v1191_v38 = vshra.s32 %v1189_v33, 16  ;;  %v1190_v24 = vand.u32 65535, %v1189_v33 }
 0xc33   :  { %v1193_v16 = vcvt.s32.f32 %v1191_v38  ;;  %v1192_v31 = vcvt.s32.f32 %v1190_v24 }
 0xc35   :  { %1194 = vmin.xlane.f32.xlu2 %v1193_v16 }
 0xc3b   :  { %v1357_v2 = vpop.permute.xlu0 %1356 }
 0xc3c   :  { %v1359_v20 = vmul.f32 %v1357_v2, %v1336_v21 }
 0xc3e   :  { %1361 = vrot.lane.b32.xlu0 %v1359_v20, %s4201_s22 }
 0xca8   :  { %v1195_v7 = vpop.xlane.xlu2 %1194 }
 0xca9   :  { %vm1196_vm14 = vcmp.eq.f32.partialorder %v1193_v16, %v1195_v7  ;;  %v1201_v16 = vcvt.f32.s32 %v1195_v7  ;;  %v5103_v7 = vld [vmem:[%s6025_s4 + $0x38] sm:$0xff] }
 0xcaa   :  { %v1197_v38 = vsel %vm1196_vm14, %v1192_v31, inf }
 0xcab   :  { %1198 = vmin.xlane.f32.xlu0 %v1197_v38  ;;  %v1202_v2 = vshll.u32 %v1201_v16, 16  ;;  %v5126_v16 = vld [vmem:[#allocation5 + $0x78] sm:$0xff] }
 0xcb0   :  { %v1362_v52 = vpop.permute.xlu0 %1361 }
 0xcb1   :  { %v5093_v22 = vadd.f32 %v1362_v52, %v1354_v18  ;;  %v5109_v18 = vld [vmem:[%s6025_s4 + $0x30] sm:$0xff] }
 0xcb3   :  { %3820 = vtanh.f32 %v5093_v22 }
 0xcb4   :  { %3822 = vpow2.f32 %v3641_v4  ;;  %v5115_v4 = vld [vmem:[%s6025_s4 + $0x28] sm:$0xff] }
 0xcb9   :  { %v3821_v28 = vpop.eup %3820 }
 0xcba   :  { %1367 = vrot.lane.b32.xlu1 %v3821_v28, %s4201_s22  ;;  %v3823_v14 = vpop.eup %3822 }
 0xcbb   :  { %v1322_v61 = vadd.f32 1.0, %v3823_v14 }
 0xcbd   :  { %3824 = vrcp.f32 %v1322_v61  ;;  %v1349_v46 = vand.u32 2147483648, %v1322_v61  ;;  %vm1343_vm4 = vweird.f32 %v1322_v61  ;;  %v1347_v31 = vand.u32 2147483647, %v1322_v61 }
 0xcbf   :  { %v1350_v28 = vor.u32 1.1754944e-38, %v1349_v46  ;;  %vm1348_vm6 = vcmp.eq.f32.partialorder %v1347_v31, 8.507059e+37  ;;  %v5167_v46 = vld [vmem:[#allocation5 + $0x28] sm:$0xff]  ;;  %v5170_v31 = vld [vmem:[#allocation5 + $0x18] sm:$0xff] }
 0xcc3   :  { %v3825_v33 = vpop.eup %3824 }
 0xcc4   :  { %v1339_v26 = vmul.f32 %v3825_v33, %v1322_v61  ;;  %vm1344_vm0 = vweird.f32 %v3825_v33 }
 0xcc5   :  { %vm1345_vm5 = vmor %vm1343_vm4, %vm1344_vm0 }
 0xcc6   :  { %v1340_v27 = vsub.f32 1.0, %v1339_v26 }
 0xcc8   :  { %v1341_v21 = vmul.f32 %v3825_v33, %v1340_v27  ;;  %v5132_v27 = vld [vmem:[%s6025_s4 + $0x18] sm:$0xff] }
 0xcc9   :  { %6167 = vst [vmem:[#allocation29_spill] sm:$0xff] %v5132_v27 }
 0xcca   :  { %v1342_v24 = vadd.f32 %v3825_v33, %v1341_v21  ;;  %v5152_v21 = vld [vmem:[%s6025_s4 + $0x8] sm:$0xff] }
 0xccb   :  { %6169 = vst [vmem:[#allocation35_spill] sm:$0xff] %v5152_v21 }
 0xccc   :  { %v1346_v38 = vsel %vm1345_vm5, %v3825_v33, %v1342_v24  ;;  %v5121_v33 = vld [vmem:[%s6025_s4 + $0x20] sm:$0xff]  ;;  %v5164_v24 = vld [vmem:[#allocation5 + $0x38] sm:$0xff] }
 0xccd   :  { %v1351_v14 = vsel %vm1348_vm6, %v1350_v28, %v1346_v38  ;;  %6166 = vst [vmem:[#allocation27_spill] sm:$0xff] %v5121_v33  ;;  %v5173_v38 = vld [vmem:[#allocation5 + $0x8] sm:$0xff] }
 0xd1e   :  { %v1199_v17 = vpop.xlane.xlu0 %1198 }
 0xd1f   :  { %v1200_v6 = vcvt.f32.s32 %v1199_v17  ;;  %v5136_v17 = vld [vmem:[#allocation5 + $0x68] sm:$0xff] }
 0xd21   :  { %v1203_v52 = vadd.s32 %v1202_v2, %v1200_v6  ;;  %v5142_v2 = vld [vmem:[%s6025_s4 + $0x10] sm:$0xff]  ;;  %v5146_v6 = vld [vmem:[#allocation5 + $0x58] sm:$0xff] }
 0xd22   :  { %6168 = vst [vmem:[#allocation33_spill] sm:$0xff] %v5142_v2 }
 0xd23   :  { %vm1204_vm15 = vcmp.eq.s32.totalorder %v4287_v1, %v1203_v52  ;;  %v5155_v52 = vld [vmem:[#allocation5 + $0x48] sm:$0xff] }
 0xd24   :  { %v3634_v20 = vsel %vm1204_vm15, 1.0, %v6133_v15 }
 0xd25   :  { %3644 = vmatmul.msk.f32.vlgmr.msrb.gmra.mxu3 %vm151_vm1, %v3634_v20  ;;  %v5161_v20 = vld [vmem:[%s6025_s4] sm:$0xff] }
 0xd26   :  { %1593 = vmatpush.msrb.mxu3 %v5103_v7  ;;  %6170 = vst [vmem:[#allocation36_spill] sm:$0xff] %v5161_v20 }
 0xd28   :  { %1594 = vmatpush.msrb.mxu3 %v5109_v18 }
 0xd2a   :  { %1595 = vmatpush.msrb.mxu3 %v5115_v4 }
 0xd2c   :  { %v1368_v61 = vpop.permute.xlu1 %1367  ;;  %1596 = vmatpush.msrb.mxu3 %v5121_v33 }
 0xd2d   :  { %v1370_v26 = vmul.f32 %v1368_v61, %v1351_v14  ;;  %v5179_v14 = vld [vmem:[#allocation2 + $0x18] sm:$0xff]  ;;  %v5183_v61 = vld [vmem:[#allocation2 + $0x8] sm:$0xff] }
 0xd2e   :  { %1597 = vmatpush.msrb.mxu3 %v5132_v27  ;;  %6171 = vst [vmem:[#allocation37_spill] sm:$0xff] %v5179_v14 }
 0xd2f   :  { %3642 = vmatmul.msk.f32.vlgmr.msra.gmra.mxu2 %vm175_vm2, %v1370_v26  ;;  %3654 = vmatmul.msk.f32.vlgmr.msra.gmra.mxu1 %vm175_vm2, %v1370_v26  ;;  %6172 = vst [vmem:[#allocation38_spill] sm:$0xff] %v5183_v61 }
 0xd30   :  { %1680 = vmatpush.msra.mxu2 %v5126_v16  ;;  %1920 = vmatpush.msra.mxu1 %v4844_v35 }
 0xd31   :  { %1598 = vmatpush.msrb.mxu3 %v5142_v2 }
 0xd32   :  { %1681 = vmatpush.msra.mxu2 %v5136_v17  ;;  %1921 = vmatpush.msra.mxu1 %v4851_v39 }
 0xd33   :  { %1599 = vmatpush.msrb.mxu3 %v5152_v21 }
 0xd34   :  { %1682 = vmatpush.msra.mxu2 %v5146_v6 }
 0xd35   :  { %1600 = vmatpush.msrb.mxu3 %v5161_v20 }
 0xd36   :  { %1683 = vmatpush.msra.mxu2 %v5155_v52 }
 0xd38   :  { %1684 = vmatpush.msra.mxu2 %v5164_v24 }
 0xd3a   :  { %1685 = vmatpush.msra.mxu2 %v5167_v46 }
 0xd3c   :  { %1686 = vmatpush.msra.mxu2 %v5170_v31 }
 0xd3e   :  { %1687 = vmatpush.msra.mxu2 %v5173_v38 }
 0xda8   :  { %v1438_v28 = vpop.f32.mrf.mxu3 }
 0xda9   :  { %3647 = vmatmul.msk.f32.vlgmr.msra.gmra.mxu3 %vm219_vm3, %v1438_v28  ;;  %3648 = vmatmul.msk.f32.vlgmr.msrb.gmra.mxu2 %vm219_vm3, %v1438_v28  ;;  %v5192_v28 = vld [vmem:[%s6031_s10] ss:$0 sm:$0xff] }
 0xdaa   :  { %1871 = vmatpush.msrb.mxu2 %v4881_v50  ;;  %1729 = vmatpush.msra.mxu3 %v5179_v14  ;;  %6173 = vst [vmem:[#allocation39_spill] sm:$0xff] %v5192_v28 }
 0xdac   :  { %1872 = vmatpush.msrb.mxu2 %v4888_v53  ;;  %1730 = vmatpush.msra.mxu3 %v5183_v61 }
 0xdae   :  { %1873 = vmatpush.msrb.mxu2 %v4895_v54 }
 0xdb0   :  { %1874 = vmatpush.msrb.mxu2 %v4901_v55 }
 0xdb1   :  { %3655 = vmatmul.msk.f32.vlgmr.msra.gmra.mxu2 %vm175_vm2, %v1370_v26 }
 0xdb2   :  { %v1391_v36 = vpop.f32.mrf.mxu2  ;;  %1875 = vmatpush.msrb.mxu2 %v4908_v56 }
 0xdb3   :  { %v1392_v14 = vadd.f32 %v5192_v28, %v1391_v36  ;;  %v1478_v36 = vpop.f32.mrf.mxu1 }
 0xdb4   :  { %1876 = vmatpush.msrb.mxu2 %v4914_v57 }
 0xdb5   :  { %3826 = vtanh.f32 %v1392_v14 }
 0xdb6   :  { %1877 = vmatpush.msrb.mxu2 %v4920_v58 }
 0xdb8   :  { %1878 = vmatpush.msrb.mxu2 %v4926_v59 }
 0xdba   :  { %2066 = vmatpush.msra.mxu2 %v4932_v60 }
 0xdbb   :  { %v5200_v26 = vpop.eup %3826 }
 0xdbc   :  { %6174 = vst [vmem:[#allocation40_spill] sm:$0xff] %v5200_v26  ;;  %v1395_v55 = vsel %vm357_vm12, %v5200_v26, -inf  ;;  %2067 = vmatpush.msra.mxu2 %v4938_v62 }
 0xdbd   :  { %1396 = vmax.xlane.f32.xlu2 %v1395_v55 }
 0xdbe   :  { %2068 = vmatpush.msra.mxu2 %v4944_v63 }
 0xdc0   :  { %2069 = vmatpush.msra.mxu2 %v4950_v37 }
 0xe2c   :  { %v1521_v14 = vpop.f32.mrf.mxu2  ;;  %v1501_v50 = vpop.f32.mrf.mxu3 }
 0xe2d   :  { %v1522_v57 = vadd.f32 %v1521_v14, %v1478_v36  ;;  %v1458_v36 = vpop.f32.mrf.mxu0 }
 0xe2e   :  { %v1502_v14 = vadd.f32 %v1501_v50, %v1458_v36 }
 0xe2f   :  { %v5208_v58 = vadd.f32 %v1522_v57, %v4494_v42 }
 0xe30   :  { %v1397_v59 = vpop.xlane.xlu2 %1396  ;;  %v1524_v57 = vadd.f32 %v1502_v14, %v4505_v51 }
 0xe31   :  { %vm1398_vm7 = vcmp.eq.f32.partialorder %v5200_v26, %v1397_v59  ;;  %3828 = vtanh.f32 %v5208_v58 }
 0xe32   :  { %v1399_v56 = vsel %vm1398_vm7, %v4287_v1, 32  ;;  %v3649_v42 = vmul.f32 -1.442695, %v1524_v57 }
 0xe33   :  { %v1400_v54 = vsel %vm357_vm12, %v1399_v56, 2147483647 }
 0xe34   :  { %v1402_v55 = vshra.s32 %v1400_v54, 16  ;;  %3830 = vpow2.f32 %v3649_v42  ;;  %v1401_v28 = vand.u32 65535, %v1400_v54 }
 0xe36   :  { %v1404_v61 = vcvt.s32.f32 %v1402_v55  ;;  %v1403_v21 = vcvt.s32.f32 %v1401_v28 }
 0xe37   :  { %v3829_v53 = vpop.eup %3828 }
 0xe38   :  { %1405 = vmin.xlane.f32.xlu1 %v1404_v61  ;;  %1567 = vrot.lane.b32.xlu0 %v3829_v53, %s4201_s22 }
 0xe3a   :  { %v3831_v59 = vpop.eup %3830 }
 0xe3b   :  { %v1532_v26 = vadd.f32 1.0, %v3831_v59 }
 0xe3d   :  { %3832 = vrcp.f32 %v1532_v26  ;;  %v1545_v50 = vand.u32 2147483648, %v1532_v26  ;;  %vm1539_vm10 = vweird.f32 %v1532_v26  ;;  %v1543_v36 = vand.u32 2147483647, %v1532_v26 }
 0xe3f   :  { %v1546_v14 = vor.u32 1.1754944e-38, %v1545_v50  ;;  %vm1544_vm13 = vcmp.eq.f32.partialorder %v1543_v36, 8.507059e+37  ;;  %v5245_v50 = vld [vmem:[%s6030_s9 + $0x20] sm:$0xff]  ;;  %v5251_v36 = vld [vmem:[%s6030_s9 + $0x18] sm:$0xff] }
 0xe43   :  { %v3833_v56 = vpop.eup %3832 }
 0xe44   :  { %v1535_v2 = vmul.f32 %v3833_v56, %v1532_v26  ;;  %vm1540_vm9 = vweird.f32 %v3833_v56 }
 0xe45   :  { %vm1541_vm11 = vmor %vm1539_vm10, %vm1540_vm9 }
 0xe46   :  { %v1536_v27 = vsub.f32 1.0, %v1535_v2 }
 0xe48   :  { %v1537_v53 = vmul.f32 %v3833_v56, %v1536_v27 }
 0xe4a   :  { %v1538_v33 = vadd.f32 %v3833_v56, %v1537_v53  ;;  %v5232_v53 = vld [vmem:[%s6030_s9 + $0x30] sm:$0xff] }
 0xe4c   :  { %v1542_v42 = vsel %vm1541_vm11, %v3833_v56, %v1538_v33  ;;  %v5224_v56 = vld [vmem:[%s6030_s9 + $0x38] sm:$0xff] }
 0xe4d   :  { %v1547_v54 = vsel %vm1544_vm13, %v1546_v14, %v1542_v42  ;;  %v5258_v14 = vld [vmem:[%s6030_s9 + $0x10] sm:$0xff] }
 0xe4e   :  { %v1565_v33 = vmul.f32 %v1547_v54, %v4972_v5  ;;  %v5239_v5 = vld [vmem:[%s6030_s9 + $0x28] sm:$0xff]  ;;  %6176 = vst [vmem:[#allocation42_spill] sm:$0xff] %v5258_v14 }
 0xeaa   :  { %v1568_v57 = vpop.permute.xlu0 %1567 }
 0xeab   :  { %v1406_v20 = vpop.xlane.xlu1 %1405  ;;  %v1570_v59 = vmul.f32 %v1568_v57, %v1547_v54  ;;  %v5264_v57 = vld [vmem:[%s6030_s9 + $0x8] sm:$0xff]  ;;  %v5270_v54 = vld [vmem:[%s6030_s9] sm:$0xff] }
 0xeac   :  { %vm1407_vm8 = vcmp.eq.f32.partialorder %v1404_v61, %v1406_v20  ;;  %v1412_v61 = vcvt.f32.s32 %v1406_v20  ;;  %6177 = vst [vmem:[#allocation43_spill] sm:$0xff] %v5264_v57 }
 0xead   :  { %v1408_v55 = vsel %vm1407_vm8, %v1403_v21, inf  ;;  %6178 = vst [vmem:[#allocation44_spill] sm:$0xff] %v5270_v54 }
 0xeae   :  { %1409 = vmin.xlane.f32.xlu2 %v1408_v55  ;;  %v1413_v28 = vshll.u32 %v1412_v61, 16 }
 0xec6   :  { %1572 = vrot.lane.b32.xlu2 %v1570_v59, %s4201_s22  ;;  %v3650_v59 = vmul.f32 -1.442695, %v5208_v58 }
 0xf21   :  { %v1410_v21 = vpop.xlane.xlu2 %1409 }
 0xf22   :  { %v1411_v55 = vcvt.f32.s32 %v1410_v21 }
 0xf24   :  { %v1414_v2 = vadd.s32 %v1413_v28, %v1411_v55 }
 0xf26   :  { %vm1415_vm14 = vcmp.eq.s32.totalorder %v4287_v1, %v1414_v2 }
 0xf27   :  { %v3643_v27 = vsel %vm1415_vm14, 1.0, %v6133_v15 }
 0xf28   :  { %3653 = vmatmul.msk.f32.vlgmr.msrb.gmra.mxu0 %vm151_vm1, %v3643_v27 }
 0xf29   :  { %v1573_v26 = vpop.permute.xlu2 %1572  ;;  %1804 = vmatpush.msrb.mxu0 %v5224_v56 }
 0xf2a   :  { %v5227_v20 = vadd.f32 %v1573_v26, %v1565_v33 }
 0xf2b   :  { %1805 = vmatpush.msrb.mxu0 %v5232_v53 }
 0xf2c   :  { %6175 = vst [vmem:[#allocation41_spill] sm:$0xff] %v5227_v20  ;;  %3834 = vtanh.f32 %v5227_v20 }
 0xf2d   :  { %1806 = vmatpush.msrb.mxu0 %v5239_v5  ;;  %3836 = vpow2.f32 %v3650_v59 }
 0xf2f   :  { %1807 = vmatpush.msrb.mxu0 %v5245_v50 }
 0xf31   :  { %1808 = vmatpush.msrb.mxu0 %v5251_v36 }
 0xf32   :  { %v3835_v42 = vpop.eup %3834 }
 0xf33   :  { %1578 = vrot.lane.b32.xlu0 %v3835_v42, %s4201_s22  ;;  %1809 = vmatpush.msrb.mxu0 %v5258_v14  ;;  %v3837_v61 = vpop.eup %3836 }
 0xf34   :  { %v1533_v21 = vadd.f32 1.0, %v3837_v61 }
 0xf35   :  { %1810 = vmatpush.msrb.mxu0 %v5264_v57 }
 0xf36   :  { %3838 = vrcp.f32 %v1533_v21  ;;  %v1560_v26 = vand.u32 2147483648, %v1533_v21  ;;  %vm1554_vm0 = vweird.f32 %v1533_v21  ;;  %v1558_v42 = vand.u32 2147483647, %v1533_v21 }
 0xf37   :  { %1811 = vmatpush.msrb.mxu0 %v5270_v54 }
 0xf38   :  { %v1561_v57 = vor.u32 1.1754944e-38, %v1560_v26  ;;  %vm1559_vm5 = vcmp.eq.f32.partialorder %v1558_v42, 8.507059e+37 }
 0xf3c   :  { %v3839_v28 = vpop.eup %3838 }
 0xf3d   :  { %v1550_v55 = vmul.f32 %v3839_v28, %v1533_v21  ;;  %vm1555_vm15 = vweird.f32 %v3839_v28 }
 0xf3e   :  { %vm1556_vm4 = vmor %vm1554_vm0, %vm1555_vm15 }
 0xf3f   :  { %v1551_v2 = vsub.f32 1.0, %v1550_v55 }
 0xf41   :  { %v1552_v27 = vmul.f32 %v3839_v28, %v1551_v2 }
 0xf43   :  { %v1553_v33 = vadd.f32 %v3839_v28, %v1552_v27 }
 0xf45   :  { %v1557_v20 = vsel %vm1556_vm4, %v3839_v28, %v1553_v33  ;;  %v1669_v33 = vpop.f32.mrf.mxu1 }
 0xf46   :  { %v1562_v14 = vsel %vm1559_vm5, %v1561_v57, %v1557_v20  ;;  %v1689_v57 = vpop.f32.mrf.mxu2 }
 0xfa5   :  { %v1649_v54 = vpop.f32.mrf.mxu0  ;;  %v1579_v58 = vpop.permute.xlu0 %1578 }
 0xfa6   :  { %v1581_v59 = vmul.f32 %v1579_v58, %v1562_v14  ;;  %3656 = vmatmul.msk.f32.vlgmr.msra.gmra.mxu0 %vm219_vm3, %v1649_v54 }
 0xfa7   :  { %1940 = vmatpush.msra.mxu0 %v5031_v49 }
 0xfa8   :  { %3651 = vmatmul.msk.f32.vlgmr.msrb.gmra.mxu3 %vm175_vm2, %v1581_v59  ;;  %3663 = vmatmul.msk.f32.vlgmr.msrb.gmra.mxu2 %vm175_vm2, %v1581_v59 }
 0xfa9   :  { %1891 = vmatpush.msrb.mxu3 %v4981_v29  ;;  %1941 = vmatpush.msra.mxu0 %v5043_v48 }
 0xfaa   :  { %2131 = vmatpush.msrb.mxu2 %v4984_v30 }
 0xfab   :  { %1892 = vmatpush.msrb.mxu3 %v4990_v25 }
 0xfac   :  { %2132 = vmatpush.msrb.mxu2 %v4993_v43 }
 0xfad   :  { %1893 = vmatpush.msrb.mxu3 %v4999_v40 }
 0xfaf   :  { %1894 = vmatpush.msrb.mxu3 %v5005_v44 }
 0xfb0   :  { %3657 = vmatmul.msk.f32.vlgmr.msra.gmra.mxu3 %vm219_vm3, %v1649_v54 }
 0xfb1   :  { %1895 = vmatpush.msrb.mxu3 %v5011_v19 }
 0xfb3   :  { %1896 = vmatpush.msrb.mxu3 %v5017_v0 }
 0xfb5   :  { %1897 = vmatpush.msrb.mxu3 %v5025_v45 }
 0xfb7   :  { %1898 = vmatpush.msrb.mxu3 %v5037_v47 }
 0xfb8   :  { %3664 = vmatmul.msk.f32.vlgmr.msrb.gmra.mxu3 %vm175_vm2, %v1581_v59 }
 0xfb9   :  { %2082 = vmatpush.msra.mxu3 %v5046_v3 }
 0xfbb   :  { %2083 = vmatpush.msra.mxu3 %v5049_v8 }
 0xfbd   :  { %2084 = vmatpush.msra.mxu3 %v5053_v13 }
 0xfbf   :  { %2085 = vmatpush.msra.mxu3 %v5056_v34 }
 0xfc1   :  { %2086 = vmatpush.msra.mxu3 %v5059_v10 }
 0xfc3   :  { %2087 = vmatpush.msra.mxu3 %v5062_v32 }
 0xfc5   :  { %2088 = vmatpush.msra.mxu3 %v5065_v9 }
 0xfc7   :  { %2089 = vmatpush.msra.mxu3 %v5068_v23 }
 0xfc9   :  { %2277 = vmatpush.msrb.mxu3 %v4932_v60 }
 0xfcb   :  { %2278 = vmatpush.msrb.mxu3 %v4938_v62 }
 0xfcd   :  { %2279 = vmatpush.msrb.mxu3 %v4944_v63 }
 0xfcf   :  { %2280 = vmatpush.msrb.mxu3 %v4950_v37 }
0x1023   :  { %v1712_v27 = vpop.f32.mrf.mxu0 }
0x1024   :  { %v1713_v26 = vadd.f32 %v1712_v27, %v1669_v33 }
0x1026   :  { %v1735_v42 = vadd.f32 %v1713_v26, %v6152_v12 }
0x1028   :  { %v3658_v58 = vmul.f32 -1.442695, %v1735_v42 }
0x102b   :  { %v1602_v20 = vpop.f32.mrf.mxu3 }
0x102c   :  { %v1603_v14 = vadd.f32 %v5078_v11, %v1602_v20 }
0x102e   :  { %3840 = vtanh.f32 %v1603_v14 }
0x1033   :  { %v1732_v54 = vpop.f32.mrf.mxu3 }
0x1034   :  { %v5304_v61 = vpop.eup %3840  ;;  %v1733_v21 = vadd.f32 %v1732_v54, %v1689_v57 }
0x1035   :  { %6179 = vst [vmem:[#allocation45_spill] sm:$0xff] %v5304_v61  ;;  %v1606_v28 = vsel %vm357_vm12, %v5304_v61, -inf }
0x1036   :  { %v1736_v55 = vadd.f32 %v1733_v21, %v6151_v41  ;;  %1607 = vmax.xlane.f32.xlu0 %v1606_v28 }
0x1038   :  { %3842 = vtanh.f32 %v1736_v55 }
0x1039   :  { %3844 = vpow2.f32 %v3658_v58 }
0x103e   :  { %v3843_v2 = vpop.eup %3842 }
0x103f   :  { %1778 = vrot.lane.b32.xlu2 %v3843_v2, %s4201_s22  ;;  %v3845_v59 = vpop.eup %3844 }
0x1040   :  { %v1743_v20 = vadd.f32 1.0, %v3845_v59 }
0x1042   :  { %3846 = vrcp.f32 %v1743_v20  ;;  %v1756_v28 = vand.u32 2147483648, %v1743_v20  ;;  %vm1750_vm7 = vweird.f32 %v1743_v20  ;;  %v1754_v41 = vand.u32 2147483647, %v1743_v20 }
0x1044   :  { %v1757_v23 = vor.u32 1.1754944e-38, %v1756_v28  ;;  %vm1755_vm9 = vcmp.eq.f32.partialorder %v1754_v41, 8.507059e+37 }
0x1048   :  { %v3847_v14 = vpop.eup %3846 }
0x1049   :  { %v1746_v57 = vmul.f32 %v3847_v14, %v1743_v20  ;;  %vm1751_vm6 = vweird.f32 %v3847_v14 }
0x104a   :  { %vm1752_vm8 = vmor %vm1750_vm7, %vm1751_vm6 }
0x104b   :  { %v1747_v54 = vsub.f32 1.0, %v1746_v57 }
0x104d   :  { %v1748_v11 = vmul.f32 %v3847_v14, %v1747_v54 }
0x104f   :  { %v1749_v21 = vadd.f32 %v3847_v14, %v1748_v11 }
0x1051   :  { %v1753_v2 = vsel %vm1752_vm8, %v3847_v14, %v1749_v21 }
0x1052   :  { %v1758_v27 = vsel %vm1755_vm9, %v1757_v23, %v1753_v2 }
0x1053   :  { %v1776_v20 = vmul.f32 %v1758_v27, %v5093_v22 }
0x1099   :  { %v1779_v33 = vpop.permute.xlu2 %1778 }
0x109a   :  { %v1781_v26 = vmul.f32 %v1779_v33, %v1758_v27  ;;  %v3659_v33 = vmul.f32 -1.442695, %v1736_v55 }
0x109c   :  { %1783 = vrot.lane.b32.xlu2 %v1781_v26, %s4201_s22 }
0x10a9   :  { %v1608_v42 = vpop.xlane.xlu0 %1607 }
0x10aa   :  { %vm1609_vm10 = vcmp.eq.f32.partialorder %v5304_v61, %v1608_v42 }
0x10ab   :  { %v1610_v58 = vsel %vm1609_vm10, %v4287_v1, 32 }
0x10ac   :  { %v1611_v11 = vsel %vm357_vm12, %v1610_v58, 2147483647 }
0x10ad   :  { %v1613_v59 = vshra.s32 %v1611_v11, 16  ;;  %v1612_v23 = vand.u32 65535, %v1611_v11 }
0x10af   :  { %v1615_v57 = vcvt.s32.f32 %v1613_v59  ;;  %v1614_v28 = vcvt.s32.f32 %v1612_v23 }
0x10b1   :  { %1616 = vmin.xlane.f32.xlu1 %v1615_v57 }
0x10f6   :  { %v1784_v14 = vpop.permute.xlu2 %1783 }
0x10f7   :  { %v5316_v54 = vadd.f32 %v1784_v14, %v1776_v20 }
0x10f9   :  { %3848 = vtanh.f32 %v5316_v54 }
0x10fa   :  { %3850 = vpow2.f32 %v3659_v33 }
0x10ff   :  { %v3849_v41 = vpop.eup %3848 }
0x1100   :  { %1789 = vrot.lane.b32.xlu2 %v3849_v41, %s4201_s22  ;;  %v3851_v26 = vpop.eup %3850 }
0x1101   :  { %v1744_v42 = vadd.f32 1.0, %v3851_v26 }
0x1103   :  { %3852 = vrcp.f32 %v1744_v42  ;;  %v1771_v14 = vand.u32 2147483648, %v1744_v42  ;;  %vm1765_vm14 = vweird.f32 %v1744_v42  ;;  %v1769_v41 = vand.u32 2147483647, %v1744_v42 }
0x1105   :  { %v1772_v23 = vor.u32 1.1754944e-38, %v1771_v14  ;;  %vm1770_vm0 = vcmp.eq.f32.partialorder %v1769_v41, 8.507059e+37  ;;  %v6185_v14 = vld [vmem:[#allocation39_spill] sm:$0xff] }
0x1109   :  { %v3853_v22 = vpop.eup %3852 }
0x110a   :  { %v1761_v27 = vmul.f32 %v3853_v22, %v1744_v42  ;;  %vm1766_vm13 = vweird.f32 %v3853_v22 }
0x110b   :  { %vm1767_vm15 = vmor %vm1765_vm14, %vm1766_vm13 }
0x110c   :  { %v1762_v58 = vsub.f32 1.0, %v1761_v27  ;;  %v6181_v27 = vld [vmem:[#allocation29_spill] sm:$0xff] }
0x110e   :  { %v1763_v59 = vmul.f32 %v3853_v22, %v1762_v58  ;;  %v6183_v58 = vld [vmem:[#allocation35_spill] sm:$0xff] }
0x1110   :  { %v1764_v20 = vadd.f32 %v3853_v22, %v1763_v59  ;;  %v6184_v59 = vld [vmem:[#allocation36_spill] sm:$0xff] }
0x1112   :  { %v1768_v11 = vsel %vm1767_vm15, %v3853_v22, %v1764_v20  ;;  %v6180_v22 = vld [vmem:[#allocation27_spill] sm:$0xff] }
0x1124   :  { %v1617_v21 = vpop.xlane.xlu1 %1616 }
0x1125   :  { %vm1618_vm11 = vcmp.eq.f32.partialorder %v1615_v57, %v1617_v21 }
0x1126   :  { %v1619_v2 = vsel %vm1618_vm11, %v1614_v28, inf  ;;  %v1773_v28 = vsel %vm1770_vm0, %v1772_v23, %v1768_v11  ;;  %v6188_v23 = vld [vmem:[#allocation37_spill] sm:$0xff] }
0x1127   :  { %1620 = vmin.xlane.f32.xlu1 %v1619_v2  ;;  %v1623_v2 = vcvt.f32.s32 %v1617_v21  ;;  %v6182_v21 = vld [vmem:[#allocation33_spill] sm:$0xff] }
0x1129   :  { %v1624_v26 = vshll.u32 %v1623_v2, 16  ;;  %v6191_v2 = vld [vmem:[#allocation18_spill] sm:$0xff] }
0x115a   :  { %v1790_v57 = vpop.permute.xlu2 %1789 }
0x115b   :  { %v1792_v55 = vmul.f32 %v1790_v57, %v1773_v28  ;;  %v6189_v57 = vld [vmem:[#allocation17_spill] sm:$0xff]  ;;  %v6190_v28 = vld [vmem:[#allocation38_spill] sm:$0xff] }
0x115d   :  { %3660 = vmatmul.msk.f32.vlgmr.msrb.gmra.mxu0 %vm175_vm2, %v1792_v55  ;;  %3672 = vmatmul.msk.f32.vlgmr.msra.gmra.mxu3 %vm175_vm2, %v1792_v55 }
0x115e   :  { %2102 = vmatpush.msrb.mxu0 %v5126_v16  ;;  %2342 = vmatpush.msra.mxu3 %v4844_v35 }
0x1160   :  { %2103 = vmatpush.msrb.mxu0 %v5136_v17  ;;  %2343 = vmatpush.msra.mxu3 %v4851_v39 }
0x1162   :  { %2104 = vmatpush.msrb.mxu0 %v5146_v6 }
0x1164   :  { %2105 = vmatpush.msrb.mxu0 %v5155_v52 }
0x1166   :  { %2106 = vmatpush.msrb.mxu0 %v5164_v24 }
0x1168   :  { %2107 = vmatpush.msrb.mxu0 %v5167_v46 }
0x116a   :  { %2108 = vmatpush.msrb.mxu0 %v5170_v31 }
0x116c   :  { %2109 = vmatpush.msrb.mxu0 %v5173_v38 }
0x119a   :  { %v1621_v33 = vpop.xlane.xlu1 %1620 }
0x119b   :  { %v1622_v35 = vcvt.f32.s32 %v1621_v33  ;;  %v6192_v33 = vld [vmem:[#allocation19_spill] sm:$0xff] }
0x119d   :  { %v1625_v42 = vadd.s32 %v1624_v26, %v1622_v35  ;;  %v6193_v26 = vld [vmem:[#allocation20_spill] sm:$0xff]  ;;  %v6194_v35 = vld [vmem:[#allocation21_spill] sm:$0xff] }
0x119f   :  { %vm1626_vm4 = vcmp.eq.s32.totalorder %v4287_v1, %v1625_v42  ;;  %v6195_v42 = vld [vmem:[#allocation22_spill] sm:$0xff] }
0x11a0   :  { %v3652_v39 = vsel %vm1626_vm4, 1.0, %v6133_v15 }
0x11a1   :  { %3662 = vmatmul.msk.f32.vlgmr.msrb.gmra.mxu1 %vm151_vm1, %v3652_v39  ;;  %v6196_v39 = vld [vmem:[#allocation23_spill] sm:$0xff] }
0x11a2   :  { %2015 = vmatpush.msrb.mxu1 %v5103_v7 }
0x11a4   :  { %2016 = vmatpush.msrb.mxu1 %v5109_v18 }
0x11a6   :  { %2017 = vmatpush.msrb.mxu1 %v5115_v4  ;;  %v6187_v4 = vld [vmem:[#allocation16_spill] sm:$0xff] }
0x11a8   :  { %2018 = vmatpush.msrb.mxu1 %v6180_v22 }
0x11aa   :  { %2019 = vmatpush.msrb.mxu1 %v6181_v27 }
0x11ac   :  { %2020 = vmatpush.msrb.mxu1 %v6182_v21 }
0x11ae   :  { %2021 = vmatpush.msrb.mxu1 %v6183_v58 }
0x11b0   :  { %2022 = vmatpush.msrb.mxu1 %v6184_v59 }
0x11da   :  { %v1813_v20 = vpop.f32.mrf.mxu0 }
0x11db   :  { %v1814_v41 = vadd.f32 %v6185_v14, %v1813_v20 }
0x11dd   :  { %3854 = vtanh.f32 %v1814_v41 }
0x11e3   :  { %v5344_v11 = vpop.eup %3854 }
0x11e4   :  { %6186 = vst [vmem:[#allocation27_spill] sm:$0xff] %v5344_v11  ;;  %v1817_v7 = vsel %vm357_vm12, %v5344_v11, -inf }
0x11e5   :  { %1818 = vmax.xlane.f32.xlu1 %v1817_v7 }
0x121e   :  { %v1860_v18 = vpop.f32.mrf.mxu1 }
0x121f   :  { %3665 = vmatmul.msk.f32.vlgmr.msra.gmra.mxu1 %vm219_vm3, %v1860_v18  ;;  %3666 = vmatmul.msk.f32.vlgmr.msra.gmra.mxu0 %vm219_vm3, %v1860_v18 }
0x1220   :  { %2293 = vmatpush.msra.mxu0 %v6187_v4  ;;  %2151 = vmatpush.msra.mxu1 %v6188_v23 }
0x1222   :  { %2294 = vmatpush.msra.mxu0 %v6189_v57  ;;  %2152 = vmatpush.msra.mxu1 %v6190_v28 }
0x1224   :  { %2295 = vmatpush.msra.mxu0 %v6191_v2 }
0x1226   :  { %2296 = vmatpush.msra.mxu0 %v6192_v33 }
0x1227   :  { %3673 = vmatmul.msk.f32.vlgmr.msrb.gmra.mxu0 %vm175_vm2, %v1792_v55 }
0x1228   :  { %2297 = vmatpush.msra.mxu0 %v6193_v26 }
0x122a   :  { %2298 = vmatpush.msra.mxu0 %v6194_v35 }
0x122c   :  { %2299 = vmatpush.msra.mxu0 %v6195_v42  ;;  %v1880_v42 = vpop.f32.mrf.mxu2 }
0x122e   :  { %2300 = vmatpush.msra.mxu0 %v6196_v39 }
0x1230   :  { %2488 = vmatpush.msrb.mxu0 %v4932_v60 }
0x1232   :  { %2489 = vmatpush.msrb.mxu0 %v4938_v62 }
0x1234   :  { %2490 = vmatpush.msrb.mxu0 %v4944_v63  ;;  %v1900_v63 = vpop.f32.mrf.mxu3 }
0x1236   :  { %2491 = vmatpush.msrb.mxu0 %v4950_v37  ;;  %v6197_v37 = vld [vmem:[#allocation28_spill] sm:$0xff] }
0x1258   :  { %v1819_v22 = vpop.xlane.xlu1 %1818 }
0x1259   :  { %vm1820_vm5 = vcmp.eq.f32.partialorder %v5344_v11, %v1819_v22 }
0x125a   :  { %v1821_v55 = vsel %vm1820_vm5, %v4287_v1, 32 }
0x125b   :  { %v1822_v20 = vsel %vm357_vm12, %v1821_v55, 2147483647 }
0x125c   :  { %v1824_v41 = vshra.s32 %v1822_v20, 16  ;;  %v1823_v18 = vand.u32 65535, %v1822_v20 }
0x125e   :  { %v1826_v7 = vcvt.s32.f32 %v1824_v41  ;;  %v1825_v57 = vcvt.s32.f32 %v1823_v18 }
0x1260   :  { %1827 = vmin.xlane.f32.xlu2 %v1826_v7 }
0x129c   :  { %v1943_v62 = vpop.f32.mrf.mxu0  ;;  %v1923_v35 = vpop.f32.mrf.mxu1 }
0x129d   :  { %v1944_v2 = vadd.f32 %v1943_v62, %v1900_v63  ;;  %v1924_v39 = vadd.f32 %v1923_v35, %v1880_v42 }
0x129f   :  { %v1947_v33 = vadd.f32 %v1944_v2, %v6197_v37  ;;  %v1946_v22 = vadd.f32 %v1924_v39, %v4505_v51 }
0x12a1   :  { %3856 = vtanh.f32 %v1947_v33  ;;  %v3667_v55 = vmul.f32 -1.442695, %v1946_v22  ;;  %v6198_v22 = vld [vmem:[#allocation42_spill] sm:$0xff] }
0x12a3   :  { %3858 = vpow2.f32 %v3667_v55 }
0x12a7   :  { %v3857_v26 = vpop.eup %3856 }
0x12a9   :  { %v3859_v20 = vpop.eup %3858 }
0x12aa   :  { %v1954_v41 = vadd.f32 1.0, %v3859_v20  ;;  %v6199_v20 = vld [vmem:[#allocation43_spill] sm:$0xff] }
0x12ac   :  { %3860 = vrcp.f32 %v1954_v41  ;;  %v1967_v39 = vand.u32 2147483648, %v1954_v41  ;;  %vm1961_vm9 = vweird.f32 %v1954_v41  ;;  %v1965_v55 = vand.u32 2147483647, %v1954_v41 }
0x12ae   :  { %vm1966_vm11 = vcmp.eq.f32.partialorder %v1965_v55, 8.507059e+37 }
0x12b2   :  { %v3861_v62 = vpop.eup %3860 }
0x12b3   :  { %v1957_v2 = vmul.f32 %v3861_v62, %v1954_v41  ;;  %vm1962_vm8 = vweird.f32 %v3861_v62 }
0x12b4   :  { %vm1963_vm10 = vmor %vm1961_vm9, %vm1962_vm8 }
0x12b5   :  { %v1958_v35 = vsub.f32 1.0, %v1957_v2 }
0x12d3   :  { %v1828_v4 = vpop.xlane.xlu2 %1827 }
0x12d4   :  { %vm1829_vm6 = vcmp.eq.f32.partialorder %v1826_v7, %v1828_v4  ;;  %v1834_v7 = vcvt.f32.s32 %v1828_v4  ;;  %v1959_v4 = vmul.f32 %v3861_v62, %v1958_v35  ;;  %v6201_v35 = vld [vmem:[#allocation41_spill] sm:$0xff] }
0x12d5   :  { %v1830_v60 = vsel %vm1829_vm6, %v1825_v57, inf }
0x12d6   :  { %1831 = vmin.xlane.f32.xlu1 %v1830_v60  ;;  %v1835_v57 = vshll.u32 %v1834_v7, 16  ;;  %v1960_v42 = vadd.f32 %v3861_v62, %v1959_v4 }
0x12d8   :  { %v1964_v7 = vsel %vm1963_vm10, %v3861_v62, %v1960_v42  ;;  %v3668_v42 = vmul.f32 -1.442695, %v1947_v33 }
0x12ef   :  { %1989 = vrot.lane.b32.xlu1 %v3857_v26, %s4201_s22 }
0x1349   :  { %v1832_v18 = vpop.xlane.xlu1 %1831 }
0x134a   :  { %v1833_v60 = vcvt.f32.s32 %v1832_v18  ;;  %v1968_v18 = vor.u32 1.1754944e-38, %v1967_v39 }
0x134c   :  { %v1836_v63 = vadd.s32 %v1835_v57, %v1833_v60  ;;  %v6200_v57 = vld [vmem:[#allocation44_spill] sm:$0xff]  ;;  %v1969_v60 = vsel %vm1966_vm11, %v1968_v18, %v1964_v7 }
0x134d   :  { %v1987_v4 = vmul.f32 %v1969_v60, %v6201_v35 }
0x134e   :  { %vm1837_vm7 = vcmp.eq.s32.totalorder %v4287_v1, %v1836_v63 }
0x134f   :  { %v3661_v26 = vsel %vm1837_vm7, 1.0, %v6133_v15 }
0x1350   :  { %3671 = vmatmul.msk.f32.vlgmr.msra.gmra.mxu2 %vm151_vm1, %v3661_v26 }
0x1351   :  { %2226 = vmatpush.msra.mxu2 %v5224_v56 }
0x1353   :  { %2227 = vmatpush.msra.mxu2 %v5232_v53 }
0x1355   :  { %2228 = vmatpush.msra.mxu2 %v5239_v5 }
0x1357   :  { %2229 = vmatpush.msra.mxu2 %v5245_v50 }
0x1359   :  { %2230 = vmatpush.msra.mxu2 %v5251_v36 }
0x135b   :  { %2231 = vmatpush.msra.mxu2 %v6198_v22 }
0x135d   :  { %2232 = vmatpush.msra.mxu2 %v6199_v20 }
0x135f   :  { %2233 = vmatpush.msra.mxu2 %v6200_v57 }
0x1361   :  { %v1990_v63 = vpop.permute.xlu1 %1989 }
0x1362   :  { %v1992_v2 = vmul.f32 %v1990_v63, %v1969_v60 }
0x1364   :  { %1994 = vrot.lane.b32.xlu0 %v1992_v2, %s4201_s22 }
0x13d3   :  { %v2071_v26 = vpop.f32.mrf.mxu2 }
0x13d4   :  { %3674 = vmatmul.msk.f32.vlgmr.msrb.gmra.mxu2 %vm219_vm3, %v2071_v26 }
0x13d5   :  { %2362 = vmatpush.msrb.mxu2 %v5031_v49 }
0x13d6   :  { %v1995_v41 = vpop.permute.xlu0 %1994 }
0x13d7   :  { %v5386_v61 = vadd.f32 %v1995_v41, %v1987_v4  ;;  %2363 = vmatpush.msrb.mxu2 %v5043_v48 }
0x13d9   :  { %3862 = vtanh.f32 %v5386_v61 }
0x13da   :  { %3864 = vpow2.f32 %v3668_v42 }
0x13df   :  { %v3863_v62 = vpop.eup %3862 }
0x13e0   :  { %2000 = vrot.lane.b32.xlu0 %v3863_v62, %s4201_s22  ;;  %v3865_v39 = vpop.eup %3864 }
0x13e1   :  { %v1955_v55 = vadd.f32 1.0, %v3865_v39 }
0x13e3   :  { %3866 = vrcp.f32 %v1955_v55  ;;  %v1982_v2 = vand.u32 2147483648, %v1955_v55  ;;  %vm1976_vm14 = vweird.f32 %v1955_v55  ;;  %v1980_v35 = vand.u32 2147483647, %v1955_v55 }
0x13e5   :  { %v1983_v4 = vor.u32 1.1754944e-38, %v1982_v2  ;;  %vm1981_vm0 = vcmp.eq.f32.partialorder %v1980_v35, 8.507059e+37 }
0x13e9   :  { %v3867_v7 = vpop.eup %3866 }
0x13ea   :  { %v1972_v18 = vmul.f32 %v3867_v7, %v1955_v55  ;;  %vm1977_vm13 = vweird.f32 %v3867_v7 }
0x13eb   :  { %vm1978_vm15 = vmor %vm1976_vm14, %vm1977_vm13 }
0x13ec   :  { %v1973_v60 = vsub.f32 1.0, %v1972_v18 }
0x13ee   :  { %v1974_v63 = vmul.f32 %v3867_v7, %v1973_v60 }
0x13f0   :  { %v1975_v49 = vadd.f32 %v3867_v7, %v1974_v63 }
0x13f2   :  { %v1979_v48 = vsel %vm1978_vm15, %v3867_v7, %v1975_v49 }
0x13f3   :  { %v1984_v41 = vsel %vm1981_vm0, %v1983_v4, %v1979_v48 }
0x1452   :  { %v2001_v62 = vpop.permute.xlu0 %2000 }
0x1453   :  { %v2003_v33 = vmul.f32 %v2001_v62, %v1984_v41 }
0x1455   :  { %3669 = vmatmul.msk.f32.vlgmr.msrb.gmra.mxu1 %vm175_vm2, %v2003_v33  ;;  %3681 = vmatmul.msk.f32.vlgmr.msra.gmra.mxu0 %vm175_vm2, %v2003_v33 }
0x1456   :  { %2313 = vmatpush.msrb.mxu1 %v4981_v29  ;;  %2553 = vmatpush.msra.mxu0 %v4984_v30  ;;  %v6202_v29 = vld [vmem:[#allocation24_spill] sm:$0xff] }
0x1457   :  { %v5416_v30 = vld [vmem:[%s6021_s0 + $0x18] sm:$0xff] }
0x1458   :  { %2314 = vmatpush.msrb.mxu1 %v4990_v25  ;;  %2554 = vmatpush.msra.mxu0 %v4993_v43  ;;  %v5422_v25 = vld [vmem:[%s6021_s0 + $0x10] sm:$0xff]  ;;  %v5428_v43 = vld [vmem:[%s6021_s0 + $0x8] sm:$0xff] }
0x145a   :  { %2315 = vmatpush.msrb.mxu1 %v4999_v40  ;;  %v5434_v40 = vld [vmem:[%s6021_s0] sm:$0xff] }
0x145c   :  { %2316 = vmatpush.msrb.mxu1 %v5005_v44 }
0x145d   :  { %3675 = vmatmul.msk.f32.vlgmr.msra.gmra.mxu1 %vm219_vm3, %v2071_v26  ;;  %v2091_v26 = vpop.f32.mrf.mxu3 }
0x145e   :  { %2317 = vmatpush.msrb.mxu1 %v5011_v19  ;;  %v6203_v19 = vld [vmem:[#allocation25_spill] sm:$0xff] }
0x1460   :  { %2318 = vmatpush.msrb.mxu1 %v5017_v0 }
0x1462   :  { %2319 = vmatpush.msrb.mxu1 %v5025_v45  ;;  %v2111_v45 = vpop.f32.mrf.mxu0 }
0x1464   :  { %2320 = vmatpush.msrb.mxu1 %v5037_v47 }
0x1465   :  { %3682 = vmatmul.msk.f32.vlgmr.msrb.gmra.mxu1 %vm175_vm2, %v2003_v33 }
0x1466   :  { %2504 = vmatpush.msra.mxu1 %v5046_v3 }
0x1468   :  { %2505 = vmatpush.msra.mxu1 %v5049_v8 }
0x146a   :  { %2506 = vmatpush.msra.mxu1 %v5053_v13 }
0x146c   :  { %2507 = vmatpush.msra.mxu1 %v5056_v34  ;;  %v6205_v34 = vld [vmem:[#allocation31_spill] sm:$0xff] }
0x146e   :  { %2508 = vmatpush.msra.mxu1 %v5059_v10 }
0x1470   :  { %2509 = vmatpush.msra.mxu1 %v5062_v32 }
0x1472   :  { %2510 = vmatpush.msra.mxu1 %v5065_v9  ;;  %v2134_v9 = vpop.f32.mrf.mxu2 }
0x1473   :  { %v2135_v42 = vadd.f32 %v2134_v9, %v2091_v26 }
0x1474   :  { %2511 = vmatpush.msra.mxu1 %v6202_v29 }
0x1475   :  { %v2157_v39 = vadd.f32 %v2135_v42, %v6152_v12 }
0x1476   :  { %2699 = vmatpush.msrb.mxu1 %v5416_v30 }
0x1477   :  { %v3676_v55 = vmul.f32 -1.442695, %v2157_v39 }
0x1478   :  { %2700 = vmatpush.msrb.mxu1 %v5422_v25 }
0x147a   :  { %2701 = vmatpush.msrb.mxu1 %v5428_v43 }
0x147c   :  { %2702 = vmatpush.msrb.mxu1 %v5434_v40 }
0x14d2   :  { %v2024_v44 = vpop.f32.mrf.mxu1 }
0x14d3   :  { %v2025_v0 = vadd.f32 %v6203_v19, %v2024_v44 }
0x14d5   :  { %3868 = vtanh.f32 %v2025_v0 }
0x14da   :  { %v2154_v47 = vpop.f32.mrf.mxu1 }
0x14db   :  { %v5438_v3 = vpop.eup %3868  ;;  %v2155_v8 = vadd.f32 %v2154_v47, %v2111_v45 }
0x14dc   :  { %6204 = vst [vmem:[#allocation29_spill] sm:$0xff] %v5438_v3  ;;  %v2028_v13 = vsel %vm357_vm12, %v5438_v3, -inf }
0x14dd   :  { %v2158_v10 = vadd.f32 %v2155_v8, %v6205_v34  ;;  %2029 = vmax.xlane.f32.xlu1 %v2028_v13 }
0x14df   :  { %3870 = vtanh.f32 %v2158_v10 }
0x14e0   :  { %3872 = vpow2.f32 %v3676_v55 }
0x14e5   :  { %v3871_v32 = vpop.eup %3870 }
0x14e6   :  { %2200 = vrot.lane.b32.xlu2 %v3871_v32, %s4201_s22  ;;  %v3873_v7 = vpop.eup %3872 }
0x14e7   :  { %v2165_v18 = vadd.f32 1.0, %v3873_v7 }
0x14e9   :  { %3874 = vrcp.f32 %v2165_v18  ;;  %v2178_v48 = vand.u32 2147483648, %v2165_v18  ;;  %vm2172_vm5 = vweird.f32 %v2165_v18  ;;  %v2176_v4 = vand.u32 2147483647, %v2165_v18 }
0x14eb   :  { %v2179_v62 = vor.u32 1.1754944e-38, %v2178_v48  ;;  %vm2177_vm7 = vcmp.eq.f32.partialorder %v2176_v4, 8.507059e+37 }
0x14ef   :  { %v3875_v60 = vpop.eup %3874 }
0x14f0   :  { %v2168_v63 = vmul.f32 %v3875_v60, %v2165_v18  ;;  %vm2173_vm4 = vweird.f32 %v3875_v60  ;;  %v3677_v18 = vmul.f32 -1.442695, %v2158_v10 }
0x14f1   :  { %vm2174_vm6 = vmor %vm2172_vm5, %vm2173_vm4 }
0x14f2   :  { %v2169_v49 = vsub.f32 1.0, %v2168_v63 }
0x14f4   :  { %v2170_v2 = vmul.f32 %v3875_v60, %v2169_v49 }
0x14f6   :  { %v2171_v35 = vadd.f32 %v3875_v60, %v2170_v2 }
0x14f8   :  { %v2175_v41 = vsel %vm2174_vm6, %v3875_v60, %v2171_v35 }
0x14f9   :  { %v2180_v33 = vsel %vm2177_vm7, %v2179_v62, %v2175_v41 }
0x14fa   :  { %v2198_v13 = vmul.f32 %v2180_v33, %v5316_v54 }
0x1540   :  { %v2201_v29 = vpop.permute.xlu2 %2200 }
0x1541   :  { %v2203_v44 = vmul.f32 %v2201_v29, %v2180_v33 }
0x1543   :  { %2205 = vrot.lane.b32.xlu2 %v2203_v44, %s4201_s22 }
0x1550   :  { %v2030_v19 = vpop.xlane.xlu1 %2029 }
0x1551   :  { %vm2031_vm8 = vcmp.eq.f32.partialorder %v5438_v3, %v2030_v19  ;;  %v5460_v19 = vld [vmem:[%s6022_s1 + $0x10] sm:$0xff] }
0x1552   :  { %v2032_v0 = vsel %vm2031_vm8, %v4287_v1, 32 }
0x1553   :  { %v2033_v45 = vsel %vm357_vm12, %v2032_v0, 2147483647  ;;  %v5467_v0 = vld [vmem:[%s6022_s1] sm:$0xff] }
0x1554   :  { %v2035_v47 = vshra.s32 %v2033_v45, 16  ;;  %v2034_v42 = vand.u32 65535, %v2033_v45 }
0x1556   :  { %v2037_v8 = vcvt.s32.f32 %v2035_v47  ;;  %v2036_v55 = vcvt.s32.f32 %v2034_v42 }
0x1558   :  { %2038 = vmin.xlane.f32.xlu0 %v2037_v8 }
0x159d   :  { %v2206_v32 = vpop.permute.xlu2 %2205 }
0x159e   :  { %v5450_v9 = vadd.f32 %v2206_v32, %v2198_v13 }
0x15a0   :  { %3876 = vtanh.f32 %v5450_v9 }
0x15a1   :  { %3878 = vpow2.f32 %v3677_v18 }
0x15a6   :  { %v3877_v26 = vpop.eup %3876 }
0x15a7   :  { %2211 = vrot.lane.b32.xlu1 %v3877_v26, %s4201_s22  ;;  %v3879_v60 = vpop.eup %3878 }
0x15a8   :  { %v2166_v63 = vadd.f32 1.0, %v3879_v60 }
0x15aa   :  { %3880 = vrcp.f32 %v2166_v63  ;;  %v2193_v4 = vand.u32 2147483648, %v2166_v63  ;;  %vm2187_vm11 = vweird.f32 %v2166_v63  ;;  %v2191_v41 = vand.u32 2147483647, %v2166_v63 }
0x15ac   :  { %v2194_v33 = vor.u32 1.1754944e-38, %v2193_v4  ;;  %vm2192_vm14 = vcmp.eq.f32.partialorder %v2191_v41, 8.507059e+37 }
0x15b0   :  { %v3881_v54 = vpop.eup %3880 }
0x15b1   :  { %v2183_v49 = vmul.f32 %v3881_v54, %v2166_v63  ;;  %vm2188_vm10 = vweird.f32 %v3881_v54 }
0x15b2   :  { %vm2189_vm13 = vmor %vm2187_vm11, %vm2188_vm10 }
0x15b3   :  { %v2184_v2 = vsub.f32 1.0, %v2183_v49 }
0x15b5   :  { %v2185_v35 = vmul.f32 %v3881_v54, %v2184_v2 }
0x15b7   :  { %v2186_v48 = vadd.f32 %v3881_v54, %v2185_v35 }
0x15b9   :  { %v2190_v62 = vsel %vm2189_vm13, %v3881_v54, %v2186_v48  ;;  %v2322_v54 = vpop.f32.mrf.mxu1 }
0x15ba   :  { %v2195_v29 = vsel %vm2192_vm14, %v2194_v33, %v2190_v62  ;;  %v2302_v62 = vpop.f32.mrf.mxu0 }
0x15cb   :  { %v2039_v39 = vpop.xlane.xlu0 %2038 }
0x15cc   :  { %vm2040_vm9 = vcmp.eq.f32.partialorder %v2037_v8, %v2039_v39 }
0x15cd   :  { %v2041_v7 = vsel %vm2040_vm9, %v2036_v55, inf }
0x15ce   :  { %2042 = vmin.xlane.f32.xlu2 %v2041_v7 }
0x1619   :  { %v2212_v44 = vpop.permute.xlu1 %2211 }
0x161a   :  { %v2214_v10 = vmul.f32 %v2212_v44, %v2195_v29 }
0x161c   :  { %3678 = vmatmul.msk.f32.vlgmr.msra.gmra.mxu2 %vm175_vm2, %v2214_v10  ;;  %3690 = vmatmul.msk.f32.vlgmr.msra.gmra.mxu1 %vm175_vm2, %v2214_v10 }
0x161d   :  { %2524 = vmatpush.msra.mxu2 %v5126_v16  ;;  %2764 = vmatpush.msra.mxu1 %v5460_v19  ;;  %v2045_v16 = vcvt.f32.s32 %v2039_v39  ;;  %v5562_v39 = vld [vmem:[%s6023_s2] sm:$0xff] }
0x161f   :  { %2525 = vmatpush.msra.mxu2 %v5136_v17  ;;  %2765 = vmatpush.msra.mxu1 %v5467_v0  ;;  %v2046_v45 = vshll.u32 %v2045_v16, 16 }
0x1621   :  { %2526 = vmatpush.msra.mxu2 %v5146_v6  ;;  %v5482_v6 = vld [vmem:[%s6025_s4 + $0x38] sm:$0xff] }
0x1623   :  { %2527 = vmatpush.msra.mxu2 %v5155_v52  ;;  %v5488_v52 = vld [vmem:[%s6025_s4 + $0x30] sm:$0xff] }
0x1625   :  { %2528 = vmatpush.msra.mxu2 %v5164_v24  ;;  %v5494_v24 = vld [vmem:[%s6025_s4 + $0x28] sm:$0xff] }
0x1627   :  { %2529 = vmatpush.msra.mxu2 %v5167_v46  ;;  %v5500_v46 = vld [vmem:[%s6025_s4 + $0x20] sm:$0xff] }
0x1629   :  { %2530 = vmatpush.msra.mxu2 %v5170_v31 }
0x162b   :  { %2531 = vmatpush.msra.mxu2 %v5173_v38 }
0x1641   :  { %v2043_v17 = vpop.xlane.xlu2 %2042 }
0x1642   :  { %v2044_v47 = vcvt.f32.s32 %v2043_v17 }
0x1644   :  { %v2047_v8 = vadd.s32 %v2046_v45, %v2044_v47 }
0x1646   :  { %vm2048_vm15 = vcmp.eq.s32.totalorder %v4287_v1, %v2047_v8 }
0x1647   :  { %v3670_v13 = vsel %vm2048_vm15, 1.0, %v6133_v15 }
0x1648   :  { %3680 = vmatmul.msk.f32.vlgmr.msrb.gmra.mxu3 %vm151_vm1, %v3670_v13 }
0x1649   :  { %2437 = vmatpush.msrb.mxu3 %v5482_v6 }
0x164b   :  { %2438 = vmatpush.msrb.mxu3 %v5488_v52 }
0x164d   :  { %2439 = vmatpush.msrb.mxu3 %v5494_v24 }
0x164f   :  { %2440 = vmatpush.msrb.mxu3 %v5500_v46 }
0x1651   :  { %2441 = vmatpush.msrb.mxu3 %v6181_v27  ;;  %v5517_v27 = vld [vmem:[%s6023_s2 + $0x70] sm:$0xff] }
0x1653   :  { %2442 = vmatpush.msrb.mxu3 %v6182_v21  ;;  %v5524_v21 = vld [vmem:[%s6023_s2 + $0x60] sm:$0xff] }
0x1655   :  { %2443 = vmatpush.msrb.mxu3 %v6183_v58  ;;  %v5531_v58 = vld [vmem:[%s6023_s2 + $0x50] sm:$0xff] }
0x1657   :  { %2444 = vmatpush.msrb.mxu3 %v6184_v59  ;;  %v5537_v59 = vld [vmem:[%s6023_s2 + $0x40] sm:$0xff] }
0x169f   :  { %v2235_v31 = vpop.f32.mrf.mxu2 }
0x16a0   :  { %v2236_v38 = vadd.f32 %v6185_v14, %v2235_v31  ;;  %v5544_v14 = vld [vmem:[%s6023_s2 + $0x30] sm:$0xff] }
0x16a2   :  { %3882 = vtanh.f32 %v2236_v38 }
0x16a8   :  { %v5508_v32 = vpop.eup %3882 }
0x16a9   :  { %6206 = vst [vmem:[#allocation33_spill] sm:$0xff] %v5508_v32  ;;  %v2239_v26 = vsel %vm357_vm12, %v5508_v32, -inf }
0x16aa   :  { %2240 = vmax.xlane.f32.xlu0 %v2239_v26 }
0x16cb   :  { %v2282_v42 = vpop.f32.mrf.mxu3 }
0x16cc   :  { %3683 = vmatmul.msk.f32.vlgmr.msra.gmra.mxu3 %vm219_vm3, %v2282_v42  ;;  %3684 = vmatmul.msk.f32.vlgmr.msrb.gmra.mxu2 %vm219_vm3, %v2282_v42 }
0x16cd   :  { %2715 = vmatpush.msrb.mxu2 %v5517_v27  ;;  %2573 = vmatpush.msra.mxu3 %v6188_v23  ;;  %v5550_v23 = vld [vmem:[%s6023_s2 + $0x20] sm:$0xff] }
0x16cf   :  { %2716 = vmatpush.msrb.mxu2 %v5524_v21  ;;  %2574 = vmatpush.msra.mxu3 %v6190_v28  ;;  %v5556_v28 = vld [vmem:[%s6023_s2 + $0x10] sm:$0xff] }
0x16d1   :  { %2717 = vmatpush.msrb.mxu2 %v5531_v58 }
0x16d3   :  { %2718 = vmatpush.msrb.mxu2 %v5537_v59 }
0x16d4   :  { %3691 = vmatmul.msk.f32.vlgmr.msra.gmra.mxu2 %vm175_vm2, %v2214_v10 }
0x16d5   :  { %2719 = vmatpush.msrb.mxu2 %v5544_v14 }
0x16d7   :  { %2720 = vmatpush.msrb.mxu2 %v5550_v23 }
0x16d9   :  { %2721 = vmatpush.msrb.mxu2 %v5556_v28 }
0x16db   :  { %2722 = vmatpush.msrb.mxu2 %v5562_v39 }
0x16dd   :  { %2910 = vmatpush.msra.mxu2 %v5416_v30 }
0x16df   :  { %2911 = vmatpush.msra.mxu2 %v5422_v25 }
0x16e1   :  { %2912 = vmatpush.msra.mxu2 %v5428_v43 }
0x16e3   :  { %2913 = vmatpush.msra.mxu2 %v5434_v40 }
0x171d   :  { %v2241_v55 = vpop.xlane.xlu0 %2240 }
0x171e   :  { %vm2242_vm0 = vcmp.eq.f32.partialorder %v5508_v32, %v2241_v55 }
0x171f   :  { %v2243_v7 = vsel %vm2242_vm0, %v4287_v1, 32 }
0x1720   :  { %v2244_v18 = vsel %vm357_vm12, %v2243_v7, 2147483647 }
0x1721   :  { %v2246_v60 = vshra.s32 %v2244_v18, 16  ;;  %v2245_v4 = vand.u32 65535, %v2244_v18 }
0x1723   :  { %v2248_v63 = vcvt.s32.f32 %v2246_v60  ;;  %v2247_v44 = vcvt.s32.f32 %v2245_v4 }
0x1725   :  { %2249 = vmin.xlane.f32.xlu0 %v2248_v63 }
0x174f   :  { %v2365_v49 = vpop.f32.mrf.mxu2  ;;  %v2345_v41 = vpop.f32.mrf.mxu3 }
0x1750   :  { %v2366_v2 = vadd.f32 %v2365_v49, %v2322_v54  ;;  %v2346_v33 = vadd.f32 %v2345_v41, %v2302_v62 }
0x1752   :  { %v2369_v35 = vadd.f32 %v2366_v2, %v6197_v37  ;;  %v2368_v16 = vadd.f32 %v2346_v33, %v4505_v51 }
0x1754   :  { %3884 = vtanh.f32 %v2369_v35  ;;  %v3685_v17 = vmul.f32 -1.442695, %v2368_v16 }
0x1756   :  { %3886 = vpow2.f32 %v3685_v17 }
0x175a   :  { %v3885_v48 = vpop.eup %3884 }
0x175b   :  { %2411 = vrot.lane.b32.xlu1 %v3885_v48, %s4201_s22 }
0x175c   :  { %v3887_v45 = vpop.eup %3886 }
0x175d   :  { %v2376_v47 = vadd.f32 1.0, %v3887_v45 }
0x175f   :  { %3888 = vrcp.f32 %v2376_v47  ;;  %v2389_v42 = vand.u32 2147483648, %v2376_v47  ;;  %vm2383_vm6 = vweird.f32 %v2376_v47  ;;  %v2387_v55 = vand.u32 2147483647, %v2376_v47 }
0x1761   :  { %v2390_v18 = vor.u32 1.1754944e-38, %v2389_v42  ;;  %vm2388_vm8 = vcmp.eq.f32.partialorder %v2387_v55, 8.507059e+37  ;;  %v5613_v42 = vld [vmem:[#allocation2 + $0x10] sm:$0xff]  ;;  %v5619_v55 = vld [vmem:[%s6023_s2 + $0x68] sm:$0xff] }
0x1765   :  { %v3889_v8 = vpop.eup %3888 }
0x1766   :  { %v2379_v13 = vmul.f32 %v3889_v8, %v2376_v47  ;;  %vm2384_vm5 = vweird.f32 %v3889_v8 }
0x1767   :  { %vm2385_vm7 = vmor %vm2383_vm6, %vm2384_vm5 }
0x1768   :  { %v2380_v31 = vsub.f32 1.0, %v2379_v13 }
0x176a   :  { %v2381_v38 = vmul.f32 %v3889_v8, %v2380_v31 }
0x176c   :  { %v2382_v26 = vadd.f32 %v3889_v8, %v2381_v38 }
0x176e   :  { %v2386_v7 = vsel %vm2385_vm7, %v3889_v8, %v2382_v26  ;;  %v5610_v26 = vld [vmem:[%s6023_s2 + $0x78] sm:$0xff] }
0x176f   :  { %v2391_v60 = vsel %vm2388_vm8, %v2390_v18, %v2386_v7  ;;  %v5622_v7 = vld [vmem:[#allocation2] sm:$0xff]  ;;  %v5628_v18 = vld [vmem:[%s6023_s2 + $0x58] sm:$0xff] }
0x1770   :  { %v2409_v33 = vmul.f32 %v2391_v60, %v5386_v61  ;;  %v5596_v61 = vld [vmem:[%s6022_s1 + $0x18] sm:$0xff] }
0x1798   :  { %v2250_v29 = vpop.xlane.xlu0 %2249 }
0x1799   :  { %vm2251_vm4 = vcmp.eq.f32.partialorder %v2248_v63, %v2250_v29  ;;  %v2256_v49 = vcvt.f32.s32 %v2250_v29 }
0x179a   :  { %v2252_v10 = vsel %vm2251_vm4, %v2247_v44, inf }
0x179b   :  { %2253 = vmin.xlane.f32.xlu0 %v2252_v10  ;;  %v2257_v48 = vshll.u32 %v2256_v49, 16  ;;  %v5653_v49 = vld [vmem:[%s6023_s2 + $0x18] sm:$0xff] }
0x17cd   :  { %v2412_v63 = vpop.permute.xlu1 %2411 }
0x17ce   :  { %v2414_v54 = vmul.f32 %v2412_v63, %v2391_v60  ;;  %v5634_v60 = vld [vmem:[%s6023_s2 + $0x48] sm:$0xff]  ;;  %v5641_v63 = vld [vmem:[%s6023_s2 + $0x38] sm:$0xff] }
0x17d0   :  { %2416 = vrot.lane.b32.xlu0 %v2414_v54, %s4201_s22  ;;  %v5647_v54 = vld [vmem:[%s6023_s2 + $0x28] sm:$0xff] }
0x180e   :  { %v2254_v2 = vpop.xlane.xlu0 %2253 }
0x180f   :  { %v2255_v4 = vcvt.f32.s32 %v2254_v2  ;;  %v5659_v2 = vld [vmem:[%s6023_s2 + $0x8] sm:$0xff] }
0x1811   :  { %v2258_v41 = vadd.s32 %v2257_v48, %v2255_v4  ;;  %v5663_v48 = vld [vmem:[#allocation5 + $0x70] sm:$0xff]  ;;  %v5666_v4 = vld [vmem:[#allocation5 + $0x60] sm:$0xff] }
0x1813   :  { %vm2259_vm9 = vcmp.eq.s32.totalorder %v4287_v1, %v2258_v41  ;;  %v5669_v41 = vld [vmem:[#allocation5 + $0x50] sm:$0xff] }
0x1814   :  { %v3679_v62 = vsel %vm2259_vm9, 1.0, %v6133_v15 }
0x1815   :  { %3689 = vmatmul.msk.f32.vlgmr.msrb.gmra.mxu0 %vm151_vm1, %v3679_v62  ;;  %v5672_v62 = vld [vmem:[#allocation5 + $0x40] sm:$0xff] }
0x1816   :  { %2648 = vmatpush.msrb.mxu0 %v5224_v56 }
0x1818   :  { %2649 = vmatpush.msrb.mxu0 %v5232_v53  ;;  %v3686_v53 = vmul.f32 -1.442695, %v2369_v35 }
0x181a   :  { %2650 = vmatpush.msrb.mxu0 %v5239_v5 }
0x181c   :  { %2651 = vmatpush.msrb.mxu0 %v5245_v50 }
0x181e   :  { %2652 = vmatpush.msrb.mxu0 %v5251_v36 }
0x1820   :  { %2653 = vmatpush.msrb.mxu0 %v6198_v22 }
0x1822   :  { %2654 = vmatpush.msrb.mxu0 %v6199_v20 }
0x1824   :  { %2655 = vmatpush.msrb.mxu0 %v6200_v57  ;;  %v5602_v57 = vld [vmem:[%s6022_s1 + $0x8] sm:$0xff]  ;;  %s3563_s1 = sshll.u32 %s6034_s13, 4  ;;  %s3564_s1 = int_to_ptr.hbm [resolvable:$true] %s3563_s1 }
0x1842   :  { %v2417_v29 = vpop.permute.xlu0 %2416 }
0x1843   :  { %v5588_v44 = vadd.f32 %v2417_v29, %v2409_v33  ;;  %v5675_v33 = vld [vmem:[#allocation5 + $0x30] sm:$0xff]  ;;  %v5678_v29 = vld [vmem:[#allocation5 + $0x20] sm:$0xff] }
0x1845   :  { %3890 = vtanh.f32 %v5588_v44 }
0x1846   :  { %3892 = vpow2.f32 %v3686_v53  ;;  %v5684_v53 = vld [vmem:[#allocation5] sm:$0xff] }
0x184b   :  { %v3891_v56 = vpop.eup %3890 }
0x184c   :  { %2422 = vrot.lane.b32.xlu2 %v3891_v56, %s4201_s22  ;;  %v3893_v5 = vpop.eup %3892  ;;  %v5681_v56 = vld [vmem:[#allocation5 + $0x10] sm:$0xff] }
0x184d   :  { %v2377_v50 = vadd.f32 1.0, %v3893_v5 }
0x184f   :  { %3894 = vrcp.f32 %v2377_v50  ;;  %v2404_v17 = vand.u32 2147483648, %v2377_v50  ;;  %vm2398_vm11 = vweird.f32 %v2377_v50  ;;  %v2402_v45 = vand.u32 2147483647, %v2377_v50 }
0x1851   :  { %v2405_v8 = vor.u32 1.1754944e-38, %v2404_v17  ;;  %vm2403_vm14 = vcmp.eq.f32.partialorder %v2402_v45, 8.507059e+37 }
0x1855   :  { %v3895_v36 = vpop.eup %3894 }
0x1856   :  { %v2394_v20 = vmul.f32 %v3895_v36, %v2377_v50  ;;  %vm2399_vm10 = vweird.f32 %v3895_v36  ;;  %v5694_v50 = vld [vmem:[%s6026_s5] ss:$0 sm:$0xff] }
0x1857   :  { %vm2400_vm13 = vmor %vm2398_vm11, %vm2399_vm10  ;;  %6207 = vst [vmem:[#allocation35_spill] sm:$0xff] %v5694_v50 }
0x1858   :  { %v2395_v35 = vsub.f32 1.0, %v2394_v20 }
0x185a   :  { %v2396_v10 = vmul.f32 %v3895_v36, %v2395_v35 }
0x185c   :  { %v2397_v16 = vadd.f32 %v3895_v36, %v2396_v10 }
0x185e   :  { %v2401_v47 = vsel %vm2400_vm13, %v3895_v36, %v2397_v16 }
0x185f   :  { %v2406_v13 = vsel %vm2403_vm14, %v2405_v8, %v2401_v47  ;;  %v2513_v8 = vpop.f32.mrf.mxu1 }
0x1892   :  { %v2493_v22 = vpop.f32.mrf.mxu0 }
0x1893   :  { %3692 = vmatmul.msk.f32.vlgmr.msra.gmra.mxu0 %vm219_vm3, %v2493_v22 }
0x1894   :  { %2784 = vmatpush.msra.mxu0 %v5596_v61 }
0x1896   :  { %2785 = vmatpush.msra.mxu0 %v5602_v57 }
0x18a6   :  { %v2423_v31 = vpop.permute.xlu2 %2422 }
0x18a7   :  { %v2425_v38 = vmul.f32 %v2423_v31, %v2406_v13 }
0x18a9   :  { %3687 = vmatmul.msk.f32.vlgmr.msrb.gmra.mxu3 %vm175_vm2, %v2425_v38  ;;  %3699 = vmatmul.msk.f32.vlgmr.msrb.gmra.mxu2 %vm175_vm2, %v2425_v38 }
0x18aa   :  { %2735 = vmatpush.msrb.mxu3 %v5610_v26  ;;  %2975 = vmatpush.msrb.mxu2 %v5613_v42 }
0x18ac   :  { %2736 = vmatpush.msrb.mxu3 %v5619_v55  ;;  %2976 = vmatpush.msrb.mxu2 %v5622_v7 }
0x18ae   :  { %2737 = vmatpush.msrb.mxu3 %v5628_v18 }
0x18b0   :  { %2738 = vmatpush.msrb.mxu3 %v5634_v60 }
0x18b1   :  { %3693 = vmatmul.msk.f32.vlgmr.msra.gmra.mxu3 %vm219_vm3, %v2493_v22  ;;  %v2533_v22 = vpop.f32.mrf.mxu2 }
0x18b2   :  { %2739 = vmatpush.msrb.mxu3 %v5641_v63 }
0x18b4   :  { %2740 = vmatpush.msrb.mxu3 %v5647_v54 }
0x18b6   :  { %2741 = vmatpush.msrb.mxu3 %v5653_v49 }
0x18b8   :  { %2742 = vmatpush.msrb.mxu3 %v5659_v2 }
0x18b9   :  { %3700 = vmatmul.msk.f32.vlgmr.msrb.gmra.mxu3 %vm175_vm2, %v2425_v38 }
0x18ba   :  { %2926 = vmatpush.msra.mxu3 %v5663_v48 }
0x18bc   :  { %2927 = vmatpush.msra.mxu3 %v5666_v4 }
0x18be   :  { %2928 = vmatpush.msra.mxu3 %v5669_v41 }
0x18c0   :  { %2929 = vmatpush.msra.mxu3 %v5672_v62 }
0x18c2   :  { %2930 = vmatpush.msra.mxu3 %v5675_v33 }
0x18c4   :  { %2931 = vmatpush.msra.mxu3 %v5678_v29 }
0x18c6   :  { %2932 = vmatpush.msra.mxu3 %v5681_v56 }
0x18c8   :  { %2933 = vmatpush.msra.mxu3 %v5684_v53 }
0x18ca   :  { %3121 = vmatpush.msrb.mxu3 %v5416_v30 }
0x18cc   :  { %3122 = vmatpush.msrb.mxu3 %v5422_v25 }
0x18ce   :  { %3123 = vmatpush.msrb.mxu3 %v5428_v43 }
0x18d0   :  { %3124 = vmatpush.msrb.mxu3 %v5434_v40 }
0x1910   :  { %v2556_v47 = vpop.f32.mrf.mxu0 }
0x1911   :  { %v2557_v13 = vadd.f32 %v2556_v47, %v2513_v8 }
0x1913   :  { %v2579_v31 = vadd.f32 %v2557_v13, %v6152_v12 }
0x1915   :  { %v3694_v38 = vmul.f32 -1.442695, %v2579_v31 }
0x192c   :  { %v2446_v5 = vpop.f32.mrf.mxu3 }
0x192d   :  { %v2447_v36 = vadd.f32 %v5694_v50, %v2446_v5 }
0x192f   :  { %3896 = vtanh.f32 %v2447_v36 }
0x1934   :  { %v2576_v20 = vpop.f32.mrf.mxu3 }
0x1935   :  { %v5697_v35 = vpop.eup %3896  ;;  %v2577_v10 = vadd.f32 %v2576_v20, %v2533_v22 }
0x1936   :  { %6208 = vst [vmem:[#allocation36_spill] sm:$0xff] %v5697_v35  ;;  %v2450_v16 = vsel %vm357_vm12, %v5697_v35, -inf }
0x1937   :  { %v2580_v17 = vadd.f32 %v2577_v10, %v6205_v34  ;;  %2451 = vmax.xlane.f32.xlu1 %v2450_v16 }
0x1939   :  { %3898 = vtanh.f32 %v2580_v17 }
0x193a   :  { %3900 = vpow2.f32 %v3694_v38 }
0x193f   :  { %v3899_v45 = vpop.eup %3898 }
0x1940   :  { %2622 = vrot.lane.b32.xlu0 %v3899_v45, %s4201_s22  ;;  %v3901_v5 = vpop.eup %3900 }
0x1941   :  { %v2587_v36 = vadd.f32 1.0, %v3901_v5 }
0x1943   :  { %3902 = vrcp.f32 %v2587_v36  ;;  %v2600_v11 = vand.u32 2147483648, %v2587_v36  ;;  %vm2594_vm4 = vweird.f32 %v2587_v36  ;;  %v2598_v8 = vand.u32 2147483647, %v2587_v36 }
0x1945   :  { %v2601_v38 = vor.u32 1.1754944e-38, %v2600_v11  ;;  %vm2599_vm6 = vcmp.eq.f32.partialorder %v2598_v8, 8.507059e+37 }
0x1949   :  { %v3903_v22 = vpop.eup %3902 }
0x194a   :  { %v2590_v20 = vmul.f32 %v3903_v22, %v2587_v36  ;;  %vm2595_vm0 = vweird.f32 %v3903_v22 }
0x194b   :  { %vm2596_vm5 = vmor %vm2594_vm4, %vm2595_vm0 }
0x194c   :  { %v2591_v3 = vsub.f32 1.0, %v2590_v20 }
0x194e   :  { %v2592_v32 = vmul.f32 %v3903_v22, %v2591_v3 }
0x1950   :  { %v2593_v16 = vadd.f32 %v3903_v22, %v2592_v32 }
0x1952   :  { %v2597_v31 = vsel %vm2596_vm5, %v3903_v22, %v2593_v16  ;;  %v3695_v22 = vmul.f32 -1.442695, %v2580_v17 }
0x1953   :  { %v2602_v20 = vsel %vm2599_vm6, %v2601_v38, %v2597_v31 }
0x1954   :  { %v2620_v34 = vmul.f32 %v2602_v20, %v5450_v9 }
0x19aa   :  { %v2452_v10 = vpop.xlane.xlu1 %2451 }
0x19ab   :  { %vm2453_vm15 = vcmp.eq.f32.partialorder %v5697_v35, %v2452_v10 }
0x19ac   :  { %v2454_v45 = vsel %vm2453_vm15, %v4287_v1, 32 }
0x19ad   :  { %v2455_v47 = vsel %vm357_vm12, %v2454_v45, 2147483647 }
0x19ae   :  { %v2457_v13 = vshra.s32 %v2455_v47, 16  ;;  %v2456_v32 = vand.u32 65535, %v2455_v47 }
0x19b0   :  { %v2459_v5 = vcvt.s32.f32 %v2457_v13  ;;  %v2458_v35 = vcvt.s32.f32 %v2456_v32 }
0x19b2   :  { %v2623_v3 = vpop.permute.xlu0 %2622  ;;  %2460 = vmin.xlane.f32.xlu2 %v2459_v5 }
0x19b3   :  { %v2625_v12 = vmul.f32 %v2623_v3, %v2602_v20 }
0x19b5   :  { %2627 = vrot.lane.b32.xlu0 %v2625_v12, %s4201_s22 }
0x1a25   :  { %v2461_v10 = vpop.xlane.xlu2 %2460 }
0x1a26   :  { %vm2462_vm7 = vcmp.eq.f32.partialorder %v2459_v5, %v2461_v10  ;;  %v2467_v9 = vcvt.f32.s32 %v2461_v10 }
0x1a27   :  { %v2628_v45 = vpop.permute.xlu0 %2627  ;;  %v2463_v36 = vsel %vm2462_vm7, %v2458_v35, inf }
0x1a28   :  { %v5709_v50 = vadd.f32 %v2628_v45, %v2620_v34  ;;  %2464 = vmin.xlane.f32.xlu0 %v2463_v36  ;;  %v2468_v35 = vshll.u32 %v2467_v9, 16  ;;  %v5754_v9 = vld [vmem:[%s6025_s4 + $0x8] sm:$0xff] }
0x1a2a   :  { %3904 = vtanh.f32 %v5709_v50 }
0x1a2b   :  { %3906 = vpow2.f32 %v3695_v22 }
0x1a30   :  { %v3905_v11 = vpop.eup %3904 }
0x1a31   :  { %2633 = vrot.lane.b32.xlu1 %v3905_v11, %s4201_s22  ;;  %v3907_v16 = vpop.eup %3906 }
0x1a32   :  { %v2588_v12 = vadd.f32 1.0, %v3907_v16  ;;  %v5720_v16 = vld [vmem:[#allocation5 + $0x78] sm:$0xff] }
0x1a34   :  { %3908 = vrcp.f32 %v2588_v12  ;;  %v2615_v20 = vand.u32 2147483648, %v2588_v12  ;;  %vm2609_vm9 = vweird.f32 %v2588_v12  ;;  %v2613_v32 = vand.u32 2147483647, %v2588_v12 }
0x1a36   :  { %v2616_v36 = vor.u32 1.1754944e-38, %v2615_v20  ;;  %vm2614_vm13 = vcmp.eq.f32.partialorder %v2613_v32, 8.507059e+37  ;;  %v5775_v20 = vld [vmem:[#allocation2 + $0x18] sm:$0xff]  ;;  %v5779_v32 = vld [vmem:[#allocation2 + $0x8] sm:$0xff] }
0x1a3a   :  { %v3909_v47 = vpop.eup %3908 }
0x1a3b   :  { %v2605_v8 = vmul.f32 %v3909_v47, %v2588_v12  ;;  %vm2610_vm8 = vweird.f32 %v3909_v47  ;;  %v5725_v12 = vld [vmem:[#allocation5 + $0x68] sm:$0xff] }
0x1a3c   :  { %vm2611_vm10 = vmor %vm2609_vm9, %vm2610_vm8 }
0x1a3d   :  { %v2606_v13 = vsub.f32 1.0, %v2605_v8  ;;  %v5736_v8 = vld [vmem:[%s6025_s4 + $0x18] sm:$0xff] }
0x1a3f   :  { %v2607_v31 = vmul.f32 %v3909_v47, %v2606_v13  ;;  %v5745_v13 = vld [vmem:[%s6025_s4 + $0x10] sm:$0xff] }
0x1a41   :  { %v2608_v5 = vadd.f32 %v3909_v47, %v2607_v31  ;;  %v5757_v31 = vld [vmem:[#allocation5 + $0x28] sm:$0xff] }
0x1a43   :  { %v2612_v17 = vsel %vm2611_vm10, %v3909_v47, %v2608_v5  ;;  %v5730_v47 = vld [vmem:[#allocation5 + $0x58] sm:$0xff] }
0x1a44   :  { %v2617_v10 = vsel %vm2614_vm13, %v2616_v36, %v2612_v17  ;;  %v5785_v17 = vld [vmem:[%s6031_s10] ss:$0 sm:$0xff] }
0x1a9b   :  { %v2465_v38 = vpop.xlane.xlu0 %2464 }
0x1a9c   :  { %v2466_v34 = vcvt.f32.s32 %v2465_v38  ;;  %v5763_v38 = vld [vmem:[%s6025_s4] sm:$0xff] }
0x1a9e   :  { %v2469_v3 = vadd.s32 %v2468_v35, %v2466_v34  ;;  %v5766_v35 = vld [vmem:[#allocation5 + $0x18] sm:$0xff]  ;;  %v5769_v34 = vld [vmem:[#allocation5 + $0x8] sm:$0xff] }
0x1aa0   :  { %vm2470_vm11 = vcmp.eq.s32.totalorder %v4287_v1, %v2469_v3 }
0x1aa1   :  { %v3688_v45 = vsel %vm2470_vm11, 1.0, %v6133_v15 }
0x1aa2   :  { %3698 = vmatmul.msk.f32.vlgmr.msrb.gmra.mxu1 %vm151_vm1, %v3688_v45 }
0x1aa3   :  { %v2634_v11 = vpop.permute.xlu1 %2633  ;;  %2859 = vmatpush.msrb.mxu1 %v5482_v6 }
0x1aa4   :  { %v2636_v22 = vmul.f32 %v2634_v11, %v2617_v10  ;;  %v2724_v10 = vpop.f32.mrf.mxu2 }
0x1aa5   :  { %2860 = vmatpush.msrb.mxu1 %v5488_v52 }
0x1aa6   :  { %3696 = vmatmul.msk.f32.vlgmr.msrb.gmra.mxu0 %vm175_vm2, %v2636_v22  ;;  %3708 = vmatmul.msk.f32.vlgmr.msra.gmra.mxu3 %vm175_vm2, %v2636_v22 }
0x1aa7   :  { %2946 = vmatpush.msrb.mxu0 %v5720_v16  ;;  %2861 = vmatpush.msrb.mxu1 %v5494_v24 }
0x1aa8   :  { %3186 = vmatpush.msra.mxu3 %v5460_v19  ;;  %v5739_v19 = vld [vmem:[#allocation5 + $0x48] sm:$0xff] }
0x1aa9   :  { %2947 = vmatpush.msrb.mxu0 %v5725_v12  ;;  %2862 = vmatpush.msrb.mxu1 %v5500_v46 }
0x1aaa   :  { %3187 = vmatpush.msra.mxu3 %v5467_v0  ;;  %v5748_v0 = vld [vmem:[#allocation5 + $0x38] sm:$0xff] }
0x1aab   :  { %2948 = vmatpush.msrb.mxu0 %v5730_v47  ;;  %2863 = vmatpush.msrb.mxu1 %v5736_v8 }
0x1aad   :  { %2949 = vmatpush.msrb.mxu0 %v5739_v19  ;;  %2864 = vmatpush.msrb.mxu1 %v5745_v13 }
0x1aaf   :  { %2950 = vmatpush.msrb.mxu0 %v5748_v0  ;;  %2865 = vmatpush.msrb.mxu1 %v5754_v9 }
0x1ab1   :  { %2951 = vmatpush.msrb.mxu0 %v5757_v31  ;;  %2866 = vmatpush.msrb.mxu1 %v5763_v38 }
0x1ab3   :  { %2952 = vmatpush.msrb.mxu0 %v5766_v35 }
0x1ab5   :  { %2953 = vmatpush.msrb.mxu0 %v5769_v34 }
0x1b1f   :  { %v2704_v5 = vpop.f32.mrf.mxu1 }
0x1b20   :  { %3701 = vmatmul.msk.f32.vlgmr.msra.gmra.mxu1 %vm219_vm3, %v2704_v5  ;;  %3702 = vmatmul.msk.f32.vlgmr.msra.gmra.mxu0 %vm219_vm3, %v2704_v5 }
0x1b21   :  { %3137 = vmatpush.msra.mxu0 %v5517_v27  ;;  %2995 = vmatpush.msra.mxu1 %v5775_v20 }
0x1b23   :  { %v2657_v3 = vpop.f32.mrf.mxu0  ;;  %3138 = vmatpush.msra.mxu0 %v5524_v21  ;;  %2996 = vmatpush.msra.mxu1 %v5779_v32 }
0x1b24   :  { %v2658_v45 = vadd.f32 %v5785_v17, %v2657_v3 }
0x1b25   :  { %3139 = vmatpush.msra.mxu0 %v5531_v58  ;;  %v2744_v58 = vpop.f32.mrf.mxu3 }
0x1b26   :  { %3910 = vtanh.f32 %v2658_v45 }
0x1b27   :  { %3140 = vmatpush.msra.mxu0 %v5537_v59 }
0x1b28   :  { %3709 = vmatmul.msk.f32.vlgmr.msrb.gmra.mxu0 %vm175_vm2, %v2636_v22 }
0x1b29   :  { %3141 = vmatpush.msra.mxu0 %v5544_v14 }
0x1b2b   :  { %3142 = vmatpush.msra.mxu0 %v5550_v23 }
0x1b2c   :  { %v5793_v27 = vpop.eup %3910 }
0x1b2d   :  { %6209 = vst [vmem:[#allocation39_spill] sm:$0xff] %v5793_v27  ;;  %v2661_v21 = vsel %vm357_vm12, %v5793_v27, -inf  ;;  %3143 = vmatpush.msra.mxu0 %v5556_v28 }
0x1b2e   :  { %2662 = vmax.xlane.f32.xlu2 %v2661_v21 }
0x1b2f   :  { %3144 = vmatpush.msra.mxu0 %v5562_v39 }
0x1b31   :  { %3309 = vmatpush.msrb.mxu0 %v5416_v30 }
0x1b33   :  { %3310 = vmatpush.msrb.mxu0 %v5422_v25 }
0x1b35   :  { %3311 = vmatpush.msrb.mxu0 %v5428_v43 }
0x1b37   :  { %3312 = vmatpush.msrb.mxu0 %v5434_v40 }
0x1b9d   :  { %v2787_v59 = vpop.f32.mrf.mxu0  ;;  %v2767_v40 = vpop.f32.mrf.mxu1 }
0x1b9e   :  { %v2788_v14 = vadd.f32 %v2787_v59, %v2744_v58  ;;  %v2768_v11 = vadd.f32 %v2767_v40, %v2724_v10 }
0x1ba0   :  { %v5804_v23 = vadd.f32 %v2788_v14, %v6197_v37  ;;  %v2790_v22 = vadd.f32 %v2768_v11, %v4505_v51 }
0x1ba1   :  { %v2663_v36 = vpop.xlane.xlu2 %2662 }
0x1ba2   :  { %3912 = vtanh.f32 %v5804_v23  ;;  %vm2664_vm14 = vcmp.eq.f32.partialorder %v5793_v27, %v2663_v36  ;;  %v3703_v5 = vmul.f32 -1.442695, %v2790_v22 }
0x1ba3   :  { %v2665_v28 = vsel %vm2664_vm14, %v4287_v1, 32 }
0x1ba4   :  { %v2666_v30 = vsel %vm357_vm12, %v2665_v28, 2147483647  ;;  %3914 = vpow2.f32 %v3703_v5 }
0x1ba5   :  { %v2668_v25 = vshra.s32 %v2666_v30, 16  ;;  %v2667_v21 = vand.u32 65535, %v2666_v30 }
0x1ba7   :  { %v2670_v39 = vcvt.s32.f32 %v2668_v25  ;;  %v2669_v59 = vcvt.s32.f32 %v2667_v21 }
0x1ba8   :  { %v3913_v43 = vpop.eup %3912 }
0x1ba9   :  { %2833 = vrot.lane.b32.xlu0 %v3913_v43, %s4201_s22  ;;  %2671 = vmin.xlane.f32.xlu1 %v2670_v39 }
0x1baa   :  { %v3915_v3 = vpop.eup %3914 }
0x1bab   :  { %v2798_v45 = vadd.f32 1.0, %v3915_v3 }
0x1bad   :  { %3916 = vrcp.f32 %v2798_v45  ;;  %v2811_v40 = vand.u32 2147483648, %v2798_v45  ;;  %vm2805_vm4 = vweird.f32 %v2798_v45  ;;  %v2809_v10 = vand.u32 2147483647, %v2798_v45 }
0x1baf   :  { %v2812_v22 = vor.u32 1.1754944e-38, %v2811_v40  ;;  %vm2810_vm6 = vcmp.eq.f32.partialorder %v2809_v10, 8.507059e+37  ;;  %v5841_v40 = vld [vmem:[%s6030_s9 + $0x20] sm:$0xff]  ;;  %v5847_v10 = vld [vmem:[%s6030_s9 + $0x18] sm:$0xff] }
0x1bb3   :  { %v3917_v14 = vpop.eup %3916 }
0x1bb4   :  { %v2801_v28 = vmul.f32 %v3917_v14, %v2798_v45  ;;  %vm2806_vm0 = vweird.f32 %v3917_v14 }
0x1bb5   :  { %vm2807_vm5 = vmor %vm2805_vm4, %vm2806_vm0 }
0x1bb6   :  { %v2802_v25 = vsub.f32 1.0, %v2801_v28 }
0x1bb8   :  { %v2803_v43 = vmul.f32 %v3917_v14, %v2802_v25 }
0x1bba   :  { %v2804_v27 = vadd.f32 %v3917_v14, %v2803_v43  ;;  %v5828_v43 = vld [vmem:[%s6030_s9 + $0x30] sm:$0xff] }
0x1bbc   :  { %v2808_v11 = vsel %vm2807_vm5, %v3917_v14, %v2804_v27  ;;  %v5820_v14 = vld [vmem:[%s6030_s9 + $0x38] sm:$0xff] }
0x1bbd   :  { %v2813_v30 = vsel %vm2810_vm6, %v2812_v22, %v2808_v11  ;;  %v5854_v22 = vld [vmem:[%s6030_s9 + $0x10] sm:$0xff] }
0x1bbe   :  { %v2831_v27 = vmul.f32 %v2813_v30, %v5588_v44  ;;  %v5835_v44 = vld [vmem:[%s6030_s9 + $0x28] sm:$0xff]  ;;  %6211 = vst [vmem:[#allocation37_spill] sm:$0xff] %v5854_v22 }
0x1c1b   :  { %v2834_v5 = vpop.permute.xlu0 %2833 }
0x1c1c   :  { %v2672_v58 = vpop.xlane.xlu1 %2671  ;;  %v2836_v3 = vmul.f32 %v2834_v5, %v2813_v30  ;;  %v5860_v5 = vld [vmem:[%s6030_s9 + $0x8] sm:$0xff]  ;;  %v5866_v30 = vld [vmem:[%s6030_s9] sm:$0xff]  ;;  %s4202_s9 = smov 32  }
0x1c1d   :  { %vm2673_vm15 = vcmp.eq.f32.partialorder %v2670_v39, %v2672_v58  ;;  %v2678_v39 = vcvt.f32.s32 %v2672_v58  ;;  %6212 = vst [vmem:[#allocation17_spill] sm:$0xff] %v5860_v5 }
0x1c1e   :  { %v2674_v36 = vsel %vm2673_vm15, %v2669_v59, inf  ;;  %6213 = vst [vmem:[#allocation38_spill] sm:$0xff] %v5866_v30 }
0x1c1f   :  { %2675 = vmin.xlane.f32.xlu2 %v2674_v36  ;;  %v2679_v59 = vshll.u32 %v2678_v39, 16 }
0x1c37   :  { %2838 = vrot.lane.b32.xlu2 %v2836_v3, %s4201_s22  ;;  %v3704_v3 = vmul.f32 -1.442695, %v5804_v23 }
0x1c92   :  { %v2676_v21 = vpop.xlane.xlu2 %2675 }
0x1c93   :  { %v2677_v36 = vcvt.f32.s32 %v2676_v21 }
0x1c95   :  { %v2680_v28 = vadd.s32 %v2679_v59, %v2677_v36 }
0x1c97   :  { %vm2681_vm7 = vcmp.eq.s32.totalorder %v4287_v1, %v2680_v28 }
0x1c98   :  { %v3697_v25 = vsel %vm2681_vm7, 1.0, %v6133_v15 }
0x1c99   :  { %3707 = vmatmul.msk.f32.vlgmr.msra.gmra.mxu2 %vm151_vm1, %v3697_v25 }
0x1c9a   :  { %v2839_v45 = vpop.permute.xlu2 %2838  ;;  %3070 = vmatpush.msra.mxu2 %v5820_v14 }
0x1c9b   :  { %v5823_v58 = vadd.f32 %v2839_v45, %v2831_v27 }
0x1c9c   :  { %3071 = vmatpush.msra.mxu2 %v5828_v43 }
0x1c9d   :  { %6210 = vst [vmem:[#allocation16_spill] sm:$0xff] %v5823_v58  ;;  %3918 = vtanh.f32 %v5823_v58 }
0x1c9e   :  { %3072 = vmatpush.msra.mxu2 %v5835_v44  ;;  %3920 = vpow2.f32 %v3704_v3 }
0x1ca0   :  { %3073 = vmatpush.msra.mxu2 %v5841_v40 }
0x1ca2   :  { %3074 = vmatpush.msra.mxu2 %v5847_v10 }
0x1ca3   :  { %v3919_v11 = vpop.eup %3918 }
0x1ca4   :  { %2844 = vrot.lane.b32.xlu0 %v3919_v11, %s4201_s22  ;;  %3075 = vmatpush.msra.mxu2 %v5854_v22  ;;  %v3921_v39 = vpop.eup %3920 }
0x1ca5   :  { %v2799_v21 = vadd.f32 1.0, %v3921_v39 }
0x1ca6   :  { %3076 = vmatpush.msra.mxu2 %v5860_v5 }
0x1ca7   :  { %3922 = vrcp.f32 %v2799_v21  ;;  %v2826_v45 = vand.u32 2147483648, %v2799_v21  ;;  %vm2820_vm9 = vweird.f32 %v2799_v21  ;;  %v2824_v11 = vand.u32 2147483647, %v2799_v21 }
0x1ca8   :  { %3077 = vmatpush.msra.mxu2 %v5866_v30 }
0x1ca9   :  { %v2827_v5 = vor.u32 1.1754944e-38, %v2826_v45  ;;  %vm2825_vm11 = vcmp.eq.f32.partialorder %v2824_v11, 8.507059e+37 }
0x1cad   :  { %v3923_v59 = vpop.eup %3922 }
0x1cae   :  { %v2816_v36 = vmul.f32 %v3923_v59, %v2799_v21  ;;  %vm2821_vm8 = vweird.f32 %v3923_v59 }
0x1caf   :  { %vm2822_vm10 = vmor %vm2820_vm9, %vm2821_vm8 }
0x1cb0   :  { %v2817_v28 = vsub.f32 1.0, %v2816_v36 }
0x1cb2   :  { %v2818_v25 = vmul.f32 %v3923_v59, %v2817_v28 }
0x1cb4   :  { %v2819_v27 = vadd.f32 %v3923_v59, %v2818_v25 }
0x1cb6   :  { %v2823_v58 = vsel %vm2822_vm10, %v3923_v59, %v2819_v27 }
0x1cb7   :  { %v2828_v30 = vsel %vm2825_vm11, %v2827_v5, %v2823_v58 }
0x1d16   :  { %v2845_v22 = vpop.permute.xlu0 %2844 }
0x1d17   :  { %v2847_v23 = vmul.f32 %v2845_v22, %v2828_v30 }
0x1d19   :  { %3705 = vmatmul.msk.f32.vlgmr.msrb.gmra.mxu1 %vm175_vm2, %v2847_v23  ;;  %3717 = vmatmul.msk.f32.vlgmr.msra.gmra.mxu0 %vm175_vm2, %v2847_v23 }
0x1d1a   :  { %3157 = vmatpush.msrb.mxu1 %v5610_v26  ;;  %3374 = vmatpush.msra.mxu0 %v5613_v42  ;;  %v2955_v42 = vpop.f32.mrf.mxu0 }
0x1d1c   :  { %v2915_v3 = vpop.f32.mrf.mxu2  ;;  %3158 = vmatpush.msrb.mxu1 %v5619_v55  ;;  %3375 = vmatpush.msra.mxu0 %v5622_v7 }
0x1d1d   :  { %3710 = vmatmul.msk.f32.vlgmr.msrb.gmra.mxu2 %vm219_vm3, %v2915_v3 }
0x1d1e   :  { %3159 = vmatpush.msrb.mxu1 %v5628_v18  ;;  %3206 = vmatpush.msrb.mxu2 %v5596_v61 }
0x1d20   :  { %3160 = vmatpush.msrb.mxu1 %v5634_v60  ;;  %3207 = vmatpush.msrb.mxu2 %v5602_v57  ;;  %v6214_v57 = vld [vmem:[#allocation35_spill] sm:$0xff] }
0x1d21   :  { %3711 = vmatmul.msk.f32.vlgmr.msra.gmra.mxu1 %vm219_vm3, %v2915_v3 }
0x1d22   :  { %3161 = vmatpush.msrb.mxu1 %v5641_v63  ;;  %v6215_v63 = vld [vmem:[#allocation31_spill] sm:$0xff] }
0x1d24   :  { %3162 = vmatpush.msrb.mxu1 %v5647_v54 }
0x1d26   :  { %3163 = vmatpush.msrb.mxu1 %v5653_v49 }
0x1d28   :  { %3164 = vmatpush.msrb.mxu1 %v5659_v2 }
0x1d29   :  { %3718 = vmatmul.msk.f32.vlgmr.msrb.gmra.mxu1 %vm175_vm2, %v2847_v23 }
0x1d2a   :  { %3325 = vmatpush.msra.mxu1 %v5663_v48  ;;  %v2935_v48 = vpop.f32.mrf.mxu3 }
0x1d2c   :  { %3326 = vmatpush.msra.mxu1 %v5666_v4 }
0x1d2e   :  { %3327 = vmatpush.msra.mxu1 %v5669_v41  ;;  %v6216_v41 = vld [vmem:[#allocation32_spill] sm:$0xff] }
0x1d30   :  { %3328 = vmatpush.msra.mxu1 %v5672_v62 }
0x1d32   :  { %3329 = vmatpush.msra.mxu1 %v5675_v33 }
0x1d34   :  { %3330 = vmatpush.msra.mxu1 %v5678_v29 }
0x1d36   :  { %3331 = vmatpush.msra.mxu1 %v5681_v56 }
0x1d38   :  { %3332 = vmatpush.msra.mxu1 %v5684_v53 }
0x1d96   :  { %v2868_v61 = vpop.f32.mrf.mxu1 }
0x1d97   :  { %v2869_v26 = vadd.f32 %v6214_v57, %v2868_v61 }
0x1d99   :  { %3924 = vtanh.f32 %v2869_v26 }
0x1d9e   :  { %v2998_v55 = vpop.f32.mrf.mxu1 }
0x1d9f   :  { %v5896_v7 = vpop.eup %3924  ;;  %v2999_v18 = vadd.f32 %v2998_v55, %v2955_v42 }
0x1da0   :  { %v2872_v60 = vsel %vm357_vm12, %v5896_v7, -inf  ;;  %v2978_v2 = vpop.f32.mrf.mxu2 }
0x1da1   :  { %v3002_v54 = vadd.f32 %v2999_v18, %v6215_v63  ;;  %2873 = vmax.xlane.f32.xlu0 %v2872_v60  ;;  %v2979_v4 = vadd.f32 %v2978_v2, %v2935_v48 }
0x1da3   :  { %3926 = vtanh.f32 %v3002_v54  ;;  %v3001_v62 = vadd.f32 %v2979_v4, %v6216_v41  ;;  %v3713_v4 = vmul.f32 -1.442695, %v3002_v54 }
0x1da5   :  { %v3712_v33 = vmul.f32 -1.442695, %v3001_v62 }
0x1da7   :  { %3928 = vpow2.f32 %v3712_v33 }
0x1da9   :  { %v3927_v49 = vpop.eup %3926 }
0x1daa   :  { %3044 = vrot.lane.b32.xlu2 %v3927_v49, %s4201_s22 }
0x1dad   :  { %v3929_v29 = vpop.eup %3928 }
0x1dae   :  { %v3009_v56 = vadd.f32 1.0, %v3929_v29 }
0x1db0   :  { %3930 = vrcp.f32 %v3009_v56  ;;  %v3022_v39 = vand.u32 2147483648, %v3009_v56  ;;  %vm3016_vm14 = vweird.f32 %v3009_v56  ;;  %v3020_v21 = vand.u32 2147483647, %v3009_v56 }
0x1db2   :  { %v3023_v36 = vor.u32 1.1754944e-38, %v3022_v39  ;;  %vm3021_vm0 = vcmp.eq.f32.partialorder %v3020_v21, 8.507059e+37 }
0x1db6   :  { %v3931_v53 = vpop.eup %3930 }
0x1db7   :  { %v3012_v58 = vmul.f32 %v3931_v53, %v3009_v56  ;;  %vm3017_vm13 = vweird.f32 %v3931_v53 }
0x1db8   :  { %vm3018_vm15 = vmor %vm3016_vm14, %vm3017_vm13 }
0x1db9   :  { %v3013_v22 = vsub.f32 1.0, %v3012_v58 }
0x1dbb   :  { %v3014_v5 = vmul.f32 %v3931_v53, %v3013_v22 }
0x1dbd   :  { %v3015_v30 = vadd.f32 %v3931_v53, %v3014_v5 }
0x1dbf   :  { %v3019_v59 = vsel %vm3018_vm15, %v3931_v53, %v3015_v30 }
0x1dc0   :  { %v3024_v28 = vsel %vm3021_vm0, %v3023_v36, %v3019_v59 }
0x1dc1   :  { %v3042_v26 = vmul.f32 %v3024_v28, %v5709_v50 }
0x1e04   :  { %v3045_v25 = vpop.permute.xlu2 %3044 }
0x1e05   :  { %v3047_v27 = vmul.f32 %v3045_v25, %v3024_v28 }
0x1e07   :  { %3049 = vrot.lane.b32.xlu2 %v3047_v27, %s4201_s22 }
0x1e14   :  { %v2874_v45 = vpop.xlane.xlu0 %2873 }
0x1e15   :  { %vm2875_vm4 = vcmp.eq.f32.partialorder %v5896_v7, %v2874_v45 }
0x1e16   :  { %v2876_v11 = vsel %vm2875_vm4, %v4287_v1, 32 }
0x1e17   :  { %v2877_v23 = vsel %vm357_vm12, %v2876_v11, 2147483647 }
0x1e18   :  { %v2879_v3 = vshra.s32 %v2877_v23, 16  ;;  %v2878_v60 = vand.u32 65535, %v2877_v23 }
0x1e1a   :  { %v2881_v61 = vcvt.s32.f32 %v2879_v3  ;;  %v2880_v2 = vcvt.s32.f32 %v2878_v60 }
0x1e1c   :  { %2882 = vmin.xlane.f32.xlu1 %v2881_v61 }
0x1e61   :  { %v3050_v42 = vpop.permute.xlu2 %3049 }
0x1e62   :  { %v5908_v55 = vadd.f32 %v3050_v42, %v3042_v26 }
0x1e64   :  { %3932 = vtanh.f32 %v5908_v55 }
0x1e65   :  { %3934 = vpow2.f32 %v3713_v4 }
0x1e6a   :  { %v3933_v18 = vpop.eup %3932 }
0x1e6b   :  { %3055 = vrot.lane.b32.xlu2 %v3933_v18, %s4201_s22  ;;  %v3935_v62 = vpop.eup %3934 }
0x1e6c   :  { %v3010_v33 = vadd.f32 1.0, %v3935_v62 }
0x1e6e   :  { %3936 = vrcp.f32 %v3010_v33  ;;  %v3037_v22 = vand.u32 2147483648, %v3010_v33  ;;  %vm3031_vm7 = vweird.f32 %v3010_v33  ;;  %v3035_v5 = vand.u32 2147483647, %v3010_v33 }
0x1e70   :  { %v3038_v39 = vor.u32 1.1754944e-38, %v3037_v22  ;;  %vm3036_vm9 = vcmp.eq.f32.partialorder %v3035_v5, 8.507059e+37  ;;  %v6218_v22 = vld [vmem:[#allocation17_spill] sm:$0xff] }
0x1e74   :  { %v3937_v50 = vpop.eup %3936 }
0x1e75   :  { %v3027_v29 = vmul.f32 %v3937_v50, %v3010_v33  ;;  %vm3032_vm6 = vweird.f32 %v3937_v50 }
0x1e76   :  { %vm3033_vm8 = vmor %vm3031_vm7, %vm3032_vm6 }
0x1e77   :  { %v3028_v56 = vsub.f32 1.0, %v3027_v29 }
0x1e79   :  { %v3029_v53 = vmul.f32 %v3937_v50, %v3028_v56 }
0x1e7b   :  { %v3030_v58 = vadd.f32 %v3937_v50, %v3029_v53 }
0x1e7d   :  { %v3034_v30 = vsel %vm3033_vm8, %v3937_v50, %v3030_v58  ;;  %v6217_v58 = vld [vmem:[#allocation37_spill] sm:$0xff] }
0x1e7e   :  { %v3039_v59 = vsel %vm3036_vm9, %v3038_v39, %v3034_v30  ;;  %v6220_v39 = vld [vmem:[#allocation16_spill] sm:$0xff] }
0x1e8f   :  { %v2883_v49 = vpop.xlane.xlu1 %2882 }
0x1e90   :  { %vm2884_vm5 = vcmp.eq.f32.partialorder %v2881_v61, %v2883_v49  ;;  %v2889_v36 = vcvt.f32.s32 %v2883_v49  ;;  %v3146_v61 = vpop.f32.mrf.mxu0 }
0x1e91   :  { %v2885_v48 = vsel %vm2884_vm5, %v2880_v2, inf }
0x1e92   :  { %2886 = vmin.xlane.f32.xlu1 %v2885_v48  ;;  %v2890_v25 = vshll.u32 %v2889_v36, 16 }
0x1ec5   :  { %v3056_v21 = vpop.permute.xlu2 %3055 }
0x1ec6   :  { %v3058_v54 = vmul.f32 %v3056_v21, %v3039_v59 }
0x1ec8   :  { %3714 = vmatmul.msk.f32.vlgmr.msra.gmra.mxu2 %vm175_vm2, %v3058_v54  ;;  %3725 = vmatmul.msk.f32.vlgmr.msra.gmra.mxu1 %vm175_vm2, %v3058_v54 }
0x1ec9   :  { %3345 = vmatpush.msra.mxu2 %v5720_v16 }
0x1ecb   :  { %3346 = vmatpush.msra.mxu2 %v5725_v12 }
0x1ecd   :  { %3347 = vmatpush.msra.mxu2 %v5730_v47 }
0x1ecf   :  { %3348 = vmatpush.msra.mxu2 %v5739_v19 }
0x1ed1   :  { %3349 = vmatpush.msra.mxu2 %v5748_v0 }
0x1ed3   :  { %3350 = vmatpush.msra.mxu2 %v5757_v31 }
0x1ed5   :  { %3351 = vmatpush.msra.mxu2 %v5766_v35 }
0x1ed7   :  { %3352 = vmatpush.msra.mxu2 %v5769_v34 }
0x1f05   :  { %v2887_v28 = vpop.xlane.xlu1 %2886 }
0x1f06   :  { %v2888_v27 = vcvt.f32.s32 %v2887_v28 }
0x1f08   :  { %v2891_v45 = vadd.s32 %v2890_v25, %v2888_v27 }
0x1f0a   :  { %vm2892_vm10 = vcmp.eq.s32.totalorder %v4287_v1, %v2891_v45 }
0x1f0b   :  { %v3706_v16 = vsel %vm2892_vm10, 1.0, %v6133_v15 }
0x1f0c   :  { %3716 = vmatmul.msk.f32.vlgmr.msrb.gmra.mxu3 %vm151_vm1, %v3706_v16 }
0x1f0d   :  { %3281 = vmatpush.msrb.mxu3 %v5482_v6 }
0x1f0f   :  { %3282 = vmatpush.msrb.mxu3 %v5488_v52 }
0x1f11   :  { %3283 = vmatpush.msrb.mxu3 %v5494_v24 }
0x1f13   :  { %3284 = vmatpush.msrb.mxu3 %v5500_v46 }
0x1f15   :  { %3285 = vmatpush.msrb.mxu3 %v5736_v8 }
0x1f17   :  { %3286 = vmatpush.msrb.mxu3 %v5745_v13 }
0x1f19   :  { %3287 = vmatpush.msrb.mxu3 %v5754_v9 }
0x1f1b   :  { %3288 = vmatpush.msrb.mxu3 %v5763_v38 }
0x1f4b   :  { %v3079_v12 = vpop.f32.mrf.mxu2 }
0x1f4c   :  { %v3080_v47 = vadd.f32 %v5785_v17, %v3079_v12 }
0x1f4e   :  { %3938 = vtanh.f32 %v3080_v47 }
0x1f54   :  { %v5934_v19 = vpop.eup %3938 }
0x1f55   :  { %v3083_v6 = vsel %vm357_vm12, %v5934_v19, -inf }
0x1f56   :  { %3084 = vmax.xlane.f32.xlu1 %v3083_v6 }
0x1f8f   :  { %v3126_v52 = vpop.f32.mrf.mxu3 }
0x1f90   :  { %3719 = vmatmul.msk.f32.vlgmr.msra.gmra.mxu3 %vm219_vm3, %v3126_v52  ;;  %3720 = vmatmul.msk.f32.vlgmr.msrb.gmra.mxu2 %vm219_vm3, %v3126_v52 }
0x1f91   :  { %3394 = vmatpush.msra.mxu3 %v5775_v20  ;;  %v3166_v20 = vpop.f32.mrf.mxu1 }
0x1f93   :  { %3395 = vmatpush.msra.mxu3 %v5779_v32 }
0x1f98   :  { %3726 = vmatmul.msk.f32.vlgmr.msra.gmra.mxu2 %vm175_vm2, %v3058_v54 }
0x1fc9   :  { %v3085_v24 = vpop.xlane.xlu1 %3084 }
0x1fca   :  { %vm3086_vm11 = vcmp.eq.f32.partialorder %v5934_v19, %v3085_v24 }
0x1fcb   :  { %v3087_v46 = vsel %vm3086_vm11, %v4287_v1, 32 }
0x1fcc   :  { %v3088_v8 = vsel %vm357_vm12, %v3087_v46, 2147483647 }
0x1fcd   :  { %v3090_v13 = vshra.s32 %v3088_v8, 16  ;;  %v3089_v9 = vand.u32 65535, %v3088_v8 }
0x1fcf   :  { %v3092_v0 = vcvt.s32.f32 %v3090_v13  ;;  %v3091_v38 = vcvt.s32.f32 %v3089_v9 }
0x1fd1   :  { %3093 = vmin.xlane.f32.xlu2 %v3092_v0 }
0x2013   :  { %v3209_v34 = vpop.f32.mrf.mxu2  ;;  %v3189_v3 = vpop.f32.mrf.mxu3 }
0x2014   :  { %v3210_v32 = vadd.f32 %v3209_v34, %v3166_v20  ;;  %v3190_v26 = vadd.f32 %v3189_v3, %v3146_v61  ;;  %v3334_v61 = vpop.f32.mrf.mxu1 }
0x2016   :  { %v3213_v11 = vadd.f32 %v3210_v32, %v6197_v37  ;;  %v3212_v42 = vadd.f32 %v3190_v26, %v4505_v51 }
0x2018   :  { %3940 = vtanh.f32 %v3213_v11  ;;  %v3721_v18 = vmul.f32 -1.442695, %v3212_v42  ;;  %v3722_v28 = vmul.f32 -1.442695, %v3213_v11  ;;  %v6221_v11 = vld [vmem:[#allocation36_spill] sm:$0xff] }
0x201a   :  { %3942 = vpow2.f32 %v3721_v18 }
0x201e   :  { %v3941_v23 = vpop.eup %3940 }
0x2020   :  { %v3943_v60 = vpop.eup %3942 }
0x2021   :  { %v3220_v49 = vadd.f32 1.0, %v3943_v60 }
0x2023   :  { %3944 = vrcp.f32 %v3220_v49  ;;  %vm3227_vm15 = vweird.f32 %v3220_v49 }
0x2029   :  { %v3945_v33 = vpop.eup %3944 }
0x202a   :  { %v3223_v50 = vmul.f32 %v3945_v33, %v3220_v49  ;;  %vm3228_vm14 = vweird.f32 %v3945_v33 }
0x202b   :  { %vm3229_vm0 = vmor %vm3227_vm15, %vm3228_vm14 }
0x202c   :  { %v3224_v51 = vsub.f32 1.0, %v3223_v50 }
0x202e   :  { %v3225_v56 = vmul.f32 %v3945_v33, %v3224_v51 }
0x2030   :  { %v3226_v53 = vadd.f32 %v3945_v33, %v3225_v56 }
0x2044   :  { %v3094_v31 = vpop.xlane.xlu2 %3093 }
0x2045   :  { %vm3095_vm13 = vcmp.eq.f32.partialorder %v3092_v0, %v3094_v31  ;;  %v3100_v2 = vcvt.f32.s32 %v3094_v31 }
0x2046   :  { %v3096_v35 = vsel %vm3095_vm13, %v3091_v38, inf  ;;  %v3354_v38 = vpop.f32.mrf.mxu2 }
0x2047   :  { %3097 = vmin.xlane.f32.xlu1 %v3096_v35  ;;  %v3101_v4 = vshll.u32 %v3100_v2, 16 }
0x2060   :  { %3255 = vrot.lane.b32.xlu1 %v3941_v23, %s4201_s22  ;;  %v6222_v23 = vld [vmem:[#allocation14_spill] sm:$0xff] }
0x20ba   :  { %v3098_v48 = vpop.xlane.xlu1 %3097 }
0x20bb   :  { %v3099_v62 = vcvt.f32.s32 %v3098_v48 }
0x20bd   :  { %v3102_v37 = vadd.s32 %v3101_v4, %v3099_v62 }
0x20bf   :  { %vm3103_vm12 = vcmp.eq.s32.totalorder %v4287_v1, %v3102_v37  ;;  %v3233_v1 = vand.u32 2147483648, %v3220_v49 }
0x20c0   :  { %v3715_v29 = vsel %vm3103_vm12, 1.0, %v6133_v15  ;;  %v3231_v15 = vand.u32 2147483647, %v3220_v49 }
0x20c1   :  { %3724 = vmatmul.msk.f32.vlgmr.msrb.gmra.mxu0 %vm151_vm1, %v3715_v29  ;;  %v3234_v5 = vor.u32 1.1754944e-38, %v3233_v1  ;;  %v6223_v1 = vld [vmem:[#allocation26_spill] sm:$0xff] }
0x20c2   :  { %3469 = vmatpush.msrb.mxu0 %v5820_v14  ;;  %v3230_v14 = vsel %vm3229_vm0, %v3945_v33, %v3226_v53  ;;  %vm3232_vm4 = vcmp.eq.f32.partialorder %v3231_v15, 8.507059e+37  ;;  %vm3508_vm0 = vcmask 785408  }
0x20c4   :  { %3470 = vmatpush.msrb.mxu0 %v5828_v43  ;;  %v6219_v43 = vld [vmem:[#allocation38_spill] sm:$0xff] }
0x20c6   :  { %3471 = vmatpush.msrb.mxu0 %v5835_v44  ;;  %v3235_v44 = vsel %vm3232_vm4, %v3234_v5, %v3230_v14  ;;  %v6225_v5 = vld [vmem:[#allocation39_spill] sm:$0xff]  ;;  %vm3516_vm4 = vcmask 1041408  }
0x20c7   :  { %v3253_v21 = vmul.f32 %v3235_v44, %v6220_v39 }
0x20c8   :  { %3472 = vmatpush.msrb.mxu0 %v5841_v40 }
0x20ca   :  { %3473 = vmatpush.msrb.mxu0 %v5847_v10 }
0x20cc   :  { %3474 = vmatpush.msrb.mxu0 %v6217_v58  ;;  %v6224_v58 = vld [vmem:[#allocation27_spill] sm:$0xff] }
0x20ce   :  { %3475 = vmatpush.msrb.mxu0 %v6218_v22 }
0x20d0   :  { %3476 = vmatpush.msrb.mxu0 %v6219_v43  ;;  %v6226_v43 = vld [vmem:[#allocation15_spill] sm:$0xff] }
0x20d2   :  { %v3256_v30 = vpop.permute.xlu1 %3255 }
0x20d3   :  { %v3258_v40 = vmul.f32 %v3256_v30, %v3235_v44  ;;  %v6227_v44 = vld [vmem:[#allocation40_spill] sm:$0xff] }
0x20d5   :  { %3260 = vrot.lane.b32.xlu0 %v3258_v40, %s4201_s22 }
0x213e   :  { %v3314_v10 = vpop.f32.mrf.mxu0 }
0x213f   :  { %3727 = vmatmul.msk.f32.vlgmr.msra.gmra.mxu0 %vm219_vm3, %v3314_v10 }
0x2147   :  { %v3261_v59 = vpop.permute.xlu0 %3260 }
0x2148   :  { %v3263_v54 = vadd.f32 %v3261_v59, %v3253_v21 }
0x214a   :  { %3946 = vtanh.f32 %v3263_v54 }
0x214b   :  { %3948 = vpow2.f32 %v3722_v28 }
0x2150   :  { %v3947_v36 = vpop.eup %3946 }
0x2151   :  { %3266 = vrot.lane.b32.xlu0 %v3947_v36, %s4201_s22  ;;  %v3949_v25 = vpop.eup %3948 }
0x2152   :  { %v3221_v27 = vadd.f32 1.0, %v3949_v25 }
0x2154   :  { %3950 = vrcp.f32 %v3221_v27  ;;  %v3248_v52 = vand.u32 2147483648, %v3221_v27  ;;  %vm3242_vm6 = vweird.f32 %v3221_v27  ;;  %v3246_v24 = vand.u32 2147483647, %v3221_v27 }
0x2156   :  { %v3249_v8 = vor.u32 1.1754944e-38, %v3248_v52  ;;  %vm3247_vm8 = vcmp.eq.f32.partialorder %v3246_v24, 8.507059e+37  ;;  %v6228_v52 = vld [vmem:[#allocation45_spill] sm:$0xff] }
0x215a   :  { %v3951_v45 = vpop.eup %3950 }
0x215b   :  { %v3238_v16 = vmul.f32 %v3951_v45, %v3221_v27  ;;  %vm3243_vm5 = vweird.f32 %v3951_v45 }
0x215c   :  { %vm3244_vm7 = vmor %vm3242_vm6, %vm3243_vm5 }
0x215d   :  { %v3239_v12 = vsub.f32 1.0, %v3238_v16 }
0x215f   :  { %v3240_v47 = vmul.f32 %v3951_v45, %v3239_v12 }
0x2161   :  { %v3241_v6 = vadd.f32 %v3951_v45, %v3240_v47 }
0x2163   :  { %v3245_v46 = vsel %vm3244_vm7, %v3951_v45, %v3241_v6 }
0x2164   :  { %v3250_v13 = vsel %vm3247_vm8, %v3249_v8, %v3245_v46 }
0x21bc   :  { %v3377_v3 = vpop.f32.mrf.mxu0 }
0x21bd   :  { %v3378_v26 = vadd.f32 %v3377_v3, %v3334_v61 }
0x21bf   :  { %v3400_v42 = vadd.f32 %v3378_v26, %v6216_v41 }
0x21c3   :  { %v3267_v0 = vpop.permute.xlu0 %3266 }
0x21c4   :  { %v3269_v9 = vmul.f32 %v3267_v0, %v3250_v13 }
0x21c6   :  { %3723 = vmatmul.msk.f32.vlgmr.msrb.gmra.mxu3 %vm175_vm2, %v3269_v9 }
0x21ce   :  { %3728 = vmatmul.msk.f32.vlgmr.msra.gmra.mxu3 %vm219_vm3, %v3314_v10 }
0x2249   :  { %v3290_v31 = vpop.f32.mrf.mxu3 }
0x224a   :  { %v3291_v41 = vadd.f32 %v6214_v57, %v3290_v31 }
0x2251   :  { %v3397_v35 = vpop.f32.mrf.mxu3 }
0x2252   :  { %v3398_v34 = vadd.f32 %v3397_v35, %v3354_v38 }
0x2254   :  { %v3401_v20 = vadd.f32 %v3398_v34, %v6215_v63  ;;  %v3729_v63 = vmul.f32 -1.442695, %v3400_v42  ;;  %v6229_v34 = vld [vmem:[#allocation33_spill] sm:$0xff] }
0x2256   :  { %3952 = vtanh.f32 %v3401_v20  ;;  %v3730_v30 = vmul.f32 -1.442695, %v3401_v20 }
0x2257   :  { %3954 = vpow2.f32 %v3729_v63  ;;  %v6231_v63 = vld [vmem:[#allocation29_spill] sm:$0xff] }
0x225c   :  { %v3953_v32 = vpop.eup %3952 }
0x225d   :  { %3443 = vrot.lane.b32.xlu1 %v3953_v32, %s4201_s22  ;;  %v3955_v18 = vpop.eup %3954 }
0x225e   :  { %v3408_v60 = vadd.f32 1.0, %v3955_v18 }
0x2260   :  { %3956 = vrcp.f32 %v3408_v60  ;;  %vm3415_vm9 = vweird.f32 %v3408_v60  ;;  %v3419_v33 = vand.u32 2147483647, %v3408_v60 }
0x2261   :  { %3958 = vtanh.f32 %v3291_v41 }
0x2262   :  { %vm3420_vm11 = vcmp.eq.f32.partialorder %v3419_v33, 8.507059e+37 }
0x2265   :  { %3495 = vrot.lane.b32.xlu1 %v6221_v11, %s4202_s9 }
0x2266   :  { %v3957_v49 = vpop.eup %3956 }
0x2267   :  { %v3411_v2 = vmul.f32 %v3957_v49, %v3408_v60  ;;  %vm3416_vm3 = vweird.f32 %v3957_v49  ;;  %v3959_v53 = vpop.eup %3958 }
0x2268   :  { %vm3417_vm10 = vmor %vm3415_vm9, %vm3416_vm3 }
0x2269   :  { %v3412_v48 = vsub.f32 1.0, %v3411_v2 }
0x226b   :  { %v3413_v4 = vmul.f32 %v3957_v49, %v3412_v48 }
0x226d   :  { %3499 = vrot.lane.b32.xlu1 %v5896_v7, %s4201_s22  ;;  %v3414_v62 = vadd.f32 %v3957_v49, %v3413_v4  ;;  %v3421_v7 = vand.u32 2147483648, %v3408_v60  ;;  %v6232_v4 = vld [vmem:[#allocation30_spill] sm:$0xff] }
0x226f   :  { %v3418_v37 = vsel %vm3417_vm10, %v3957_v49, %v3414_v62  ;;  %v3422_v50 = vor.u32 1.1754944e-38, %v3421_v7 }
0x2271   :  { %v3423_v29 = vsel %vm3420_vm11, %v3422_v50, %v3418_v37 }
0x2272   :  { %v3441_v15 = vmul.f32 %v3423_v29, %v5908_v55 }
0x2275   :  { %3483 = vrot.lane.b32.xlu1 %v6222_v23, %s4202_s9 }
0x22cf   :  { %v3444_v51 = vpop.permute.xlu1 %3443 }
0x22d0   :  { %v3446_v56 = vmul.f32 %v3444_v51, %v3423_v29 }
0x22d2   :  { %3448 = vrot.lane.b32.xlu2 %v3446_v56, %s4201_s22 }
0x22d7   :  { %v3496_v46 = vpop.permute.xlu1 %3495 }
0x22d8   :  { %v3510_v18 = vsel %vm151_vm1, %v6231_v63, %v3496_v46 }
0x22da   :  { %3503 = vrot.lane.b32.xlu2 %v3959_v53, %s4203_s27 }
0x22df   :  { %v3500_v13 = vpop.permute.xlu1 %3499 }
0x22e0   :  { %v3511_v49 = vsel %vm175_vm2, %v3510_v18, %v3500_v13 }
0x22e2   :  { %3487 = vrot.lane.b32.xlu2 %v6223_v1, %s4201_s22 }
0x22e7   :  { %v3484_v31 = vpop.permute.xlu1 %3483 }
0x22e8   :  { %v3506_v62 = vsel %vm151_vm1, %v6232_v4, %v3484_v31 }
0x22ea   :  { %3529 = vrot.lane.b32.xlu2 %v6224_v58, %s4203_s27 }
0x232c   :  { %v3449_v22 = vpop.permute.xlu2 %3448 }
0x232d   :  { %v3451_v57 = vadd.f32 %v3449_v22, %v3441_v15 }
0x232f   :  { %3960 = vtanh.f32 %v3451_v57 }
0x2330   :  { %3962 = vpow2.f32 %v3730_v30 }
0x2334   :  { %v3504_v0 = vpop.permute.xlu2 %3503 }
0x2335   :  { %v3961_v14 = vpop.eup %3960  ;;  %v3512_v48 = vsel %vm3508_vm0, %v3511_v49, %v3504_v0 }
0x2336   :  { %3454 = vrot.lane.b32.xlu0 %v3961_v14, %s4201_s22  ;;  %v3963_v55 = vpop.eup %3962  ;;  %v3515_v7 = vrot.slane %v3512_v48, 6 }
0x2337   :  { %v3409_v40 = vadd.f32 1.0, %v3963_v55 }
0x2339   :  { %3964 = vrcp.f32 %v3409_v40  ;;  %v3436_v36 = vand.u32 2147483648, %v3409_v40  ;;  %vm3430_vm12 = vweird.f32 %v3409_v40 }
0x233b   :  { %v3437_v25 = vor.u32 1.1754944e-38, %v3436_v36 }
0x233c   :  { %v3488_v38 = vpop.permute.xlu2 %3487 }
0x233d   :  { %v3507_v33 = vsel %vm175_vm2, %v3506_v62, %v3488_v38 }
0x233e   :  { %3533 = vrot.lane.b32.xlu0 %v6225_v5, %s4202_s9 }
0x233f   :  { %v3965_v10 = vpop.eup %3964 }
0x2340   :  { %v3426_v39 = vmul.f32 %v3965_v10, %v3409_v40  ;;  %vm3431_vm13 = vweird.f32 %v3965_v10 }
0x2341   :  { %vm3432_vm14 = vmor %vm3430_vm12, %vm3431_vm13 }
0x2342   :  { %v3427_v21 = vsub.f32 1.0, %v3426_v39 }
0x2344   :  { %v3428_v59 = vmul.f32 %v3965_v10, %v3427_v21  ;;  %v3530_v26 = vpop.permute.xlu2 %3529 }
0x2346   :  { %3537 = vrot.lane.b32.xlu0 %v5934_v19, %s4201_s22  ;;  %v3429_v54 = vadd.f32 %v3965_v10, %v3428_v59  ;;  %v3434_v19 = vand.u32 2147483647, %v3409_v40 }
0x2348   :  { %v3433_v28 = vsel %vm3432_vm14, %v3965_v10, %v3429_v54  ;;  %vm3435_vm15 = vcmp.eq.f32.partialorder %v3434_v19, 8.507059e+37 }
0x2349   :  { %v3438_v45 = vsel %vm3435_vm15, %v3437_v25, %v3433_v28 }
0x234e   :  { %3521 = vrot.lane.b32.xlu0 %v6226_v43, %s4202_s9 }
0x2356   :  { %3525 = vrot.lane.b32.xlu0 %v6227_v44, %s4201_s22  ;;  %s4204_s22 = smov [#allocation8]  }
0x2357   :  { %s3572_s5 = sshll.u32 %s4204_s22, 4  ;;  %s3573_s5 = int_to_ptr.vmem [resolvable:$true] %s3572_s5 }
0x23a8   :  { %v3455_v27 = vpop.permute.xlu0 %3454 }
0x23a9   :  { %v3457_v16 = vmul.f32 %v3455_v27, %v3438_v45 }
0x23ab   :  { %3731 = vmatmul.msk.f32.vlgmr.msrb.gmra.mxu0 %vm175_vm2, %v3457_v16 }
0x23b0   :  { %v3534_v24 = vpop.permute.xlu0 %3533 }
0x23b1   :  { %v3547_v20 = vsel %vm151_vm1, %v6229_v34, %v3534_v24 }
0x23b8   :  { %v3538_v8 = vpop.permute.xlu0 %3537 }
0x23b9   :  { %v3548_v11 = vsel %vm175_vm2, %v3547_v20, %v3538_v8 }
0x23c0   :  { %v3522_v9 = vpop.permute.xlu0 %3521 }
0x23c8   :  { %v3526_v35 = vpop.permute.xlu0 %3525 }
0x2428   :  { %v3478_v12 = vpop.f32.mrf.mxu0 }
0x2429   :  { %v3479_v47 = vadd.f32 %v5785_v17, %v3478_v12  ;;  %v6230_v17 = vld [vmem:[#allocation34_spill] sm:$0xff] }
0x242a   :  { %v3544_v32 = vsel %vm151_vm1, %v6230_v17, %v3522_v9 }
0x242b   :  { %3966 = vtanh.f32 %v3479_v47  ;;  %v3545_v23 = vsel %vm175_vm2, %v3544_v32, %v3526_v35 }
0x242c   :  { %v3546_v60 = vsel %vm3508_vm0, %v3545_v23, %v3530_v26 }
0x2431   :  { %v3967_v6 = vpop.eup %3966 }
0x2432   :  { %3541 = vrot.lane.b32.xlu1 %v3967_v6, %s4203_s27 }
0x243a   :  { %3491 = vrot.lane.b32.xlu1 %v6228_v52, %s4203_s27 }
0x24a4   :  { %v3542_v3 = vpop.permute.xlu1 %3541 }
0x24a5   :  { %v3549_v61 = vsel %vm3508_vm0, %v3548_v11, %v3542_v3 }
0x24a6   :  { %v3552_v42 = vrot.slane %v3549_v61, 6 }
0x24a8   :  { %v3553_v2 = vsel %vm3516_vm4, %v3546_v60, %v3552_v42 }
0x24a9   :  { %3555 = vst [vmem:[#allocation8] sm:$0xf] %v3553_v2 }
0x24aa   :  { %3577 = dma.vmem_to_hbm [thread:$0]  %s3573_s5, 64, %s3575_s29, [#allocation9]  }
0x24ac   :  { %v3492_v37 = vpop.permute.xlu1 %3491 }
0x24ad   :  { %v3509_v50 = vsel %vm3508_vm0, %v3507_v33, %v3492_v37 }
0x24ae   :  { %v3517_v41 = vsel %vm3516_vm4, %v3509_v50, %v3515_v7 }
0x24af   :  { %3519 = vst [vmem:[#allocation7] sm:$0xf] %v3517_v41 }
0x24b0   :  { %3566 = dma.vmem_to_hbm [thread:$0]  %s3562_s14, 64, %s3564_s1, [#allocation4]  }
0x24b1   :  { %4192 = dma.done.wait [#allocation4], 64  }
0x24b2   :  { %4193 = vsyncadd [#allocation4], 4294967232 }
0x24b3   :  { %4194 = dma.done.wait [#allocation9], 64  }
0x24b4   :  { %4195 = vsyncadd [#allocation9], 4294967232 }
0x24b5   :  { %3586 = vsyncpa [#allocation3], 1 }
0x24b6   :  { %3587 = vsyncpa [#allocation6], 1 }
0x24b7   :  { %3588 = vsyncpa [#allocation4], 1 }
0x24b8   :  { %3589 = vsyncpa [#allocation9], 1 }

</bundles_post_ra>
